<compile_context>
chip_gen: v7x
topology: tpu7x:2x2x1
jax: 0.10.0
libtpu: 0.0.40
codegen_flags: <defaults>
</compile_context>

<pallas_src>
import functools

import jax
import jax.numpy as jnp
from jax.experimental import pallas as pl
from jax.experimental.pallas import tpu as pltpu


# ----------------------------------------------------------------------------
# Blocked matmul + bias:  (M, K) @ (K, N) + b  with f32 accumulator scratch.
# Used for (a) the hoisted LSTM input projections and (b) the output layer.
# ----------------------------------------------------------------------------
def _matmul_bias_kernel(x_ref, w_ref, b_ref, o_ref, acc_ref):
    @pl.when(pl.program_id(2) == 0)
    def _():
        acc_ref[...] = jnp.zeros_like(acc_ref)

    # Cast activations to the weight dtype (no-op for f32; enables the bf16 MXU
    # path when weights are stored in bf16). Accumulation stays f32.
    acc_ref[...] += jnp.dot(
        x_ref[...].astype(w_ref.dtype), w_ref[...],
        preferred_element_type=jnp.float32,
    )

    @pl.when(pl.program_id(2) == pl.num_programs(2) - 1)
    def _():
        o_ref[...] = (acc_ref[...] + b_ref[...].astype(jnp.float32)).astype(o_ref.dtype)


def _pick_tile(dim, pref):
    """Use the preferred tile if it divides the dim, else take the full extent."""
    return pref if (dim >= pref and dim % pref == 0) else dim


def matmul_bias(x, w, b, *, tm=128, tn=128, tk=512, out_dtype=jnp.float32):
    M, K = x.shape
    K2, N = w.shape
    assert K == K2 and b.shape == (N,)
    tm = _pick_tile(M, tm)
    tn = _pick_tile(N, tn)
    tk = _pick_tile(K, tk)
    grid = (M // tm, N // tn, K // tk)
    return pl.pallas_call(
        _matmul_bias_kernel,
        out_shape=jax.ShapeDtypeStruct((M, N), out_dtype),
        grid_spec=pltpu.PrefetchScalarGridSpec(
            num_scalar_prefetch=0,
            grid=grid,
            in_specs=[
                pl.BlockSpec((tm, tk), lambda i, j, k: (i, k)),
                pl.BlockSpec((tk, tn), lambda i, j, k: (k, j)),
                pl.BlockSpec((1, tn), lambda i, j, k: (0, j)),
            ],
            out_specs=pl.BlockSpec((tm, tn), lambda i, j, k: (i, j)),
            scratch_shapes=[pltpu.VMEM((tm, tn), jnp.float32)],
        ),
        compiler_params=pltpu.CompilerParams(
            dimension_semantics=("parallel", "parallel", "arbitrary")
        ),
    )(x, w, b.reshape(1, N))


# ----------------------------------------------------------------------------
# LSTM recurrence kernel.  Grid iterates over time blocks of K timesteps; the
# per-timestep work is only `x_proj[t] + h @ W_hh` (the input projection was
# hoisted).  h/c live in VMEM scratch and persist across grid steps.
# ----------------------------------------------------------------------------
def _lstm_recurrent_kernel(xp_ref, w_hh_ref, y_ref, h_ref, c_ref, *, hidden, steps):
    @pl.when(pl.program_id(0) == 0)
    def _():
        h_ref[...] = jnp.zeros_like(h_ref)
        c_ref[...] = jnp.zeros_like(c_ref)

    w_hh = w_hh_ref[...]        # (H, 4H), pre-transposed -> no in-kernel .T
    h = h_ref[...]
    c = c_ref[...]
    H = hidden

    # K timesteps per grid invocation, statically unrolled: amortizes per-grid-step
    # overhead and gives the scheduler a window to overlap gate VPU/EUP math with
    # the next step's MXU push.  All slices below are lane-aligned when H % 128 == 0.
    for k in range(steps):
        gates = xp_ref[k] + jnp.dot(
            h.astype(w_hh.dtype), w_hh, preferred_element_type=jnp.float32
        )
        # PyTorch gate order: input, forget, cell(g), output.
        i_g = jax.nn.sigmoid(gates[:, 0 * H:1 * H])
        f_g = jax.nn.sigmoid(gates[:, 1 * H:2 * H])
        g_g = jnp.tanh(gates[:, 2 * H:3 * H])
        o_g = jax.nn.sigmoid(gates[:, 3 * H:4 * H])
        c = f_g * c + i_g * g_g
        h = o_g * jnp.tanh(c)
        y_ref[k] = h.astype(y_ref.dtype)   # lane-dense (B, H) store, H multiple of 128

    h_ref[...] = h
    c_ref[...] = c


def _steps_per_block(T, max_steps=8):
    k = min(T, max_steps)
    while T % k:
        k -= 1
    return k


def lstm_layer(x_proj, w_hh_t):
    """Run one LSTM layer given the pre-computed input projection.

    x_proj: (T, B, 4H) = x @ W_ih^T + b_ih + b_hh   (hoisted out of the loop)
    w_hh_t: (H, 4H)    = W_hh^T                     (pre-transposed)
    returns y: (T, B, H)
    """
    T, B, G = x_proj.shape
    H = w_hh_t.shape[0]
    assert G == 4 * H
    K = _steps_per_block(T)
    kernel = functools.partial(_lstm_recurrent_kernel, hidden=H, steps=K)
    return pl.pallas_call(
        kernel,
        out_shape=jax.ShapeDtypeStruct((T, B, H), jnp.float32),
        grid_spec=pltpu.PrefetchScalarGridSpec(
            num_scalar_prefetch=0,
            grid=(T // K,),
            in_specs=[
                pl.BlockSpec((K, B, G), lambda t: (t, 0, 0)),
                # Grid-invariant weight block (constant index_map -> no re-DMA).
                # TODO(synk): single-buffer this block (pl.Buffered(1)) once
                # pipeline_mode on pallas_call in_specs is verified on this jax build.
                pl.BlockSpec((H, G), lambda t: (0, 0)),
            ],
            out_specs=pl.BlockSpec((K, B, H), lambda t: (t, 0, 0)),
            scratch_shapes=[
                pltpu.VMEM((B, H), jnp.float32),   # h
                pltpu.VMEM((B, H), jnp.float32),   # c
            ],
        ),
        compiler_params=pltpu.CompilerParams(
            dimension_semantics=("arbitrary",)     # time recurrence is serial
        ),
    )(x_proj, w_hh_t)


def run_multilayer_lstm(x_seq, layer_params):
    """Stacked LSTM. Returns (last-layer outputs (T,B,H), h_n (L,B,H))."""
    cur = x_seq
    h_lasts = []
    for (w_ih_t, w_hh_t, b) in layer_params:
        T, B, Din = cur.shape
        # Hoisted input projection: one big batched matmul over all T*B rows
        # instead of a tiny B-row matmul on every serial timestep.
        x_proj = matmul_bias(cur.reshape(T * B, Din), w_ih_t, b).reshape(T, B, -1)
        cur = lstm_layer(x_proj, w_hh_t)
        h_lasts.append(cur[-1])  # last-timestep hidden of this layer
    return cur, jnp.stack(h_lasts, axis=0)


# ----------------------------------------------------------------------------
# Full Seq2Seq LSTM forward (mirrors LSTM.forward of the PyTorch module).
# ----------------------------------------------------------------------------
def seq2seq_lstm_forward(params, X, Y):
    """X: int32 (batch, in_len), Y: int32 (batch, out_len) -> (batch, out_len, vocab)."""
    # X = self.source_embeddings(X.T)  -> (in_len, batch, E_enc)
    x_emb = jnp.take(params["src_emb"], X.T, axis=0)

    # encoder LSTM
    _, enc_h_n = run_multilayer_lstm(x_emb, params["enc"])

    # encoder_last_hidden.transpose(0,1).flatten(start_dim=1) -> (batch, L*H)
    enc_last = jnp.transpose(enc_h_n, (1, 0, 2)).reshape(enc_h_n.shape[1], -1)

    out_len = Y.shape[1]
    enc_last_rep = jnp.broadcast_to(enc_last[None, :, :], (out_len,) + enc_last.shape)

    # Y = self.target_embeddings(Y.T) -> (out_len, batch, E_dec)
    y_emb = jnp.take(params["tgt_emb"], Y.T, axis=0)

    # cat along feature axis (Y first, then encoder hidden) - matches torch.cat order
    dec_in = jnp.concatenate([y_emb, enc_last_rep], axis=-1)

    # decoder LSTM
    dec_out, _ = run_multilayer_lstm(dec_in, params["dec"])

    # output_layer(decoder.transpose(0,1)) -> (batch, out_len, vocab)
    T, B, H = dec_out.shape
    dec_bt = jnp.transpose(dec_out, (1, 0, 2)).reshape(B * T, H)
    logits = matmul_bias(dec_bt, params["out_w_t"], params["out_b"])
    return logits.reshape(B, T, -1)


# ----------------------------------------------------------------------------
# Deterministic parameter construction (matches module's __init__ shapes).
# Weights are stored pre-transposed and with combined biases.
# param_dtype=jnp.bfloat16 halves weight VMEM and uses the native bf16 MXU path
# on v6e/v7x (accumulation stays f32 inside the kernels).
# ----------------------------------------------------------------------------
def init_lstm_stack(key, num_layers, input_size, hidden, param_dtype=jnp.float32):
    params = []
    bound = float(1.0 / (hidden ** 0.5))
    for layer in range(num_layers):
        din = input_size if layer == 0 else hidden
        key, k1, k2, k3, k4 = jax.random.split(key, 5)
        w_ih = jax.random.uniform(k1, (4 * hidden, din), jnp.float32, -bound, bound)
        w_hh = jax.random.uniform(k2, (4 * hidden, hidden), jnp.float32, -bound, bound)
        b_ih = jax.random.uniform(k3, (4 * hidden,), jnp.float32, -bound, bound)
        b_hh = jax.random.uniform(k4, (4 * hidden,), jnp.float32, -bound, bound)
        params.append(
            (w_ih.T.astype(param_dtype),          # (Din, 4H)
             w_hh.T.astype(param_dtype),          # (H, 4H)
             (b_ih + b_hh))                       # (4H,)  f32
        )
    return params, key


def init_params(key, vocab, enc_emb, dec_emb, enc_hidden, enc_layers,
                dec_hidden, dec_layers, param_dtype=jnp.float32):
    key, k1, k2, k3, k4 = jax.random.split(key, 5)
    params = {}
    params["src_emb"] = jax.random.normal(k1, (vocab, enc_emb), jnp.float32)
    params["tgt_emb"] = jax.random.normal(k2, (vocab, dec_emb), jnp.float32)
    params["enc"], key = init_lstm_stack(key, enc_layers, enc_emb, enc_hidden,
                                         param_dtype)
    dec_in_size = enc_layers * enc_hidden + dec_emb
    params["dec"], key = init_lstm_stack(key, dec_layers, dec_in_size, dec_hidden,
                                         param_dtype)
    kw = float(1.0 / (dec_hidden ** 0.5))
    out_w = jax.random.uniform(k3, (vocab, dec_hidden), jnp.float32, -kw, kw)
    params["out_w_t"] = out_w.T.astype(param_dtype)   # (H, V), pre-transposed
    params["out_b"] = jax.random.uniform(k4, (vocab,), jnp.float32, -kw, kw)
    return params


if __name__ == "__main__":
    # Small shapes matching the module defaults (H=128 keeps gate slices and
    # output stores lane-aligned); batch padded to a sublane multiple (8).
    VOCAB = 32
    ENC_EMB = 32
    DEC_EMB = 32
    ENC_HIDDEN = 128
    ENC_LAYERS = 2
    DEC_HIDDEN = 128
    DEC_LAYERS = 2
    BATCH = 8
    IN_LEN = 8
    OUT_LEN = 8

    key = jax.random.PRNGKey(0)
    key, kx, ky = jax.random.split(key, 3)
    params = init_params(key, VOCAB, ENC_EMB, DEC_EMB,
                         ENC_HIDDEN, ENC_LAYERS, DEC_HIDDEN, DEC_LAYERS)

    X = jax.random.randint(kx, (BATCH, IN_LEN), 0, VOCAB, dtype=jnp.int32)
    Y = jax.random.randint(ky, (BATCH, OUT_LEN), 0, VOCAB, dtype=jnp.int32)

    fwd = jax.jit(functools.partial(seq2seq_lstm_forward, params))
    out = fwd(X, Y)
    jax.block_until_ready(out)

    assert out.shape == (BATCH, OUT_LEN, VOCAB), out.shape
    assert out.dtype == jnp.float32
    print("KERNEL_OK")
</pallas_src>

<mosaic_0001>
module attributes {stable_mosaic.version = 11 : i64} {
  func.func @_matmul_bias_kernel(%arg0: i32, %arg1: i32, %arg2: i32, %arg3: memref<64x32xf32, #tpu.memory_space<vmem>>, %arg4: memref<32x128xf32, #tpu.memory_space<vmem>>, %arg5: memref<1x128xf32, #tpu.memory_space<vmem>>, %arg6: memref<64x128xf32, #tpu.memory_space<vmem>>, %arg7: memref<64x128xf32, #tpu.memory_space<vmem>>) attributes {dimension_semantics = [#tpu.dimension_semantics<parallel>, #tpu.dimension_semantics<parallel>, #tpu.dimension_semantics<arbitrary>], iteration_bounds = array<i64: 1, 4, 1>, scalar_prefetch = 0 : i64, scratch_operands = 1 : i64, tpu.core_type = #tpu.core_type<tc>, window_params = [{transform_indices = @transform_0, window_bounds = array<i64: 64, 32>}, {transform_indices = @transform_1, window_bounds = array<i64: 32, 128>}, {transform_indices = @transform_2, window_bounds = array<i64: 1, 128>}, {transform_indices = @transform_3, window_bounds = array<i64: 64, 128>}]} {
    %c0_i32 = arith.constant 0 : i32
    %0 = arith.cmpi eq, %arg2, %c0_i32 : i32
    %1 = arith.extui %0 : i1 to i32
    %c0_i32_0 = arith.constant 0 : i32
    %2 = arith.cmpi ne, %1, %c0_i32_0 : i32
    scf.if %2 {
      %cst_10 = arith.constant 0.000000e+00 : f32
      %12 = vector.broadcast %cst_10 : f32 to vector<64x128xf32>
      %c0_11 = arith.constant 0 : index
      %c0_12 = arith.constant 0 : index
      %13 = vector.load %arg7[%c0_11, %c0_12] : memref<64x128xf32, #tpu.memory_space<vmem>>, vector<64x128xf32>
      tpu.vector_store %arg7[%c0_11, %c0_12], %12 {strides = array<i32>} : memref<64x128xf32, #tpu.memory_space<vmem>>, vector<64x128xf32>,
    } else {
    }
    %c0 = arith.constant 0 : index
    %c0_1 = arith.constant 0 : index
    %3 = vector.load %arg7[%c0, %c0_1] : memref<64x128xf32, #tpu.memory_space<vmem>>, vector<64x128xf32>
    %c0_2 = arith.constant 0 : index
    %c0_3 = arith.constant 0 : index
    %4 = vector.load %arg3[%c0_2, %c0_3] : memref<64x32xf32, #tpu.memory_space<vmem>>, vector<64x32xf32>
    %c0_4 = arith.constant 0 : index
    %c0_5 = arith.constant 0 : index
    %5 = vector.load %arg4[%c0_4, %c0_5] : memref<32x128xf32, #tpu.memory_space<vmem>>, vector<32x128xf32>
    %cst = arith.constant dense<0.000000e+00> : vector<64x128xf32>
    %6 = tpu.matmul %4, %5, %cst {dimension_numbers = #tpu.dot_dimension_numbers<[1], [0], [0], [1], [0, 0, 1, 1], [], []>} : vector<64x32xf32>, vector<32x128xf32>, vector<64x128xf32> -> vector<64x128xf32>
    %7 = arith.addf %3, %6 : vector<64x128xf32>
    %c0_6 = arith.constant 0 : index
    %c0_7 = arith.constant 0 : index
    %8 = vector.load %arg7[%c0_6, %c0_7] : memref<64x128xf32, #tpu.memory_space<vmem>>, vector<64x128xf32>
    tpu.vector_store %arg7[%c0_6, %c0_7], %7 {strides = array<i32>} : memref<64x128xf32, #tpu.memory_space<vmem>>, vector<64x128xf32>,
    %c0_i32_8 = arith.constant 0 : i32
    %9 = arith.cmpi eq, %arg2, %c0_i32_8 : i32
    %10 = arith.extui %9 : i1 to i32
    %c0_i32_9 = arith.constant 0 : i32
    %11 = arith.cmpi ne, %10, %c0_i32_9 : i32
    scf.if %11 {
      %c0_10 = arith.constant 0 : index
      %c0_11 = arith.constant 0 : index
      %12 = vector.load %arg7[%c0_10, %c0_11] : memref<64x128xf32, #tpu.memory_space<vmem>>, vector<64x128xf32>
      %c0_12 = arith.constant 0 : index
      %c0_13 = arith.constant 0 : index
      %13 = vector.load %arg5[%c0_12, %c0_13] : memref<1x128xf32, #tpu.memory_space<vmem>>, vector<1x128xf32>
      %14 = vector.broadcast %13 : vector<1x128xf32> to vector<64x128xf32>
      %15 = arith.addf %12, %14 : vector<64x128xf32>
      %c0_14 = arith.constant 0 : index
      %c0_15 = arith.constant 0 : index
      %16 = vector.load %arg6[%c0_14, %c0_15] : memref<64x128xf32, #tpu.memory_space<vmem>>, vector<64x128xf32>
      tpu.vector_store %arg6[%c0_14, %c0_15], %15 {strides = array<i32>} : memref<64x128xf32, #tpu.memory_space<vmem>>, vector<64x128xf32>,
    } else {
    }
    return
  }
  func.func @transform_0(%arg0: i32, %arg1: i32, %arg2: i32) -> (i32, i32) {
    %c0_i32 = arith.constant 0 : i32
    return %arg0, %arg2 : i32, i32
  }
  func.func @transform_1(%arg0: i32, %arg1: i32, %arg2: i32) -> (i32, i32) {
    %c0_i32 = arith.constant 0 : i32
    return %arg2, %arg1 : i32, i32
  }
  func.func @transform_2(%arg0: i32, %arg1: i32, %arg2: i32) -> (i32, i32) {
    %c0_i32 = arith.constant 0 : i32
    %c0_i32_0 = arith.constant 0 : i32
    return %c0_i32, %arg1 : i32, i32
  }
  func.func @transform_3(%arg0: i32, %arg1: i32, %arg2: i32) -> (i32, i32) {
    %c0_i32 = arith.constant 0 : i32
    return %arg0, %arg1 : i32, i32
  }
}

module attributes {stable_mosaic.version = 11 : i64} {
  func.func @_matmul_bias_kernel(%arg0: i32, %arg1: i32, %arg2: i32, %arg3: memref<64x128xf32, #tpu.memory_space<vmem>>, %arg4: memref<128x128xf32, #tpu.memory_space<vmem>>, %arg5: memref<1x128xf32, #tpu.memory_space<vmem>>, %arg6: memref<64x128xf32, #tpu.memory_space<vmem>>, %arg7: memref<64x128xf32, #tpu.memory_space<vmem>>) attributes {dimension_semantics = [#tpu.dimension_semantics<parallel>, #tpu.dimension_semantics<parallel>, #tpu.dimension_semantics<arbitrary>], iteration_bounds = array<i64: 1, 4, 1>, scalar_prefetch = 0 : i64, scratch_operands = 1 : i64, tpu.core_type = #tpu.core_type<tc>, window_params = [{transform_indices = @transform_0, window_bounds = array<i64: 64, 128>}, {transform_indices = @transform_1, window_bounds = array<i64: 128, 128>}, {transform_indices = @transform_2, window_bounds = array<i64: 1, 128>}, {transform_indices = @transform_3, window_bounds = array<i64: 64, 128>}]} {
    %c0_i32 = arith.constant 0 : i32
    %0 = arith.cmpi eq, %arg2, %c0_i32 : i32
    %1 = arith.extui %0 : i1 to i32
    %c0_i32_0 = arith.constant 0 : i32
    %2 = arith.cmpi ne, %1, %c0_i32_0 : i32
    scf.if %2 {
      %cst_10 = arith.constant 0.000000e+00 : f32
      %12 = vector.broadcast %cst_10 : f32 to vector<64x128xf32>
      %c0_11 = arith.constant 0 : index
      %c0_12 = arith.constant 0 : index
      %13 = vector.load %arg7[%c0_11, %c0_12] : memref<64x128xf32, #tpu.memory_space<vmem>>, vector<64x128xf32>
      tpu.vector_store %arg7[%c0_11, %c0_12], %12 {strides = array<i32>} : memref<64x128xf32, #tpu.memory_space<vmem>>, vector<64x128xf32>,
    } else {
    }
    %c0 = arith.constant 0 : index
    %c0_1 = arith.constant 0 : index
    %3 = vector.load %arg7[%c0, %c0_1] : memref<64x128xf32, #tpu.memory_space<vmem>>, vector<64x128xf32>
    %c0_2 = arith.constant 0 : index
    %c0_3 = arith.constant 0 : index
    %4 = vector.load %arg3[%c0_2, %c0_3] : memref<64x128xf32, #tpu.memory_space<vmem>>, vector<64x128xf32>
    %c0_4 = arith.constant 0 : index
    %c0_5 = arith.constant 0 : index
    %5 = vector.load %arg4[%c0_4, %c0_5] : memref<128x128xf32, #tpu.memory_space<vmem>>, vector<128x128xf32>
    %cst = arith.constant dense<0.000000e+00> : vector<64x128xf32>
    %6 = tpu.matmul %4, %5, %cst {dimension_numbers = #tpu.dot_dimension_numbers<[1], [0], [0], [1], [0, 0, 1, 1], [], []>} : vector<64x128xf32>, vector<128x128xf32>, vector<64x128xf32> -> vector<64x128xf32>
    %7 = arith.addf %3, %6 : vector<64x128xf32>
    %c0_6 = arith.constant 0 : index
    %c0_7 = arith.constant 0 : index
    %8 = vector.load %arg7[%c0_6, %c0_7] : memref<64x128xf32, #tpu.memory_space<vmem>>, vector<64x128xf32>
    tpu.vector_store %arg7[%c0_6, %c0_7], %7 {strides = array<i32>} : memref<64x128xf32, #tpu.memory_space<vmem>>, vector<64x128xf32>,
    %c0_i32_8 = arith.constant 0 : i32
    %9 = arith.cmpi eq, %arg2, %c0_i32_8 : i32
    %10 = arith.extui %9 : i1 to i32
    %c0_i32_9 = arith.constant 0 : i32
    %11 = arith.cmpi ne, %10, %c0_i32_9 : i32
    scf.if %11 {
      %c0_10 = arith.constant 0 : index
      %c0_11 = arith.constant 0 : index
      %12 = vector.load %arg7[%c0_10, %c0_11] : memref<64x128xf32, #tpu.memory_space<vmem>>, vector<64x128xf32>
      %c0_12 = arith.constant 0 : index
      %c0_13 = arith.constant 0 : index
      %13 = vector.load %arg5[%c0_12, %c0_13] : memref<1x128xf32, #tpu.memory_space<vmem>>, vector<1x128xf32>
      %14 = vector.broadcast %13 : vector<1x128xf32> to vector<64x128xf32>
      %15 = arith.addf %12, %14 : vector<64x128xf32>
      %c0_14 = arith.constant 0 : index
      %c0_15 = arith.constant 0 : index
      %16 = vector.load %arg6[%c0_14, %c0_15] : memref<64x128xf32, #tpu.memory_space<vmem>>, vector<64x128xf32>
      tpu.vector_store %arg6[%c0_14, %c0_15], %15 {strides = array<i32>} : memref<64x128xf32, #tpu.memory_space<vmem>>, vector<64x128xf32>,
    } else {
    }
    return
  }
  func.func @transform_0(%arg0: i32, %arg1: i32, %arg2: i32) -> (i32, i32) {
    %c0_i32 = arith.constant 0 : i32
    return %arg0, %arg2 : i32, i32
  }
  func.func @transform_1(%arg0: i32, %arg1: i32, %arg2: i32) -> (i32, i32) {
    %c0_i32 = arith.constant 0 : i32
    return %arg2, %arg1 : i32, i32
  }
  func.func @transform_2(%arg0: i32, %arg1: i32, %arg2: i32) -> (i32, i32) {
    %c0_i32 = arith.constant 0 : i32
    %c0_i32_0 = arith.constant 0 : i32
    return %c0_i32, %arg1 : i32, i32
  }
  func.func @transform_3(%arg0: i32, %arg1: i32, %arg2: i32) -> (i32, i32) {
    %c0_i32 = arith.constant 0 : i32
    return %arg0, %arg1 : i32, i32
  }
}

module attributes {stable_mosaic.version = 11 : i64} {
  func.func @_lstm_recurrent_kernel(%arg0: i32, %arg1: memref<8x8x512xf32, #tpu.memory_space<vmem>>, %arg2: memref<128x512xf32, #tpu.memory_space<vmem>>, %arg3: memref<8x8x128xf32, #tpu.memory_space<vmem>>, %arg4: memref<8x128xf32, #tpu.memory_space<vmem>>, %arg5: memref<8x128xf32, #tpu.memory_space<vmem>>) attributes {dimension_semantics = [#tpu.dimension_semantics<arbitrary>], iteration_bounds = array<i64: 1>, scalar_prefetch = 0 : i64, scratch_operands = 2 : i64, tpu.core_type = #tpu.core_type<tc>, window_params = [{transform_indices = @transform_0, window_bounds = array<i64: 8, 8, 512>}, {pipeline_mode = #tpu.pipeline_mode<synchronous>, transform_indices = @transform_1, window_bounds = array<i64: 128, 512>}, {transform_indices = @transform_2, window_bounds = array<i64: 8, 8, 128>}]} {
    %c0_i32 = arith.constant 0 : i32
    %0 = arith.cmpi eq, %arg0, %c0_i32 : i32
    %1 = arith.extui %0 : i1 to i32
    %c0_i32_0 = arith.constant 0 : i32
    %2 = arith.cmpi ne, %1, %c0_i32_0 : i32
    scf.if %2 {
      %cst_82 = arith.constant 0.000000e+00 : f32
      %264 = vector.broadcast %cst_82 : f32 to vector<8x128xf32>
      %c0_83 = arith.constant 0 : index
      %c0_84 = arith.constant 0 : index
      %265 = vector.load %arg4[%c0_83, %c0_84] : memref<8x128xf32, #tpu.memory_space<vmem>>, vector<8x128xf32>
      tpu.vector_store %arg4[%c0_83, %c0_84], %264 {strides = array<i32>} : memref<8x128xf32, #tpu.memory_space<vmem>>, vector<8x128xf32>,
      %cst_85 = arith.constant 0.000000e+00 : f32
      %266 = vector.broadcast %cst_85 : f32 to vector<8x128xf32>
      %c0_86 = arith.constant 0 : index
      %c0_87 = arith.constant 0 : index
      %267 = vector.load %arg5[%c0_86, %c0_87] : memref<8x128xf32, #tpu.memory_space<vmem>>, vector<8x128xf32>
      tpu.vector_store %arg5[%c0_86, %c0_87], %266 {strides = array<i32>} : memref<8x128xf32, #tpu.memory_space<vmem>>, vector<8x128xf32>,
    } else {
    }
    %c0 = arith.constant 0 : index
    %c0_1 = arith.constant 0 : index
    %3 = vector.load %arg2[%c0, %c0_1] : memref<128x512xf32, #tpu.memory_space<vmem>>, vector<128x512xf32>
    %c0_2 = arith.constant 0 : index
    %c0_3 = arith.constant 0 : index
    %4 = vector.load %arg4[%c0_2, %c0_3] : memref<8x128xf32, #tpu.memory_space<vmem>>, vector<8x128xf32>
    %c0_4 = arith.constant 0 : index
    %c0_5 = arith.constant 0 : index
    %5 = vector.load %arg5[%c0_4, %c0_5] : memref<8x128xf32, #tpu.memory_space<vmem>>, vector<8x128xf32>
    %c0_6 = arith.constant 0 : index
    %c0_7 = arith.constant 0 : index
    %c0_8 = arith.constant 0 : index
    %6 = vector.load %arg1[%c0_6, %c0_7, %c0_8] : memref<8x8x512xf32, #tpu.memory_space<vmem>>, vector<1x8x512xf32>
    %7 = vector.shape_cast %6 : vector<1x8x512xf32> to vector<8x512xf32>
    %cst = arith.constant dense<0.000000e+00> : vector<8x512xf32>
    %8 = tpu.matmul %4, %3, %cst {dimension_numbers = #tpu.dot_dimension_numbers<[1], [0], [0], [1], [0, 0, 1, 1], [], []>} : vector<8x128xf32>, vector<128x512xf32>, vector<8x512xf32> -> vector<8x512xf32>
    %9 = arith.addf %7, %8 : vector<8x512xf32>
    %10 = vector.extract_strided_slice %9 {offsets = [0, 0], sizes = [8, 128], strides = [1, 1]} : vector<8x512xf32> to vector<8x128xf32>
    %11 = arith.negf %10 : vector<8x128xf32>
    %12 = math.exp %11 : vector<8x128xf32>
    %cst_9 = arith.constant 1.000000e+00 : f32
    %13 = vector.broadcast %cst_9 : f32 to vector<8x128xf32>
    %14 = arith.addf %13, %12 : vector<8x128xf32>
    %15 = arith.divf %13, %14 : vector<8x128xf32>
    %16 = vector.extract_strided_slice %9 {offsets = [0, 128], sizes = [8, 128], strides = [1, 1]} : vector<8x512xf32> to vector<8x128xf32>
    %17 = arith.negf %16 : vector<8x128xf32>
    %18 = math.exp %17 : vector<8x128xf32>
    %cst_10 = arith.constant 1.000000e+00 : f32
    %19 = vector.broadcast %cst_10 : f32 to vector<8x128xf32>
    %20 = arith.addf %19, %18 : vector<8x128xf32>
    %21 = arith.divf %19, %20 : vector<8x128xf32>
    %22 = vector.extract_strided_slice %9 {offsets = [0, 256], sizes = [8, 128], strides = [1, 1]} : vector<8x512xf32> to vector<8x128xf32>
    %23 = math.tanh %22 : vector<8x128xf32>
    %24 = vector.extract_strided_slice %9 {offsets = [0, 384], sizes = [8, 128], strides = [1, 1]} : vector<8x512xf32> to vector<8x128xf32>
    %25 = arith.negf %24 : vector<8x128xf32>
    %26 = math.exp %25 : vector<8x128xf32>
    %cst_11 = arith.constant 1.000000e+00 : f32
    %27 = vector.broadcast %cst_11 : f32 to vector<8x128xf32>
    %28 = arith.addf %27, %26 : vector<8x128xf32>
    %29 = arith.divf %27, %28 : vector<8x128xf32>
    %30 = arith.mulf %21, %5 : vector<8x128xf32>
    %31 = arith.mulf %15, %23 : vector<8x128xf32>
    %32 = arith.addf %30, %31 : vector<8x128xf32>
    %33 = math.tanh %32 : vector<8x128xf32>
    %34 = arith.mulf %29, %33 : vector<8x128xf32>
    %c0_12 = arith.constant 0 : index
    %c0_13 = arith.constant 0 : index
    %c0_14 = arith.constant 0 : index
    %35 = vector.load %arg3[%c0_12, %c0_13, %c0_14] : memref<8x8x128xf32, #tpu.memory_space<vmem>>, vector<1x8x128xf32>
    %36 = vector.shape_cast %35 : vector<1x8x128xf32> to vector<8x128xf32>
    %37 = vector.shape_cast %34 : vector<8x128xf32> to vector<1x8x128xf32>
    tpu.vector_store %arg3[%c0_12, %c0_13, %c0_14], %37 {strides = array<i32>} : memref<8x8x128xf32, #tpu.memory_space<vmem>>, vector<1x8x128xf32>,
    %c1 = arith.constant 1 : index
    %c0_15 = arith.constant 0 : index
    %c0_16 = arith.constant 0 : index
    %38 = vector.load %arg1[%c1, %c0_15, %c0_16] : memref<8x8x512xf32, #tpu.memory_space<vmem>>, vector<1x8x512xf32>
    %39 = vector.shape_cast %38 : vector<1x8x512xf32> to vector<8x512xf32>
    %cst_17 = arith.constant dense<0.000000e+00> : vector<8x512xf32>
    %40 = tpu.matmul %34, %3, %cst_17 {dimension_numbers = #tpu.dot_dimension_numbers<[1], [0], [0], [1], [0, 0, 1, 1], [], []>} : vector<8x128xf32>, vector<128x512xf32>, vector<8x512xf32> -> vector<8x512xf32>
    %41 = arith.addf %39, %40 : vector<8x512xf32>
    %42 = vector.extract_strided_slice %41 {offsets = [0, 0], sizes = [8, 128], strides = [1, 1]} : vector<8x512xf32> to vector<8x128xf32>
    %43 = arith.negf %42 : vector<8x128xf32>
    %44 = math.exp %43 : vector<8x128xf32>
    %cst_18 = arith.constant 1.000000e+00 : f32
    %45 = vector.broadcast %cst_18 : f32 to vector<8x128xf32>
    %46 = arith.addf %45, %44 : vector<8x128xf32>
    %47 = arith.divf %45, %46 : vector<8x128xf32>
    %48 = vector.extract_strided_slice %41 {offsets = [0, 128], sizes = [8, 128], strides = [1, 1]} : vector<8x512xf32> to vector<8x128xf32>
    %49 = arith.negf %48 : vector<8x128xf32>
    %50 = math.exp %49 : vector<8x128xf32>
    %cst_19 = arith.constant 1.000000e+00 : f32
    %51 = vector.broadcast %cst_19 : f32 to vector<8x128xf32>
    %52 = arith.addf %51, %50 : vector<8x128xf32>
    %53 = arith.divf %51, %52 : vector<8x128xf32>
    %54 = vector.extract_strided_slice %41 {offsets = [0, 256], sizes = [8, 128], strides = [1, 1]} : vector<8x512xf32> to vector<8x128xf32>
    %55 = math.tanh %54 : vector<8x128xf32>
    %56 = vector.extract_strided_slice %41 {offsets = [0, 384], sizes = [8, 128], strides = [1, 1]} : vector<8x512xf32> to vector<8x128xf32>
    %57 = arith.negf %56 : vector<8x128xf32>
    %58 = math.exp %57 : vector<8x128xf32>
    %cst_20 = arith.constant 1.000000e+00 : f32
    %59 = vector.broadcast %cst_20 : f32 to vector<8x128xf32>
    %60 = arith.addf %59, %58 : vector<8x128xf32>
    %61 = arith.divf %59, %60 : vector<8x128xf32>
    %62 = arith.mulf %53, %32 : vector<8x128xf32>
    %63 = arith.mulf %47, %55 : vector<8x128xf32>
    %64 = arith.addf %62, %63 : vector<8x128xf32>
    %65 = math.tanh %64 : vector<8x128xf32>
    %66 = arith.mulf %61, %65 : vector<8x128xf32>
    %c1_21 = arith.constant 1 : index
    %c0_22 = arith.constant 0 : index
    %c0_23 = arith.constant 0 : index
    %67 = vector.load %arg3[%c1_21, %c0_22, %c0_23] : memref<8x8x128xf32, #tpu.memory_space<vmem>>, vector<1x8x128xf32>
    %68 = vector.shape_cast %67 : vector<1x8x128xf32> to vector<8x128xf32>
    %69 = vector.shape_cast %66 : vector<8x128xf32> to vector<1x8x128xf32>
    tpu.vector_store %arg3[%c1_21, %c0_22, %c0_23], %69 {strides = array<i32>} : memref<8x8x128xf32, #tpu.memory_space<vmem>>, vector<1x8x128xf32>,
    %c2 = arith.constant 2 : index
    %c0_24 = arith.constant 0 : index
    %c0_25 = arith.constant 0 : index
    %70 = vector.load %arg1[%c2, %c0_24, %c0_25] : memref<8x8x512xf32, #tpu.memory_space<vmem>>, vector<1x8x512xf32>
    %71 = vector.shape_cast %70 : vector<1x8x512xf32> to vector<8x512xf32>
    %cst_26 = arith.constant dense<0.000000e+00> : vector<8x512xf32>
    %72 = tpu.matmul %66, %3, %cst_26 {dimension_numbers = #tpu.dot_dimension_numbers<[1], [0], [0], [1], [0, 0, 1, 1], [], []>} : vector<8x128xf32>, vector<128x512xf32>, vector<8x512xf32> -> vector<8x512xf32>
    %73 = arith.addf %71, %72 : vector<8x512xf32>
    %74 = vector.extract_strided_slice %73 {offsets = [0, 0], sizes = [8, 128], strides = [1, 1]} : vector<8x512xf32> to vector<8x128xf32>
    %75 = arith.negf %74 : vector<8x128xf32>
    %76 = math.exp %75 : vector<8x128xf32>
    %cst_27 = arith.constant 1.000000e+00 : f32
    %77 = vector.broadcast %cst_27 : f32 to vector<8x128xf32>
    %78 = arith.addf %77, %76 : vector<8x128xf32>
    %79 = arith.divf %77, %78 : vector<8x128xf32>
    %80 = vector.extract_strided_slice %73 {offsets = [0, 128], sizes = [8, 128], strides = [1, 1]} : vector<8x512xf32> to vector<8x128xf32>
    %81 = arith.negf %80 : vector<8x128xf32>
    %82 = math.exp %81 : vector<8x128xf32>
    %cst_28 = arith.constant 1.000000e+00 : f32
    %83 = vector.broadcast %cst_28 : f32 to vector<8x128xf32>
    %84 = arith.addf %83, %82 : vector<8x128xf32>
    %85 = arith.divf %83, %84 : vector<8x128xf32>
    %86 = vector.extract_strided_slice %73 {offsets = [0, 256], sizes = [8, 128], strides = [1, 1]} : vector<8x512xf32> to vector<8x128xf32>
    %87 = math.tanh %86 : vector<8x128xf32>
    %88 = vector.extract_strided_slice %73 {offsets = [0, 384], sizes = [8, 128], strides = [1, 1]} : vector<8x512xf32> to vector<8x128xf32>
    %89 = arith.negf %88 : vector<8x128xf32>
    %90 = math.exp %89 : vector<8x128xf32>
    %cst_29 = arith.constant 1.000000e+00 : f32
    %91 = vector.broadcast %cst_29 : f32 to vector<8x128xf32>
    %92 = arith.addf %91, %90 : vector<8x128xf32>
    %93 = arith.divf %91, %92 : vector<8x128xf32>
    %94 = arith.mulf %85, %64 : vector<8x128xf32>
    %95 = arith.mulf %79, %87 : vector<8x128xf32>
    %96 = arith.addf %94, %95 : vector<8x128xf32>
    %97 = math.tanh %96 : vector<8x128xf32>
    %98 = arith.mulf %93, %97 : vector<8x128xf32>
    %c2_30 = arith.constant 2 : index
    %c0_31 = arith.constant 0 : index
    %c0_32 = arith.constant 0 : index
    %99 = vector.load %arg3[%c2_30, %c0_31, %c0_32] : memref<8x8x128xf32, #tpu.memory_space<vmem>>, vector<1x8x128xf32>
    %100 = vector.shape_cast %99 : vector<1x8x128xf32> to vector<8x128xf32>
    %101 = vector.shape_cast %98 : vector<8x128xf32> to vector<1x8x128xf32>
    tpu.vector_store %arg3[%c2_30, %c0_31, %c0_32], %101 {strides = array<i32>} : memref<8x8x128xf32, #tpu.memory_space<vmem>>, vector<1x8x128xf32>,
    %c3 = arith.constant 3 : index
    %c0_33 = arith.constant 0 : index
    %c0_34 = arith.constant 0 : index
    %102 = vector.load %arg1[%c3, %c0_33, %c0_34] : memref<8x8x512xf32, #tpu.memory_space<vmem>>, vector<1x8x512xf32>
    %103 = vector.shape_cast %102 : vector<1x8x512xf32> to vector<8x512xf32>
    %cst_35 = arith.constant dense<0.000000e+00> : vector<8x512xf32>
    %104 = tpu.matmul %98, %3, %cst_35 {dimension_numbers = #tpu.dot_dimension_numbers<[1], [0], [0], [1], [0, 0, 1, 1], [], []>} : vector<8x128xf32>, vector<128x512xf32>, vector<8x512xf32> -> vector<8x512xf32>
    %105 = arith.addf %103, %104 : vector<8x512xf32>
    %106 = vector.extract_strided_slice %105 {offsets = [0, 0], sizes = [8, 128], strides = [1, 1]} : vector<8x512xf32> to vector<8x128xf32>
    %107 = arith.negf %106 : vector<8x128xf32>
    %108 = math.exp %107 : vector<8x128xf32>
    %cst_36 = arith.constant 1.000000e+00 : f32
    %109 = vector.broadcast %cst_36 : f32 to vector<8x128xf32>
    %110 = arith.addf %109, %108 : vector<8x128xf32>
    %111 = arith.divf %109, %110 : vector<8x128xf32>
    %112 = vector.extract_strided_slice %105 {offsets = [0, 128], sizes = [8, 128], strides = [1, 1]} : vector<8x512xf32> to vector<8x128xf32>
    %113 = arith.negf %112 : vector<8x128xf32>
    %114 = math.exp %113 : vector<8x128xf32>
    %cst_37 = arith.constant 1.000000e+00 : f32
    %115 = vector.broadcast %cst_37 : f32 to vector<8x128xf32>
    %116 = arith.addf %115, %114 : vector<8x128xf32>
    %117 = arith.divf %115, %116 : vector<8x128xf32>
    %118 = vector.extract_strided_slice %105 {offsets = [0, 256], sizes = [8, 128], strides = [1, 1]} : vector<8x512xf32> to vector<8x128xf32>
    %119 = math.tanh %118 : vector<8x128xf32>
    %120 = vector.extract_strided_slice %105 {offsets = [0, 384], sizes = [8, 128], strides = [1, 1]} : vector<8x512xf32> to vector<8x128xf32>
    %121 = arith.negf %120 : vector<8x128xf32>
    %122 = math.exp %121 : vector<8x128xf32>
    %cst_38 = arith.constant 1.000000e+00 : f32
    %123 = vector.broadcast %cst_38 : f32 to vector<8x128xf32>
    %124 = arith.addf %123, %122 : vector<8x128xf32>
    %125 = arith.divf %123, %124 : vector<8x128xf32>
    %126 = arith.mulf %117, %96 : vector<8x128xf32>
    %127 = arith.mulf %111, %119 : vector<8x128xf32>
    %128 = arith.addf %126, %127 : vector<8x128xf32>
    %129 = math.tanh %128 : vector<8x128xf32>
    %130 = arith.mulf %125, %129 : vector<8x128xf32>
    %c3_39 = arith.constant 3 : index
    %c0_40 = arith.constant 0 : index
    %c0_41 = arith.constant 0 : index
    %131 = vector.load %arg3[%c3_39, %c0_40, %c0_41] : memref<8x8x128xf32, #tpu.memory_space<vmem>>, vector<1x8x128xf32>
    %132 = vector.shape_cast %131 : vector<1x8x128xf32> to vector<8x128xf32>
    %133 = vector.shape_cast %130 : vector<8x128xf32> to vector<1x8x128xf32>
    tpu.vector_store %arg3[%c3_39, %c0_40, %c0_41], %133 {strides = array<i32>} : memref<8x8x128xf32, #tpu.memory_space<vmem>>, vector<1x8x128xf32>,
    %c4 = arith.constant 4 : index
    %c0_42 = arith.constant 0 : index
    %c0_43 = arith.constant 0 : index
    %134 = vector.load %arg1[%c4, %c0_42, %c0_43] : memref<8x8x512xf32, #tpu.memory_space<vmem>>, vector<1x8x512xf32>
    %135 = vector.shape_cast %134 : vector<1x8x512xf32> to vector<8x512xf32>
    %cst_44 = arith.constant dense<0.000000e+00> : vector<8x512xf32>
    %136 = tpu.matmul %130, %3, %cst_44 {dimension_numbers = #tpu.dot_dimension_numbers<[1], [0], [0], [1], [0, 0, 1, 1], [], []>} : vector<8x128xf32>, vector<128x512xf32>, vector<8x512xf32> -> vector<8x512xf32>
    %137 = arith.addf %135, %136 : vector<8x512xf32>
    %138 = vector.extract_strided_slice %137 {offsets = [0, 0], sizes = [8, 128], strides = [1, 1]} : vector<8x512xf32> to vector<8x128xf32>
    %139 = arith.negf %138 : vector<8x128xf32>
    %140 = math.exp %139 : vector<8x128xf32>
    %cst_45 = arith.constant 1.000000e+00 : f32
    %141 = vector.broadcast %cst_45 : f32 to vector<8x128xf32>
    %142 = arith.addf %141, %140 : vector<8x128xf32>
    %143 = arith.divf %141, %142 : vector<8x128xf32>
    %144 = vector.extract_strided_slice %137 {offsets = [0, 128], sizes = [8, 128], strides = [1, 1]} : vector<8x512xf32> to vector<8x128xf32>
    %145 = arith.negf %144 : vector<8x128xf32>
    %146 = math.exp %145 : vector<8x128xf32>
    %cst_46 = arith.constant 1.000000e+00 : f32
    %147 = vector.broadcast %cst_46 : f32 to vector<8x128xf32>
    %148 = arith.addf %147, %146 : vector<8x128xf32>
    %149 = arith.divf %147, %148 : vector<8x128xf32>
    %150 = vector.extract_strided_slice %137 {offsets = [0, 256], sizes = [8, 128], strides = [1, 1]} : vector<8x512xf32> to vector<8x128xf32>
    %151 = math.tanh %150 : vector<8x128xf32>
    %152 = vector.extract_strided_slice %137 {offsets = [0, 384], sizes = [8, 128], strides = [1, 1]} : vector<8x512xf32> to vector<8x128xf32>
    %153 = arith.negf %152 : vector<8x128xf32>
    %154 = math.exp %153 : vector<8x128xf32>
    %cst_47 = arith.constant 1.000000e+00 : f32
    %155 = vector.broadcast %cst_47 : f32 to vector<8x128xf32>
    %156 = arith.addf %155, %154 : vector<8x128xf32>
    %157 = arith.divf %155, %156 : vector<8x128xf32>
    %158 = arith.mulf %149, %128 : vector<8x128xf32>
    %159 = arith.mulf %143, %151 : vector<8x128xf32>
    %160 = arith.addf %158, %159 : vector<8x128xf32>
    %161 = math.tanh %160 : vector<8x128xf32>
    %162 = arith.mulf %157, %161 : vector<8x128xf32>
    %c4_48 = arith.constant 4 : index
    %c0_49 = arith.constant 0 : index
    %c0_50 = arith.constant 0 : index
    %163 = vector.load %arg3[%c4_48, %c0_49, %c0_50] : memref<8x8x128xf32, #tpu.memory_space<vmem>>, vector<1x8x128xf32>
    %164 = vector.shape_cast %163 : vector<1x8x128xf32> to vector<8x128xf32>
    %165 = vector.shape_cast %162 : vector<8x128xf32> to vector<1x8x128xf32>
    tpu.vector_store %arg3[%c4_48, %c0_49, %c0_50], %165 {strides = array<i32>} : memref<8x8x128xf32, #tpu.memory_space<vmem>>, vector<1x8x128xf32>,
    %c5 = arith.constant 5 : index
    %c0_51 = arith.constant 0 : index
    %c0_52 = arith.constant 0 : index
    %166 = vector.load %arg1[%c5, %c0_51, %c0_52] : memref<8x8x512xf32, #tpu.memory_space<vmem>>, vector<1x8x512xf32>
    %167 = vector.shape_cast %166 : vector<1x8x512xf32> to vector<8x512xf32>
    %cst_53 = arith.constant dense<0.000000e+00> : vector<8x512xf32>
    %168 = tpu.matmul %162, %3, %cst_53 {dimension_numbers = #tpu.dot_dimension_numbers<[1], [0], [0], [1], [0, 0, 1, 1], [], []>} : vector<8x128xf32>, vector<128x512xf32>, vector<8x512xf32> -> vector<8x512xf32>
    %169 = arith.addf %167, %168 : vector<8x512xf32>
    %170 = vector.extract_strided_slice %169 {offsets = [0, 0], sizes = [8, 128], strides = [1, 1]} : vector<8x512xf32> to vector<8x128xf32>
    %171 = arith.negf %170 : vector<8x128xf32>
    %172 = math.exp %171 : vector<8x128xf32>
    %cst_54 = arith.constant 1.000000e+00 : f32
    %173 = vector.broadcast %cst_54 : f32 to vector<8x128xf32>
    %174 = arith.addf %173, %172 : vector<8x128xf32>
    %175 = arith.divf %173, %174 : vector<8x128xf32>
    %176 = vector.extract_strided_slice %169 {offsets = [0, 128], sizes = [8, 128], strides = [1, 1]} : vector<8x512xf32> to vector<8x128xf32>
    %177 = arith.negf %176 : vector<8x128xf32>
    %178 = math.exp %177 : vector<8x128xf32>
    %cst_55 = arith.constant 1.000000e+00 : f32
    %179 = vector.broadcast %cst_55 : f32 to vector<8x128xf32>
    %180 = arith.addf %179, %178 : vector<8x128xf32>
    %181 = arith.divf %179, %180 : vector<8x128xf32>
    %182 = vector.extract_strided_slice %169 {offsets = [0, 256], sizes = [8, 128], strides = [1, 1]} : vector<8x512xf32> to vector<8x128xf32>
    %183 = math.tanh %182 : vector<8x128xf32>
    %184 = vector.extract_strided_slice %169 {offsets = [0, 384], sizes = [8, 128], strides = [1, 1]} : vector<8x512xf32> to vector<8x128xf32>
    %185 = arith.negf %184 : vector<8x128xf32>
    %186 = math.exp %185 : vector<8x128xf32>
    %cst_56 = arith.constant 1.000000e+00 : f32
    %187 = vector.broadcast %cst_56 : f32 to vector<8x128xf32>
    %188 = arith.addf %187, %186 : vector<8x128xf32>
    %189 = arith.divf %187, %188 : vector<8x128xf32>
    %190 = arith.mulf %181, %160 : vector<8x128xf32>
    %191 = arith.mulf %175, %183 : vector<8x128xf32>
    %192 = arith.addf %190, %191 : vector<8x128xf32>
    %193 = math.tanh %192 : vector<8x128xf32>
    %194 = arith.mulf %189, %193 : vector<8x128xf32>
    %c5_57 = arith.constant 5 : index
    %c0_58 = arith.constant 0 : index
    %c0_59 = arith.constant 0 : index
    %195 = vector.load %arg3[%c5_57, %c0_58, %c0_59] : memref<8x8x128xf32, #tpu.memory_space<vmem>>, vector<1x8x128xf32>
    %196 = vector.shape_cast %195 : vector<1x8x128xf32> to vector<8x128xf32>
    %197 = vector.shape_cast %194 : vector<8x128xf32> to vector<1x8x128xf32>
    tpu.vector_store %arg3[%c5_57, %c0_58, %c0_59], %197 {strides = array<i32>} : memref<8x8x128xf32, #tpu.memory_space<vmem>>, vector<1x8x128xf32>,
    %c6 = arith.constant 6 : index
    %c0_60 = arith.constant 0 : index
    %c0_61 = arith.constant 0 : index
    %198 = vector.load %arg1[%c6, %c0_60, %c0_61] : memref<8x8x512xf32, #tpu.memory_space<vmem>>, vector<1x8x512xf32>
    %199 = vector.shape_cast %198 : vector<1x8x512xf32> to vector<8x512xf32>
    %cst_62 = arith.constant dense<0.000000e+00> : vector<8x512xf32>
    %200 = tpu.matmul %194, %3, %cst_62 {dimension_numbers = #tpu.dot_dimension_numbers<[1], [0], [0], [1], [0, 0, 1, 1], [], []>} : vector<8x128xf32>, vector<128x512xf32>, vector<8x512xf32> -> vector<8x512xf32>
    %201 = arith.addf %199, %200 : vector<8x512xf32>
    %202 = vector.extract_strided_slice %201 {offsets = [0, 0], sizes = [8, 128], strides = [1, 1]} : vector<8x512xf32> to vector<8x128xf32>
    %203 = arith.negf %202 : vector<8x128xf32>
    %204 = math.exp %203 : vector<8x128xf32>
    %cst_63 = arith.constant 1.000000e+00 : f32
    %205 = vector.broadcast %cst_63 : f32 to vector<8x128xf32>
    %206 = arith.addf %205, %204 : vector<8x128xf32>
    %207 = arith.divf %205, %206 : vector<8x128xf32>
    %208 = vector.extract_strided_slice %201 {offsets = [0, 128], sizes = [8, 128], strides = [1, 1]} : vector<8x512xf32> to vector<8x128xf32>
    %209 = arith.negf %208 : vector<8x128xf32>
    %210 = math.exp %209 : vector<8x128xf32>
    %cst_64 = arith.constant 1.000000e+00 : f32
    %211 = vector.broadcast %cst_64 : f32 to vector<8x128xf32>
    %212 = arith.addf %211, %210 : vector<8x128xf32>
    %213 = arith.divf %211, %212 : vector<8x128xf32>
    %214 = vector.extract_strided_slice %201 {offsets = [0, 256], sizes = [8, 128], strides = [1, 1]} : vector<8x512xf32> to vector<8x128xf32>
    %215 = math.tanh %214 : vector<8x128xf32>
    %216 = vector.extract_strided_slice %201 {offsets = [0, 384], sizes = [8, 128], strides = [1, 1]} : vector<8x512xf32> to vector<8x128xf32>
    %217 = arith.negf %216 : vector<8x128xf32>
    %218 = math.exp %217 : vector<8x128xf32>
    %cst_65 = arith.constant 1.000000e+00 : f32
    %219 = vector.broadcast %cst_65 : f32 to vector<8x128xf32>
    %220 = arith.addf %219, %218 : vector<8x128xf32>
    %221 = arith.divf %219, %220 : vector<8x128xf32>
    %222 = arith.mulf %213, %192 : vector<8x128xf32>
    %223 = arith.mulf %207, %215 : vector<8x128xf32>
    %224 = arith.addf %222, %223 : vector<8x128xf32>
    %225 = math.tanh %224 : vector<8x128xf32>
    %226 = arith.mulf %221, %225 : vector<8x128xf32>
    %c6_66 = arith.constant 6 : index
    %c0_67 = arith.constant 0 : index
    %c0_68 = arith.constant 0 : index
    %227 = vector.load %arg3[%c6_66, %c0_67, %c0_68] : memref<8x8x128xf32, #tpu.memory_space<vmem>>, vector<1x8x128xf32>
    %228 = vector.shape_cast %227 : vector<1x8x128xf32> to vector<8x128xf32>
    %229 = vector.shape_cast %226 : vector<8x128xf32> to vector<1x8x128xf32>
    tpu.vector_store %arg3[%c6_66, %c0_67, %c0_68], %229 {strides = array<i32>} : memref<8x8x128xf32, #tpu.memory_space<vmem>>, vector<1x8x128xf32>,
    %c7 = arith.constant 7 : index
    %c0_69 = arith.constant 0 : index
    %c0_70 = arith.constant 0 : index
    %230 = vector.load %arg1[%c7, %c0_69, %c0_70] : memref<8x8x512xf32, #tpu.memory_space<vmem>>, vector<1x8x512xf32>
    %231 = vector.shape_cast %230 : vector<1x8x512xf32> to vector<8x512xf32>
    %cst_71 = arith.constant dense<0.000000e+00> : vector<8x512xf32>
    %232 = tpu.matmul %226, %3, %cst_71 {dimension_numbers = #tpu.dot_dimension_numbers<[1], [0], [0], [1], [0, 0, 1, 1], [], []>} : vector<8x128xf32>, vector<128x512xf32>, vector<8x512xf32> -> vector<8x512xf32>
    %233 = arith.addf %231, %232 : vector<8x512xf32>
    %234 = vector.extract_strided_slice %233 {offsets = [0, 0], sizes = [8, 128], strides = [1, 1]} : vector<8x512xf32> to vector<8x128xf32>
    %235 = arith.negf %234 : vector<8x128xf32>
    %236 = math.exp %235 : vector<8x128xf32>
    %cst_72 = arith.constant 1.000000e+00 : f32
    %237 = vector.broadcast %cst_72 : f32 to vector<8x128xf32>
    %238 = arith.addf %237, %236 : vector<8x128xf32>
    %239 = arith.divf %237, %238 : vector<8x128xf32>
    %240 = vector.extract_strided_slice %233 {offsets = [0, 128], sizes = [8, 128], strides = [1, 1]} : vector<8x512xf32> to vector<8x128xf32>
    %241 = arith.negf %240 : vector<8x128xf32>
    %242 = math.exp %241 : vector<8x128xf32>
    %cst_73 = arith.constant 1.000000e+00 : f32
    %243 = vector.broadcast %cst_73 : f32 to vector<8x128xf32>
    %244 = arith.addf %243, %242 : vector<8x128xf32>
    %245 = arith.divf %243, %244 : vector<8x128xf32>
    %246 = vector.extract_strided_slice %233 {offsets = [0, 256], sizes = [8, 128], strides = [1, 1]} : vector<8x512xf32> to vector<8x128xf32>
    %247 = math.tanh %246 : vector<8x128xf32>
    %248 = vector.extract_strided_slice %233 {offsets = [0, 384], sizes = [8, 128], strides = [1, 1]} : vector<8x512xf32> to vector<8x128xf32>
    %249 = arith.negf %248 : vector<8x128xf32>
    %250 = math.exp %249 : vector<8x128xf32>
    %cst_74 = arith.constant 1.000000e+00 : f32
    %251 = vector.broadcast %cst_74 : f32 to vector<8x128xf32>
    %252 = arith.addf %251, %250 : vector<8x128xf32>
    %253 = arith.divf %251, %252 : vector<8x128xf32>
    %254 = arith.mulf %245, %224 : vector<8x128xf32>
    %255 = arith.mulf %239, %247 : vector<8x128xf32>
    %256 = arith.addf %254, %255 : vector<8x128xf32>
    %257 = math.tanh %256 : vector<8x128xf32>
    %258 = arith.mulf %253, %257 : vector<8x128xf32>
    %c7_75 = arith.constant 7 : index
    %c0_76 = arith.constant 0 : index
    %c0_77 = arith.constant 0 : index
    %259 = vector.load %arg3[%c7_75, %c0_76, %c0_77] : memref<8x8x128xf32, #tpu.memory_space<vmem>>, vector<1x8x128xf32>
    %260 = vector.shape_cast %259 : vector<1x8x128xf32> to vector<8x128xf32>
    %261 = vector.shape_cast %258 : vector<8x128xf32> to vector<1x8x128xf32>
    tpu.vector_store %arg3[%c7_75, %c0_76, %c0_77], %261 {strides = array<i32>} : memref<8x8x128xf32, #tpu.memory_space<vmem>>, vector<1x8x128xf32>,
    %c0_78 = arith.constant 0 : index
    %c0_79 = arith.constant 0 : index
    %262 = vector.load %arg4[%c0_78, %c0_79] : memref<8x128xf32, #tpu.memory_space<vmem>>, vector<8x128xf32>
    tpu.vector_store %arg4[%c0_78, %c0_79], %258 {strides = array<i32>} : memref<8x128xf32, #tpu.memory_space<vmem>>, vector<8x128xf32>,
    %c0_80 = arith.constant 0 : index
    %c0_81 = arith.constant 0 : index
    %263 = vector.load %arg5[%c0_80, %c0_81] : memref<8x128xf32, #tpu.memory_space<vmem>>, vector<8x128xf32>
    tpu.vector_store %arg5[%c0_80, %c0_81], %256 {strides = array<i32>} : memref<8x128xf32, #tpu.memory_space<vmem>>, vector<8x128xf32>,
    return
  }
  func.func @transform_0(%arg0: i32) -> (i32, i32, i32) {
    %c0_i32 = arith.constant 0 : i32
    %c0_i32_0 = arith.constant 0 : i32
    %c0_i32_1 = arith.constant 0 : i32
    return %arg0, %c0_i32, %c0_i32_0 : i32, i32, i32
  }
  func.func @transform_1(%arg0: i32) -> (i32, i32) {
    %c0_i32 = arith.constant 0 : i32
    %c0_i32_0 = arith.constant 0 : i32
    %c0_i32_1 = arith.constant 0 : i32
    return %c0_i32, %c0_i32_0 : i32, i32
  }
  func.func @transform_2(%arg0: i32) -> (i32, i32, i32) {
    %c0_i32 = arith.constant 0 : i32
    %c0_i32_0 = arith.constant 0 : i32
    %c0_i32_1 = arith.constant 0 : i32
    return %arg0, %c0_i32, %c0_i32_0 : i32, i32, i32
  }
}

module attributes {stable_mosaic.version = 11 : i64} {
  func.func @_matmul_bias_kernel(%arg0: i32, %arg1: i32, %arg2: i32, %arg3: memref<64x288xf32, #tpu.memory_space<vmem>>, %arg4: memref<288x128xf32, #tpu.memory_space<vmem>>, %arg5: memref<1x128xf32, #tpu.memory_space<vmem>>, %arg6: memref<64x128xf32, #tpu.memory_space<vmem>>, %arg7: memref<64x128xf32, #tpu.memory_space<vmem>>) attributes {dimension_semantics = [#tpu.dimension_semantics<parallel>, #tpu.dimension_semantics<parallel>, #tpu.dimension_semantics<arbitrary>], iteration_bounds = array<i64: 1, 4, 1>, scalar_prefetch = 0 : i64, scratch_operands = 1 : i64, tpu.core_type = #tpu.core_type<tc>, window_params = [{transform_indices = @transform_0, window_bounds = array<i64: 64, 288>}, {transform_indices = @transform_1, window_bounds = array<i64: 288, 128>}, {transform_indices = @transform_2, window_bounds = array<i64: 1, 128>}, {transform_indices = @transform_3, window_bounds = array<i64: 64, 128>}]} {
    %c0_i32 = arith.constant 0 : i32
    %0 = arith.cmpi eq, %arg2, %c0_i32 : i32
    %1 = arith.extui %0 : i1 to i32
    %c0_i32_0 = arith.constant 0 : i32
    %2 = arith.cmpi ne, %1, %c0_i32_0 : i32
    scf.if %2 {
      %cst_10 = arith.constant 0.000000e+00 : f32
      %12 = vector.broadcast %cst_10 : f32 to vector<64x128xf32>
      %c0_11 = arith.constant 0 : index
      %c0_12 = arith.constant 0 : index
      %13 = vector.load %arg7[%c0_11, %c0_12] : memref<64x128xf32, #tpu.memory_space<vmem>>, vector<64x128xf32>
      tpu.vector_store %arg7[%c0_11, %c0_12], %12 {strides = array<i32>} : memref<64x128xf32, #tpu.memory_space<vmem>>, vector<64x128xf32>,
    } else {
    }
    %c0 = arith.constant 0 : index
    %c0_1 = arith.constant 0 : index
    %3 = vector.load %arg7[%c0, %c0_1] : memref<64x128xf32, #tpu.memory_space<vmem>>, vector<64x128xf32>
    %c0_2 = arith.constant 0 : index
    %c0_3 = arith.constant 0 : index
    %4 = vector.load %arg3[%c0_2, %c0_3] : memref<64x288xf32, #tpu.memory_space<vmem>>, vector<64x288xf32>
    %c0_4 = arith.constant 0 : index
    %c0_5 = arith.constant 0 : index
    %5 = vector.load %arg4[%c0_4, %c0_5] : memref<288x128xf32, #tpu.memory_space<vmem>>, vector<288x128xf32>
    %cst = arith.constant dense<0.000000e+00> : vector<64x128xf32>
    %6 = tpu.matmul %4, %5, %cst {dimension_numbers = #tpu.dot_dimension_numbers<[1], [0], [0], [1], [0, 0, 1, 1], [], []>} : vector<64x288xf32>, vector<288x128xf32>, vector<64x128xf32> -> vector<64x128xf32>
    %7 = arith.addf %3, %6 : vector<64x128xf32>
    %c0_6 = arith.constant 0 : index
    %c0_7 = arith.constant 0 : index
    %8 = vector.load %arg7[%c0_6, %c0_7] : memref<64x128xf32, #tpu.memory_space<vmem>>, vector<64x128xf32>
    tpu.vector_store %arg7[%c0_6, %c0_7], %7 {strides = array<i32>} : memref<64x128xf32, #tpu.memory_space<vmem>>, vector<64x128xf32>,
    %c0_i32_8 = arith.constant 0 : i32
    %9 = arith.cmpi eq, %arg2, %c0_i32_8 : i32
    %10 = arith.extui %9 : i1 to i32
    %c0_i32_9 = arith.constant 0 : i32
    %11 = arith.cmpi ne, %10, %c0_i32_9 : i32
    scf.if %11 {
      %c0_10 = arith.constant 0 : index
      %c0_11 = arith.constant 0 : index
      %12 = vector.load %arg7[%c0_10, %c0_11] : memref<64x128xf32, #tpu.memory_space<vmem>>, vector<64x128xf32>
      %c0_12 = arith.constant 0 : index
      %c0_13 = arith.constant 0 : index
      %13 = vector.load %arg5[%c0_12, %c0_13] : memref<1x128xf32, #tpu.memory_space<vmem>>, vector<1x128xf32>
      %14 = vector.broadcast %13 : vector<1x128xf32> to vector<64x128xf32>
      %15 = arith.addf %12, %14 : vector<64x128xf32>
      %c0_14 = arith.constant 0 : index
      %c0_15 = arith.constant 0 : index
      %16 = vector.load %arg6[%c0_14, %c0_15] : memref<64x128xf32, #tpu.memory_space<vmem>>, vector<64x128xf32>
      tpu.vector_store %arg6[%c0_14, %c0_15], %15 {strides = array<i32>} : memref<64x128xf32, #tpu.memory_space<vmem>>, vector<64x128xf32>,
    } else {
    }
    return
  }
  func.func @transform_0(%arg0: i32, %arg1: i32, %arg2: i32) -> (i32, i32) {
    %c0_i32 = arith.constant 0 : i32
    return %arg0, %arg2 : i32, i32
  }
  func.func @transform_1(%arg0: i32, %arg1: i32, %arg2: i32) -> (i32, i32) {
    %c0_i32 = arith.constant 0 : i32
    return %arg2, %arg1 : i32, i32
  }
  func.func @transform_2(%arg0: i32, %arg1: i32, %arg2: i32) -> (i32, i32) {
    %c0_i32 = arith.constant 0 : i32
    %c0_i32_0 = arith.constant 0 : i32
    return %c0_i32, %arg1 : i32, i32
  }
  func.func @transform_3(%arg0: i32, %arg1: i32, %arg2: i32) -> (i32, i32) {
    %c0_i32 = arith.constant 0 : i32
    return %arg0, %arg1 : i32, i32
  }
}

module attributes {stable_mosaic.version = 11 : i64} {
  func.func @_matmul_bias_kernel(%arg0: i32, %arg1: i32, %arg2: i32, %arg3: memref<64x128xf32, #tpu.memory_space<vmem>>, %arg4: memref<128x32xf32, #tpu.memory_space<vmem>>, %arg5: memref<1x32xf32, #tpu.memory_space<vmem>>, %arg6: memref<64x32xf32, #tpu.memory_space<vmem>>, %arg7: memref<64x32xf32, #tpu.memory_space<vmem>>) attributes {dimension_semantics = [#tpu.dimension_semantics<parallel>, #tpu.dimension_semantics<parallel>, #tpu.dimension_semantics<arbitrary>], iteration_bounds = array<i64: 1, 1, 1>, scalar_prefetch = 0 : i64, scratch_operands = 1 : i64, tpu.core_type = #tpu.core_type<tc>, window_params = [{transform_indices = @transform_0, window_bounds = array<i64: 64, 128>}, {transform_indices = @transform_1, window_bounds = array<i64: 128, 32>}, {transform_indices = @transform_2, window_bounds = array<i64: 1, 32>}, {transform_indices = @transform_3, window_bounds = array<i64: 64, 32>}]} {
    %c0_i32 = arith.constant 0 : i32
    %0 = arith.cmpi eq, %arg2, %c0_i32 : i32
    %1 = arith.extui %0 : i1 to i32
    %c0_i32_0 = arith.constant 0 : i32
    %2 = arith.cmpi ne, %1, %c0_i32_0 : i32
    scf.if %2 {
      %cst_10 = arith.constant 0.000000e+00 : f32
      %12 = vector.broadcast %cst_10 : f32 to vector<64x32xf32>
      %c0_11 = arith.constant 0 : index
      %c0_12 = arith.constant 0 : index
      %13 = vector.load %arg7[%c0_11, %c0_12] : memref<64x32xf32, #tpu.memory_space<vmem>>, vector<64x32xf32>
      tpu.vector_store %arg7[%c0_11, %c0_12], %12 {strides = array<i32>} : memref<64x32xf32, #tpu.memory_space<vmem>>, vector<64x32xf32>,
    } else {
    }
    %c0 = arith.constant 0 : index
    %c0_1 = arith.constant 0 : index
    %3 = vector.load %arg7[%c0, %c0_1] : memref<64x32xf32, #tpu.memory_space<vmem>>, vector<64x32xf32>
    %c0_2 = arith.constant 0 : index
    %c0_3 = arith.constant 0 : index
    %4 = vector.load %arg3[%c0_2, %c0_3] : memref<64x128xf32, #tpu.memory_space<vmem>>, vector<64x128xf32>
    %c0_4 = arith.constant 0 : index
    %c0_5 = arith.constant 0 : index
    %5 = vector.load %arg4[%c0_4, %c0_5] : memref<128x32xf32, #tpu.memory_space<vmem>>, vector<128x32xf32>
    %cst = arith.constant dense<0.000000e+00> : vector<64x32xf32>
    %6 = tpu.matmul %4, %5, %cst {dimension_numbers = #tpu.dot_dimension_numbers<[1], [0], [0], [1], [0, 0, 1, 1], [], []>} : vector<64x128xf32>, vector<128x32xf32>, vector<64x32xf32> -> vector<64x32xf32>
    %7 = arith.addf %3, %6 : vector<64x32xf32>
    %c0_6 = arith.constant 0 : index
    %c0_7 = arith.constant 0 : index
    %8 = vector.load %arg7[%c0_6, %c0_7] : memref<64x32xf32, #tpu.memory_space<vmem>>, vector<64x32xf32>
    tpu.vector_store %arg7[%c0_6, %c0_7], %7 {strides = array<i32>} : memref<64x32xf32, #tpu.memory_space<vmem>>, vector<64x32xf32>,
    %c0_i32_8 = arith.constant 0 : i32
    %9 = arith.cmpi eq, %arg2, %c0_i32_8 : i32
    %10 = arith.extui %9 : i1 to i32
    %c0_i32_9 = arith.constant 0 : i32
    %11 = arith.cmpi ne, %10, %c0_i32_9 : i32
    scf.if %11 {
      %c0_10 = arith.constant 0 : index
      %c0_11 = arith.constant 0 : index
      %12 = vector.load %arg7[%c0_10, %c0_11] : memref<64x32xf32, #tpu.memory_space<vmem>>, vector<64x32xf32>
      %c0_12 = arith.constant 0 : index
      %c0_13 = arith.constant 0 : index
      %13 = vector.load %arg5[%c0_12, %c0_13] : memref<1x32xf32, #tpu.memory_space<vmem>>, vector<1x32xf32>
      %14 = vector.broadcast %13 : vector<1x32xf32> to vector<64x32xf32>
      %15 = arith.addf %12, %14 : vector<64x32xf32>
      %c0_14 = arith.constant 0 : index
      %c0_15 = arith.constant 0 : index
      %16 = vector.load %arg6[%c0_14, %c0_15] : memref<64x32xf32, #tpu.memory_space<vmem>>, vector<64x32xf32>
      tpu.vector_store %arg6[%c0_14, %c0_15], %15 {strides = array<i32>} : memref<64x32xf32, #tpu.memory_space<vmem>>, vector<64x32xf32>,
    } else {
    }
    return
  }
  func.func @transform_0(%arg0: i32, %arg1: i32, %arg2: i32) -> (i32, i32) {
    %c0_i32 = arith.constant 0 : i32
    return %arg0, %arg2 : i32, i32
  }
  func.func @transform_1(%arg0: i32, %arg1: i32, %arg2: i32) -> (i32, i32) {
    %c0_i32 = arith.constant 0 : i32
    return %arg2, %arg1 : i32, i32
  }
  func.func @transform_2(%arg0: i32, %arg1: i32, %arg2: i32) -> (i32, i32) {
    %c0_i32 = arith.constant 0 : i32
    %c0_i32_0 = arith.constant 0 : i32
    return %c0_i32, %arg1 : i32, i32
  }
  func.func @transform_3(%arg0: i32, %arg1: i32, %arg2: i32) -> (i32, i32) {
    %c0_i32 = arith.constant 0 : i32
    return %arg0, %arg1 : i32, i32
  }
}

</mosaic_0001>

<bundles_post_ra>
// kernel: seq2seq_lstm_forward.11
= control target key start
LH: loop header
LB: loop body
LE: loop exit
PB: predicated region body
PF: predicated region fallthrough
CT: control target
= control target key end

     0   :  { %s935_s12 = smov 0   ;;  %s937_s13 = smov 0   ;;  %s1094_s0 = inlined_call_operand.vmem [shape: f32[64,128], index: 0, kind: input, shape index: {}]   ;;  %s1095_s1 = inlined_call_operand.vmem [shape: f32[128,512], index: 1, kind: input, shape index: {}]   ;;  %s1096_s2 = inlined_call_operand.vmem [shape: f32[1,512], index: 2, kind: input, shape index: {}]   ;;  %s1097_s3 = inlined_call_operand.vmem [shape: f32[64,512], index: 3, kind: output, shape index: {}]  }
   0x1   :  { %s939_s14 = smov 0   ;;  %s941_s15 = smov 0  }
   0x2   :  { %s943_s16 = smov 0  }
   0x3 LB: > { %s28_s17 = sadd.s32 1, %s909_s15  ;;  %s704_s18 = sadd.s32 4294967295, %s913_s16   ;;  %s913_s16 = sphi %s943_s16, %s13_s16   ;;  %s909_s15 = sphi %s941_s15, %s1102_s15   ;;  %s905_s14 = sphi %s939_s14, %s1101_s14   ;;  %s901_s13 = sphi %s937_s13, %s1100_s13   ;;  %s897_s12 = sphi %s935_s12, %s1099_s12  }
   0x4   : > { %p30_p0 = scmp.ge.s32.totalorder %s28_s17, 4  ;;  %p76_p1 = scmp.ne.s32.totalorder %s901_s13, %s897_s12 }
   0x5   : > { %p77_p2 = scmp.eq.s32.totalorder %s913_s16, 0  ;;  %p134_p4 = scmp.eq.s32.totalorder %s704_s18, 3 }
   0x6   : > { %s1104_s17 = smov (%p30_p0, %s28_s17), 0  ;;  %s69_s20 = sadd.s32 1, %s901_s13 }
   0x7   : > { %p78_p3 = por %p77_p2, %p76_p1  ;;  %s65_s19 = ssub.s32 %s909_s15, %s1104_s17 }
   0x8   : > { %p67_p5 = scmp.eq.s32.totalorder %s65_s19, 0  ;;  %p970_p6 = por %p134_p4, %p76_p1 }
   0x9   : > { %p708_p7 = scmp.ge.s32.totalorder %s913_s16, 4 }
   0xa   : > { %s975_s22 = scalar_select %p67_p5, %s901_s13, %s69_s20  }
   0xb   : > { %168 = sbr.rel (%p708_p7) target bundleno = 38 (0x26), region = 20 }
  0x12   : > { %171 = sbr.rel (!%p78_p3) target bundleno = 38 (0x26), region = 24  ;;  %s173_s23 = sand.u32 (%p78_p3), 1, %s901_s13  }
  0x13   : > { %s710_s24 = sshll.u32 (%p78_p3), %s909_s15, 3  ;;  %s709_s25 = sshll.u32 (%p78_p3), %s173_s23, 7 }
  0x14   : > { %s983_s28 = scalar_lea.vmem (%p78_p3), %s1095_s1, %s710_s24  ;;  %s175_s29 = scalar_lea.vmem (%p78_p3), [#allocation3], %s709_s25 }
  0x15   : > { %v238_v0 = vld [vmem:[%s983_s28] sm:$0xff] (%p78_p3) }
  0x16   : > { %v240_v1 = vld [vmem:[%s983_s28 + $0x20] sm:$0xff] (%p78_p3)  ;;  %239 = vst [vmem:[%s175_s29] sm:$0xff] (%p78_p3), %v238_v0 }
  0x17   : > { %v242_v2 = vld [vmem:[%s983_s28 + $0x40] sm:$0xff] (%p78_p3)  ;;  %241 = vst [vmem:[%s175_s29 + $0x8] sm:$0xff] (%p78_p3), %v240_v1 }
  0x18   : > { %243 = vst [vmem:[%s175_s29 + $0x10] sm:$0xff] (%p78_p3), %v242_v2  ;;  %v244_v3 = vld [vmem:[%s983_s28 + $0x60] sm:$0xff] (%p78_p3) }
  0x19   : > { %v246_v4 = vld [vmem:[%s983_s28 + $0x80] sm:$0xff]  ;;  %245 = vst [vmem:[%s175_s29 + $0x18] sm:$0xff] %v244_v3 }
  0x1a   : > { %v248_v5 = vld [vmem:[%s983_s28 + $0xa0] sm:$0xff]  ;;  %247 = vst [vmem:[%s175_s29 + $0x20] sm:$0xff] %v246_v4 }
  0x1b   : > { %249 = vst [vmem:[%s175_s29 + $0x28] sm:$0xff] %v248_v5  ;;  %v250_v6 = vld [vmem:[%s983_s28 + $0xc0] sm:$0xff] }
  0x1c   : > { %v252_v7 = vld [vmem:[%s983_s28 + $0xe0] sm:$0xff]  ;;  %251 = vst [vmem:[%s175_s29 + $0x30] sm:$0xff] %v250_v6 }
  0x1d   : > { %v254_v8 = vld [vmem:[%s983_s28 + $0x100] sm:$0xff]  ;;  %253 = vst [vmem:[%s175_s29 + $0x38] sm:$0xff] %v252_v7 }
  0x1e   : > { %255 = vst [vmem:[%s175_s29 + $0x40] sm:$0xff] %v254_v8  ;;  %v256_v9 = vld [vmem:[%s983_s28 + $0x120] sm:$0xff] }
  0x1f   : > { %v258_v10 = vld [vmem:[%s983_s28 + $0x140] sm:$0xff]  ;;  %257 = vst [vmem:[%s175_s29 + $0x48] sm:$0xff] %v256_v9 }
  0x20   : > { %v260_v11 = vld [vmem:[%s983_s28 + $0x160] sm:$0xff]  ;;  %259 = vst [vmem:[%s175_s29 + $0x50] sm:$0xff] %v258_v10 }
  0x21   : > { %261 = vst [vmem:[%s175_s29 + $0x58] sm:$0xff] %v260_v11  ;;  %v262_v12 = vld [vmem:[%s983_s28 + $0x180] sm:$0xff] }
  0x22   : > { %v264_v13 = vld [vmem:[%s983_s28 + $0x1a0] sm:$0xff]  ;;  %263 = vst [vmem:[%s175_s29 + $0x60] sm:$0xff] %v262_v12 }
  0x23   : > { %v266_v14 = vld [vmem:[%s983_s28 + $0x1c0] sm:$0xff]  ;;  %265 = vst [vmem:[%s175_s29 + $0x68] sm:$0xff] %v264_v13 }
  0x24   : > { %267 = vst [vmem:[%s175_s29 + $0x70] sm:$0xff] %v266_v14  ;;  %v268_v15 = vld [vmem:[%s983_s28 + $0x1e0] sm:$0xff] }
  0x25   : > { %269 = vst [vmem:[%s175_s29 + $0x78] sm:$0xff] %v268_v15 }
  0x26 PF: > { %p711_p8 = scmp.ge.s32.totalorder %s913_s16, 1  ;;  %p280_p9 = scmp.lt.s32.totalorder %s913_s16, 5 }
  0x28   : > { %p281_p10 = pnand %p711_p8, %p280_p9 }
  0x29   : > { %s287_s30 = sand.u32 (!%p281_p10), 1, %s897_s12   ;;  %v354_v16 = vld [vmem:[%s1094_s0] sm:$0xff] (!%p281_p10)  ;;  %v355_v42 = vld [vmem:[%s1094_s0 + $0x8] sm:$0xff] (!%p281_p10)  ;;  %v356_v44 = vld [vmem:[%s1094_s0 + $0x10] sm:$0xff] (!%p281_p10)  ;;  %p330_p11 = scmp.lt.s32.totalorder (!%p281_p10), %s905_s14, 3 }
  0x2a   : > { %284 = sbr.rel (%p281_p10) target bundleno = 308 (0x134), region = 66  ;;  %v358_v17 = vld [vmem:[%s1094_s0 + $0x20] sm:$0xff] (!%p281_p10)  ;;  %s712_s8 = sshll.u32 (!%p281_p10), %s287_s30, 7  ;;  %775 = vmatprep.mubr.f32.mxu0 (!%p281_p10), %v354_v16  ;;  %v359_v43 = vld [vmem:[%s1094_s0 + $0x28] sm:$0xff] (!%p281_p10)  ;;  %v360_v45 = vld [vmem:[%s1094_s0 + $0x30] sm:$0xff] (!%p281_p10) }
  0x2b   : > { %781 = vmatprep.mubr.f32.mxu1 (!%p281_p10), %v358_v17  ;;  %s1012_s9 = scalar_lea.vmem (!%p281_p10), [#allocation3], %s712_s8  ;;  %v357_v46 = vld [vmem:[%s1094_s0 + $0x18] sm:$0xff] (!%p281_p10)  ;;  %s713_s8 = sshll.u32 (!%p281_p10), %s287_s30, 6 }
  0x2c   : > { %v362_v18 = vld [vmem:[%s1012_s9] sm:$0xff] (!%p281_p10)  ;;  %v363_v19 = vld [vmem:[%s1012_s9 + $0x8] sm:$0xff] (!%p281_p10)  ;;  %v364_v20 = vld [vmem:[%s1012_s9 + $0x10] sm:$0xff] (!%p281_p10) }
  0x2d   : > { %v787_v21 = vpack.c.bf16 (!%p281_p10), %v363_v19, %v362_v18  ;;  %v365_v22 = vld [vmem:[%s1012_s9 + $0x18] sm:$0xff] (!%p281_p10)  ;;  %v366_v24 = vld [vmem:[%s1012_s9 + $0x20] sm:$0xff] (!%p281_p10)  ;;  %v367_v25 = vld [vmem:[%s1012_s9 + $0x28] sm:$0xff] (!%p281_p10) }
  0x2e   : > { %v791_v23 = vpack.c.bf16 (!%p281_p10), %v365_v22, %v364_v20  ;;  %v795_v26 = vpack.c.bf16 (!%p281_p10), %v367_v25, %v366_v24  ;;  %v368_v27 = vld [vmem:[%s1012_s9 + $0x30] sm:$0xff] (!%p281_p10)  ;;  %v369_v28 = vld [vmem:[%s1012_s9 + $0x38] sm:$0xff] (!%p281_p10)  ;;  %v370_v30 = vld [vmem:[%s1012_s9 + $0x40] sm:$0xff] (!%p281_p10) }
  0x2f   : > { %788 = vmatprep.subr.bf16.mxu0 (!%p281_p10), %v787_v21  ;;  %819 = vmatprep.subr.bf16.mxu1 (!%p281_p10), %v787_v21  ;;  %v799_v29 = vpack.c.bf16 (!%p281_p10), %v369_v28, %v368_v27  ;;  %v371_v31 = vld [vmem:[%s1012_s9 + $0x48] sm:$0xff] (!%p281_p10)  ;;  %v372_v33 = vld [vmem:[%s1012_s9 + $0x50] sm:$0xff] (!%p281_p10)  ;;  %v373_v34 = vld [vmem:[%s1012_s9 + $0x58] sm:$0xff] (!%p281_p10) }
  0x30   : > { %790 = vmatpush3.bf16.msra.mxu0 (!%p281_p10), %v787_v21  ;;  %827 = vmatpush3.bf16.msra.mxu1 (!%p281_p10), %v787_v21  ;;  %v803_v32 = vpack.c.bf16 (!%p281_p10), %v371_v31, %v370_v30  ;;  %v807_v35 = vpack.c.bf16 (!%p281_p10), %v373_v34, %v372_v33  ;;  %v374_v36 = vld [vmem:[%s1012_s9 + $0x60] sm:$0xff] (!%p281_p10)  ;;  %v375_v37 = vld [vmem:[%s1012_s9 + $0x68] sm:$0xff] (!%p281_p10)  ;;  %v376_v39 = vld [vmem:[%s1012_s9 + $0x70] sm:$0xff] (!%p281_p10) }
  0x31   : > { %792 = vmatprep.subr.bf16.mxu0 %v791_v23  ;;  %820 = vmatprep.subr.bf16.mxu1 %v791_v23  ;;  %v811_v38 = vpack.c.bf16 %v375_v37, %v374_v36  ;;  %v377_v40 = vld [vmem:[%s1012_s9 + $0x78] sm:$0xff]  ;;  %s331_s4 = scalar_select %p330_p11, %s905_s14, 3 }
  0x32   : > { %v815_v41 = vpack.c.bf16 %v377_v40, %v376_v39  ;;  %v361_v47 = vld [vmem:[%s1094_s0 + $0x38] sm:$0xff]  ;;  %s1055_s9 = scalar_lea.vmem [#allocation4], %s713_s8  ;;  %s716_s12 = sshll.u32 (%p970_p6), %s905_s14, 3 }
  0x33   : > { %s332_s7 = scalar_lea.vmem %s1096_s2, %s331_s4  ;;  %s544_s11 = scalar_lea.vmem (%p970_p6), %s1097_s3, %s716_s12 }
  0x34   : > { %794 = vmatpush3.bf16.msra.mxu0 %v791_v23  ;;  %828 = vmatpush3.bf16.msra.mxu1 %v791_v23  ;;  %v714_v48 = vld [vmem:[%s332_s7] ss:$0 sm:$0xff] }
  0x35   : > { %796 = vmatprep.subr.bf16.mxu0 %v795_v26  ;;  %821 = vmatprep.subr.bf16.mxu1 %v795_v26 }
  0x38   : > { %798 = vmatpush3.bf16.msra.mxu0 %v795_v26  ;;  %829 = vmatpush3.bf16.msra.mxu1 %v795_v26 }
  0x39   : > { %800 = vmatprep.subr.bf16.mxu0 %v799_v29  ;;  %822 = vmatprep.subr.bf16.mxu1 %v799_v29 }
  0x3c   : > { %802 = vmatpush3.bf16.msra.mxu0 %v799_v29  ;;  %830 = vmatpush3.bf16.msra.mxu1 %v799_v29 }
  0x3d   : > { %804 = vmatprep.subr.bf16.mxu0 %v803_v32  ;;  %823 = vmatprep.subr.bf16.mxu1 %v803_v32 }
  0x40   : > { %806 = vmatpush3.bf16.msra.mxu0 %v803_v32  ;;  %831 = vmatpush3.bf16.msra.mxu1 %v803_v32 }
  0x41   : > { %808 = vmatprep.subr.bf16.mxu0 %v807_v35  ;;  %824 = vmatprep.subr.bf16.mxu1 %v807_v35 }
  0x44   : > { %810 = vmatpush3.bf16.msra.mxu0 %v807_v35  ;;  %832 = vmatpush3.bf16.msra.mxu1 %v807_v35 }
  0x45   : > { %812 = vmatprep.subr.bf16.mxu0 %v811_v38  ;;  %825 = vmatprep.subr.bf16.mxu1 %v811_v38 }
  0x48   : > { %814 = vmatpush3.bf16.msra.mxu0 %v811_v38  ;;  %833 = vmatpush3.bf16.msra.mxu1 %v811_v38 }
  0x49   : > { %816 = vmatprep.subr.bf16.mxu0 %v815_v41  ;;  %826 = vmatprep.subr.bf16.mxu1 %v815_v41 }
  0x4c   : > { %818 = vmatpush3.bf16.msra.mxu0 %v815_v41  ;;  %834 = vmatpush3.bf16.msra.mxu1 %v815_v41 }
  0x4f   : > { %776 = vmatmul.mubr.f32.vlgmr.msra.gmra.mrb[0].mxu0 %v355_v42  ;;  %782 = vmatmul.mubr.f32.vlgmr.msra.gmra.mrb[0].mxu1 %v359_v43 }
  0x50   : > { %778 = vmatprep.mubr.f32.mxu0 %v356_v44  ;;  %784 = vmatprep.mubr.f32.mxu1 %v360_v45 }
  0x53   : > { %779 = vmatmul.mubr.f32.gmra.mrb[2].mxu0 %v357_v46  ;;  %785 = vmatmul.mubr.f32.gmra.mrb[2].mxu1 %v361_v47 }
 0x122   : > { %v777_v49 = vpop.f32.mrb[0].mxu0  ;;  %v783_v50 = vpop.f32.mrb[0].mxu1 }
 0x123   : > { %v518_v51 = vadd.f32 %v777_v49, %v714_v48  ;;  %v522_v52 = vadd.f32 %v783_v50, %v714_v48  ;;  %v444_v53 = vpop.f32.mrb[1].mxu0  ;;  %v464_v54 = vpop.f32.mrb[1].mxu1 }
 0x124   : > { %v517_v55 = vadd.f32 %v714_v48, %v444_v53  ;;  %v521_v56 = vadd.f32 %v714_v48, %v464_v54  ;;  %539 = sbr.rel (!%p970_p6) target bundleno = 308 (0x134), region = 82 }
 0x125   : > { %526 = vst [vmem:[%s1055_s9 + $0x8] sm:$0xff] %v518_v51  ;;  %530 = vst [vmem:[%s1055_s9 + $0x28] sm:$0xff] %v522_v52 }
 0x126   : > { %525 = vst [vmem:[%s1055_s9] sm:$0xff] %v517_v55  ;;  %529 = vst [vmem:[%s1055_s9 + $0x20] sm:$0xff] %v521_v56  ;;  %v780_v57 = vpop.f32.mrb[2].mxu0  ;;  %v786_v58 = vpop.f32.mrb[2].mxu1 }
 0x127   : > { %v520_v59 = vadd.f32 %v780_v57, %v714_v48  ;;  %v524_v60 = vadd.f32 %v786_v58, %v714_v48  ;;  %v454_v61 = vpop.f32.mrb[3].mxu0  ;;  %v474_v62 = vpop.f32.mrb[3].mxu1 }
 0x128   : > { %v519_v63 = vadd.f32 %v714_v48, %v454_v61  ;;  %v523_v0 = vadd.f32 %v714_v48, %v474_v62 }
 0x129   : > { %528 = vst [vmem:[%s1055_s9 + $0x18] sm:$0xff] %v520_v59  ;;  %532 = vst [vmem:[%s1055_s9 + $0x38] sm:$0xff] %v524_v60 }
 0x12a   : > { %527 = vst [vmem:[%s1055_s9 + $0x10] sm:$0xff] %v519_v63  ;;  %531 = vst [vmem:[%s1055_s9 + $0x30] sm:$0xff] %v523_v0 }
 0x12c   : > { %v588_v2 = vld [vmem:[%s1055_s9 + $0x8] sm:$0xff] }
 0x12d   : > { %v586_v1 = vld [vmem:[%s1055_s9] sm:$0xff]  ;;  %v596_v6 = vld [vmem:[%s1055_s9 + $0x28] sm:$0xff]  ;;  %589 = vst [vmem:[%s544_s11 + $0x20] sm:$0xff] %v588_v2 }
 0x12e   : > { %v594_v5 = vld [vmem:[%s1055_s9 + $0x20] sm:$0xff]  ;;  %587 = vst [vmem:[%s544_s11] sm:$0xff] %v586_v1  ;;  %597 = vst [vmem:[%s544_s11 + $0xa0] sm:$0xff] %v596_v6 }
 0x12f   : > { %595 = vst [vmem:[%s544_s11 + $0x80] sm:$0xff] %v594_v5 }
 0x130   : > { %v592_v4 = vld [vmem:[%s1055_s9 + $0x18] sm:$0xff] }
 0x131   : > { %v590_v3 = vld [vmem:[%s1055_s9 + $0x10] sm:$0xff]  ;;  %593 = vst [vmem:[%s544_s11 + $0x60] sm:$0xff] %v592_v4  ;;  %v600_v8 = vld [vmem:[%s1055_s9 + $0x38] sm:$0xff] }
 0x132   : > { %591 = vst [vmem:[%s544_s11 + $0x40] sm:$0xff] %v590_v3  ;;  %v598_v7 = vld [vmem:[%s1055_s9 + $0x30] sm:$0xff]  ;;  %601 = vst [vmem:[%s544_s11 + $0xe0] sm:$0xff] %v600_v8 }
 0x133   : > { %599 = vst [vmem:[%s544_s11 + $0xc0] sm:$0xff] %v598_v7 }
 0x134 PF: > { %s13_s16 = sadd.s32 1, %s913_s16   ;;  %s1099_s12 = smov %s901_s13 }
 0x135   : > { %p10_p12 = scmp.ge.s32.totalorder %s13_s16, 6   ;;  %s1100_s13 = smov %s975_s22 }
 0x136   : > { %s1101_s14 = smov %s909_s15  ;;  %s1102_s15 = smov %s1104_s17 }
 0x137   :  { %12 = sbr.rel (!%p10_p12) target bundleno = 3 (0x3), region = 157 }

// kernel: seq2seq_lstm_forward.9
= control target key start
LH: loop header
LB: loop body
LE: loop exit
PB: predicated region body
PF: predicated region fallthrough
CT: control target
= control target key end

     0   :  { %s836_s12 = smov 0   ;;  %s838_s13 = smov 0   ;;  %s967_s0 = inlined_call_operand.vmem [shape: f32[64,32], index: 0, kind: input, shape index: {}]   ;;  %s968_s1 = inlined_call_operand.vmem [shape: f32[32,512], index: 1, kind: input, shape index: {}]   ;;  %s969_s2 = inlined_call_operand.vmem [shape: f32[1,512], index: 2, kind: input, shape index: {}]   ;;  %s970_s3 = inlined_call_operand.vmem [shape: f32[64,512], index: 3, kind: output, shape index: {}]  }
   0x1   :  { %s840_s14 = smov 0   ;;  %s842_s15 = smov 0  }
   0x2   :  { %s844_s16 = smov 0  }
   0x3 LB: > { %s28_s17 = sadd.s32 1, %s810_s15  ;;  %s669_s18 = sadd.s32 4294967295, %s814_s16   ;;  %s814_s16 = sphi %s844_s16, %s13_s16   ;;  %s810_s15 = sphi %s842_s15, %s975_s15   ;;  %s806_s14 = sphi %s840_s14, %s974_s14   ;;  %s802_s13 = sphi %s838_s13, %s973_s13   ;;  %s798_s12 = sphi %s836_s12, %s972_s12  }
   0x4   : > { %p30_p0 = scmp.ge.s32.totalorder %s28_s17, 4  ;;  %p76_p1 = scmp.ne.s32.totalorder %s802_s13, %s798_s12 }
   0x5   : > { %p77_p2 = scmp.eq.s32.totalorder %s814_s16, 0  ;;  %p134_p4 = scmp.eq.s32.totalorder %s669_s18, 3 }
   0x6   : > { %s977_s17 = smov (%p30_p0, %s28_s17), 0  ;;  %s69_s20 = sadd.s32 1, %s802_s13 }
   0x7   : > { %p78_p3 = por %p77_p2, %p76_p1  ;;  %s65_s19 = ssub.s32 %s810_s15, %s977_s17 }
   0x8   : > { %p67_p5 = scmp.eq.s32.totalorder %s65_s19, 0  ;;  %p871_p6 = por %p134_p4, %p76_p1 }
   0x9   : > { %p673_p7 = scmp.ge.s32.totalorder %s814_s16, 4 }
   0xa   : > { %s876_s22 = scalar_select %p67_p5, %s802_s13, %s69_s20  }
   0xb   : > { %168 = sbr.rel (%p673_p7) target bundleno = 26 (0x1a), region = 20 }
  0x12   : > { %171 = sbr.rel (!%p78_p3) target bundleno = 26 (0x1a), region = 24  ;;  %s173_s23 = sand.u32 (%p78_p3), 1, %s802_s13  }
  0x13   : > { %s675_s24 = sshll.u32 (%p78_p3), %s810_s15, 3  ;;  %s674_s25 = sshll.u32 (%p78_p3), %s173_s23, 5 }
  0x14   : > { %s180_s28 = scalar_lea.vmem (%p78_p3), %s968_s1, %s675_s24  ;;  %s175_s29 = scalar_lea.vmem (%p78_p3), [#allocation3], %s674_s25 }
  0x15   : > { %v214_v0 = vld [vmem:[%s180_s28] sm:$0xff] (%p78_p3) }
  0x16   : > { %v216_v1 = vld [vmem:[%s180_s28 + $0x20] sm:$0xff] (%p78_p3)  ;;  %215 = vst [vmem:[%s175_s29] sm:$0xff] (%p78_p3), %v214_v0 }
  0x17   : > { %v218_v2 = vld [vmem:[%s180_s28 + $0x40] sm:$0xff] (%p78_p3)  ;;  %217 = vst [vmem:[%s175_s29 + $0x8] sm:$0xff] (%p78_p3), %v216_v1 }
  0x18   : > { %219 = vst [vmem:[%s175_s29 + $0x10] sm:$0xff] (%p78_p3), %v218_v2  ;;  %v220_v3 = vld [vmem:[%s180_s28 + $0x60] sm:$0xff] (%p78_p3) }
  0x19   : > { %221 = vst [vmem:[%s175_s29 + $0x18] sm:$0xff] %v220_v3 }
  0x1a PF: > { %p676_p8 = scmp.ge.s32.totalorder %s814_s16, 1  ;;  %p232_p9 = scmp.lt.s32.totalorder %s814_s16, 5 }
  0x1c   : > { %p233_p10 = pnand %p676_p8, %p232_p9 }
  0x1d   : > { %s239_s30 = sand.u32 (!%p233_p10), 1, %s798_s12   ;;  %v306_v4 = vld [vmem:[%s967_s0] sm:$0xff] (!%p233_p10)  ;;  %vm318_vm0 = vcmask (!%p233_p10), 261120   ;;  %v307_v12 = vld [vmem:[%s967_s0 + $0x8] sm:$0xff] (!%p233_p10)  ;;  %v308_v14 = vld [vmem:[%s967_s0 + $0x10] sm:$0xff] (!%p233_p10)  ;;  %p282_p11 = scmp.lt.s32.totalorder (!%p233_p10), %s806_s14, 3 }
  0x1e   : > { %236 = sbr.rel (%p233_p10) target bundleno = 272 (0x110), region = 66  ;;  %v310_v5 = vld [vmem:[%s967_s0 + $0x20] sm:$0xff] (!%p233_p10)  ;;  %s677_s8 = sshll.u32 (!%p233_p10), %s239_s30, 5  ;;  %712 = vmatprep.mubr.msk.f32.mxu0 (!%p233_p10), %vm318_vm0, %v306_v4  ;;  %v311_v13 = vld [vmem:[%s967_s0 + $0x28] sm:$0xff] (!%p233_p10)  ;;  %v312_v15 = vld [vmem:[%s967_s0 + $0x30] sm:$0xff] (!%p233_p10) }
  0x1f   : > { %718 = vmatprep.mubr.msk.f32.mxu1 (!%p233_p10), %vm318_vm0, %v310_v5  ;;  %s241_s9 = scalar_lea.vmem (!%p233_p10), [#allocation3], %s677_s8  ;;  %v309_v16 = vld [vmem:[%s967_s0 + $0x18] sm:$0xff] (!%p233_p10)  ;;  %s678_s8 = sshll.u32 (!%p233_p10), %s239_s30, 6 }
  0x20   : > { %v314_v6 = vld [vmem:[%s241_s9] sm:$0xff] (!%p233_p10)  ;;  %v315_v7 = vld [vmem:[%s241_s9 + $0x8] sm:$0xff] (!%p233_p10)  ;;  %v316_v8 = vld [vmem:[%s241_s9 + $0x10] sm:$0xff] (!%p233_p10) }
  0x21   : > { %v724_v9 = vpack.c.bf16 (!%p233_p10), %v315_v7, %v314_v6  ;;  %v317_v10 = vld [vmem:[%s241_s9 + $0x18] sm:$0xff] (!%p233_p10)  ;;  %s928_s9 = scalar_lea.vmem (!%p233_p10), [#allocation4], %s678_s8 }
  0x22   : > { %v728_v11 = vpack.c.bf16 (!%p233_p10), %v317_v10, %v316_v8  ;;  %v313_v17 = vld [vmem:[%s967_s0 + $0x38] sm:$0xff] (!%p233_p10) }
  0x23   : > { %725 = vmatprep.subr.bf16.mxu0 (!%p233_p10), %v724_v9  ;;  %732 = vmatprep.subr.bf16.mxu1 (!%p233_p10), %v724_v9 }
  0x24   : > { %727 = vmatpush3.bf16.msra.mxu0 (!%p233_p10), %v724_v9  ;;  %734 = vmatpush3.bf16.msra.mxu1 (!%p233_p10), %v724_v9 }
  0x25   : > { %729 = vmatprep.subr.bf16.mxu0 %v728_v11  ;;  %733 = vmatprep.subr.bf16.mxu1 %v728_v11  ;;  %s283_s4 = scalar_select %p282_p11, %s806_s14, 3 }
  0x26   : > { %s689_s12 = sshll.u32 (%p871_p6), %s806_s14, 3 }
  0x27   : > { %s284_s7 = scalar_lea.vmem %s969_s2, %s283_s4  ;;  %s509_s11 = scalar_lea.vmem (%p871_p6), %s970_s3, %s689_s12 }
  0x28   : > { %731 = vmatpush3.bf16.msra.mxu0 %v728_v11  ;;  %735 = vmatpush3.bf16.msra.mxu1 %v728_v11  ;;  %v687_v18 = vld [vmem:[%s284_s7] ss:$0 sm:$0xff] }
  0x2b   : > { %713 = vmatmul.mubr.msk.f32.vlgmr.msra.gmra.mrb[0].mxu0 %vm318_vm0, %v307_v12  ;;  %719 = vmatmul.mubr.msk.f32.vlgmr.msra.gmra.mrb[0].mxu1 %vm318_vm0, %v311_v13 }
  0x2c   : > { %715 = vmatprep.mubr.msk.f32.mxu0 %vm318_vm0, %v308_v14  ;;  %721 = vmatprep.mubr.msk.f32.mxu1 %vm318_vm0, %v312_v15 }
  0x2f   : > { %716 = vmatmul.mubr.msk.f32.gmra.mrb[2].mxu0 %vm318_vm0, %v309_v16  ;;  %722 = vmatmul.mubr.msk.f32.gmra.mrb[2].mxu1 %vm318_vm0, %v313_v17 }
  0xfe   : > { %v714_v19 = vpop.f32.mrb[0].mxu0  ;;  %v720_v20 = vpop.f32.mrb[0].mxu1 }
  0xff   : > { %v483_v21 = vadd.f32 %v714_v19, %v687_v18  ;;  %v487_v22 = vadd.f32 %v720_v20, %v687_v18  ;;  %v409_v23 = vpop.f32.mrb[1].mxu0  ;;  %v429_v24 = vpop.f32.mrb[1].mxu1 }
 0x100   : > { %v482_v25 = vadd.f32 %v687_v18, %v409_v23  ;;  %v486_v26 = vadd.f32 %v687_v18, %v429_v24  ;;  %504 = sbr.rel (!%p871_p6) target bundleno = 272 (0x110), region = 82 }
 0x101   : > { %491 = vst [vmem:[%s928_s9 + $0x8] sm:$0xff] %v483_v21  ;;  %495 = vst [vmem:[%s928_s9 + $0x28] sm:$0xff] %v487_v22 }
 0x102   : > { %490 = vst [vmem:[%s928_s9] sm:$0xff] %v482_v25  ;;  %494 = vst [vmem:[%s928_s9 + $0x20] sm:$0xff] %v486_v26  ;;  %v717_v27 = vpop.f32.mrb[2].mxu0  ;;  %v723_v28 = vpop.f32.mrb[2].mxu1 }
 0x103   : > { %v485_v29 = vadd.f32 %v717_v27, %v687_v18  ;;  %v489_v30 = vadd.f32 %v723_v28, %v687_v18  ;;  %v419_v31 = vpop.f32.mrb[3].mxu0  ;;  %v439_v32 = vpop.f32.mrb[3].mxu1 }
 0x104   : > { %v484_v33 = vadd.f32 %v687_v18, %v419_v31  ;;  %v488_v34 = vadd.f32 %v687_v18, %v439_v32 }
 0x105   : > { %493 = vst [vmem:[%s928_s9 + $0x18] sm:$0xff] %v485_v29  ;;  %497 = vst [vmem:[%s928_s9 + $0x38] sm:$0xff] %v489_v30 }
 0x106   : > { %492 = vst [vmem:[%s928_s9 + $0x10] sm:$0xff] %v484_v33  ;;  %496 = vst [vmem:[%s928_s9 + $0x30] sm:$0xff] %v488_v34 }
 0x108   : > { %v553_v36 = vld [vmem:[%s928_s9 + $0x8] sm:$0xff] }
 0x109   : > { %v551_v35 = vld [vmem:[%s928_s9] sm:$0xff]  ;;  %v561_v40 = vld [vmem:[%s928_s9 + $0x28] sm:$0xff]  ;;  %554 = vst [vmem:[%s509_s11 + $0x20] sm:$0xff] %v553_v36 }
 0x10a   : > { %v559_v39 = vld [vmem:[%s928_s9 + $0x20] sm:$0xff]  ;;  %552 = vst [vmem:[%s509_s11] sm:$0xff] %v551_v35  ;;  %562 = vst [vmem:[%s509_s11 + $0xa0] sm:$0xff] %v561_v40 }
 0x10b   : > { %560 = vst [vmem:[%s509_s11 + $0x80] sm:$0xff] %v559_v39 }
 0x10c   : > { %v557_v38 = vld [vmem:[%s928_s9 + $0x18] sm:$0xff] }
 0x10d   : > { %v555_v37 = vld [vmem:[%s928_s9 + $0x10] sm:$0xff]  ;;  %558 = vst [vmem:[%s509_s11 + $0x60] sm:$0xff] %v557_v38  ;;  %v565_v42 = vld [vmem:[%s928_s9 + $0x38] sm:$0xff] }
 0x10e   : > { %556 = vst [vmem:[%s509_s11 + $0x40] sm:$0xff] %v555_v37  ;;  %v563_v41 = vld [vmem:[%s928_s9 + $0x30] sm:$0xff]  ;;  %566 = vst [vmem:[%s509_s11 + $0xe0] sm:$0xff] %v565_v42 }
 0x10f   : > { %564 = vst [vmem:[%s509_s11 + $0xc0] sm:$0xff] %v563_v41 }
 0x110 PF: > { %s13_s16 = sadd.s32 1, %s814_s16   ;;  %s972_s12 = smov %s802_s13 }
 0x111   : > { %p10_p12 = scmp.ge.s32.totalorder %s13_s16, 6   ;;  %s973_s13 = smov %s876_s22 }
 0x112   : > { %s974_s14 = smov %s810_s15  ;;  %s975_s15 = smov %s977_s17 }
 0x113   :  { %12 = sbr.rel (!%p10_p12) target bundleno = 3 (0x3), region = 157 }

// kernel: seq2seq_lstm_forward.13
= control target key start
LH: loop header
LB: loop body
LE: loop exit
PB: predicated region body
PF: predicated region fallthrough
CT: control target
= control target key end

     0   :  { %s1228_s12 = smov 0   ;;  %s1230_s13 = smov 0   ;;  %s1521_s0 = inlined_call_operand.vmem [shape: f32[64,288], index: 0, kind: input, shape index: {}]   ;;  %s1522_s1 = inlined_call_operand.vmem [shape: f32[288,512], index: 1, kind: input, shape index: {}]   ;;  %s1523_s2 = inlined_call_operand.vmem [shape: f32[1,512], index: 2, kind: input, shape index: {}]   ;;  %s1524_s3 = inlined_call_operand.vmem [shape: f32[64,512], index: 3, kind: output, shape index: {}]  }
   0x1   :  { %s1232_s14 = smov 0   ;;  %s1234_s15 = smov 0  }
   0x2   :  { %s1236_s16 = smov 0  }
   0x3 LB: > { %s28_s17 = sadd.s32 1, %s1202_s15  ;;  %s961_s18 = sadd.s32 4294967295, %s1206_s16   ;;  %s1206_s16 = sphi %s1236_s16, %s13_s16   ;;  %s1202_s15 = sphi %s1234_s15, %s1529_s15   ;;  %s1198_s14 = sphi %s1232_s14, %s1528_s14   ;;  %s1194_s13 = sphi %s1230_s13, %s1527_s13   ;;  %s1190_s12 = sphi %s1228_s12, %s1526_s12  }
   0x4   : > { %p30_p0 = scmp.ge.s32.totalorder %s28_s17, 4  ;;  %p76_p1 = scmp.ne.s32.totalorder %s1194_s13, %s1190_s12 }
   0x5   : > { %p77_p2 = scmp.eq.s32.totalorder %s1206_s16, 0  ;;  %p134_p4 = scmp.eq.s32.totalorder %s961_s18, 3 }
   0x6   : > { %s1531_s17 = smov (%p30_p0, %s28_s17), 0  ;;  %s69_s20 = sadd.s32 1, %s1194_s13 }
   0x7   : > { %p78_p3 = por %p77_p2, %p76_p1  ;;  %s65_s19 = ssub.s32 %s1202_s15, %s1531_s17 }
   0x8   : > { %p67_p5 = scmp.eq.s32.totalorder %s65_s19, 0  ;;  %p1263_p6 = por %p134_p4, %p76_p1 }
   0x9   : > { %p965_p7 = scmp.ge.s32.totalorder %s1206_s16, 4 }
   0xa   : > { %s1268_s22 = scalar_select %p67_p5, %s1194_s13, %s69_s20  }
   0xb   : > { %171 = sbr.rel (%p965_p7) target bundleno = 58 (0x3a), region = 20 }
  0x12   : > { %174 = sbr.rel (!%p78_p3) target bundleno = 58 (0x3a), region = 24  ;;  %s176_s23 = sand.u32 (%p78_p3), 1, %s1194_s13  }
  0x13   : > { %s966_s24 = sshll.u32 (%p78_p3), %s1202_s15, 3  ;;  %s1126_s25 = smul.u32 (%p78_p3), 288, %s176_s23 }
  0x14   : > { %s1276_s28 = scalar_lea.vmem (%p78_p3), %s1522_s1, %s966_s24 }
  0x15   : > { %v281_v0 = vld [vmem:[%s1276_s28] sm:$0xff] (%p78_p3)  ;;  %s1284_s29 = scalar_lea.vmem (%p78_p3), [#allocation3], %s1126_s25 }
  0x16   : > { %v283_v1 = vld [vmem:[%s1276_s28 + $0x20] sm:$0xff] (%p78_p3)  ;;  %282 = vst [vmem:[%s1284_s29] sm:$0xff] (%p78_p3), %v281_v0 }
  0x17   : > { %v285_v2 = vld [vmem:[%s1276_s28 + $0x40] sm:$0xff] (%p78_p3)  ;;  %284 = vst [vmem:[%s1284_s29 + $0x8] sm:$0xff] (%p78_p3), %v283_v1 }
  0x18   : > { %v287_v3 = vld [vmem:[%s1276_s28 + $0x60] sm:$0xff] (%p78_p3)  ;;  %286 = vst [vmem:[%s1284_s29 + $0x10] sm:$0xff] (%p78_p3), %v285_v2 }
  0x19   : > { %v289_v4 = vld [vmem:[%s1276_s28 + $0x80] sm:$0xff]  ;;  %288 = vst [vmem:[%s1284_s29 + $0x18] sm:$0xff] %v287_v3 }
  0x1a   : > { %v291_v5 = vld [vmem:[%s1276_s28 + $0xa0] sm:$0xff]  ;;  %290 = vst [vmem:[%s1284_s29 + $0x20] sm:$0xff] %v289_v4 }
  0x1b   : > { %292 = vst [vmem:[%s1284_s29 + $0x28] sm:$0xff] %v291_v5  ;;  %v293_v6 = vld [vmem:[%s1276_s28 + $0xc0] sm:$0xff] }
  0x1c   : > { %v295_v7 = vld [vmem:[%s1276_s28 + $0xe0] sm:$0xff]  ;;  %294 = vst [vmem:[%s1284_s29 + $0x30] sm:$0xff] %v293_v6 }
  0x1d   : > { %v297_v8 = vld [vmem:[%s1276_s28 + $0x100] sm:$0xff]  ;;  %296 = vst [vmem:[%s1284_s29 + $0x38] sm:$0xff] %v295_v7 }
  0x1e   : > { %298 = vst [vmem:[%s1284_s29 + $0x40] sm:$0xff] %v297_v8  ;;  %v299_v9 = vld [vmem:[%s1276_s28 + $0x120] sm:$0xff] }
  0x1f   : > { %v301_v10 = vld [vmem:[%s1276_s28 + $0x140] sm:$0xff]  ;;  %300 = vst [vmem:[%s1284_s29 + $0x48] sm:$0xff] %v299_v9 }
  0x20   : > { %v303_v11 = vld [vmem:[%s1276_s28 + $0x160] sm:$0xff]  ;;  %302 = vst [vmem:[%s1284_s29 + $0x50] sm:$0xff] %v301_v10 }
  0x21   : > { %304 = vst [vmem:[%s1284_s29 + $0x58] sm:$0xff] %v303_v11  ;;  %v305_v12 = vld [vmem:[%s1276_s28 + $0x180] sm:$0xff] }
  0x22   : > { %v307_v13 = vld [vmem:[%s1276_s28 + $0x1a0] sm:$0xff]  ;;  %306 = vst [vmem:[%s1284_s29 + $0x60] sm:$0xff] %v305_v12 }
  0x23   : > { %v309_v14 = vld [vmem:[%s1276_s28 + $0x1c0] sm:$0xff]  ;;  %308 = vst [vmem:[%s1284_s29 + $0x68] sm:$0xff] %v307_v13 }
  0x24   : > { %310 = vst [vmem:[%s1284_s29 + $0x70] sm:$0xff] %v309_v14  ;;  %v311_v15 = vld [vmem:[%s1276_s28 + $0x1e0] sm:$0xff] }
  0x25   : > { %v313_v16 = vld [vmem:[%s1276_s28 + $0x200] sm:$0xff]  ;;  %312 = vst [vmem:[%s1284_s29 + $0x78] sm:$0xff] %v311_v15 }
  0x26   : > { %v315_v17 = vld [vmem:[%s1276_s28 + $0x220] sm:$0xff]  ;;  %314 = vst [vmem:[%s1284_s29 + $0x80] sm:$0xff] %v313_v16 }
  0x27   : > { %316 = vst [vmem:[%s1284_s29 + $0x88] sm:$0xff] %v315_v17  ;;  %v317_v18 = vld [vmem:[%s1276_s28 + $0x240] sm:$0xff] }
  0x28   : > { %v319_v19 = vld [vmem:[%s1276_s28 + $0x260] sm:$0xff]  ;;  %318 = vst [vmem:[%s1284_s29 + $0x90] sm:$0xff] %v317_v18 }
  0x29   : > { %v321_v20 = vld [vmem:[%s1276_s28 + $0x280] sm:$0xff]  ;;  %320 = vst [vmem:[%s1284_s29 + $0x98] sm:$0xff] %v319_v19 }
  0x2a   : > { %322 = vst [vmem:[%s1284_s29 + $0xa0] sm:$0xff] %v321_v20  ;;  %v323_v21 = vld [vmem:[%s1276_s28 + $0x2a0] sm:$0xff] }
  0x2b   : > { %v325_v22 = vld [vmem:[%s1276_s28 + $0x2c0] sm:$0xff]  ;;  %324 = vst [vmem:[%s1284_s29 + $0xa8] sm:$0xff] %v323_v21 }
  0x2c   : > { %v327_v23 = vld [vmem:[%s1276_s28 + $0x2e0] sm:$0xff]  ;;  %326 = vst [vmem:[%s1284_s29 + $0xb0] sm:$0xff] %v325_v22 }
  0x2d   : > { %328 = vst [vmem:[%s1284_s29 + $0xb8] sm:$0xff] %v327_v23  ;;  %v329_v24 = vld [vmem:[%s1276_s28 + $0x300] sm:$0xff] }
  0x2e   : > { %v331_v25 = vld [vmem:[%s1276_s28 + $0x320] sm:$0xff]  ;;  %330 = vst [vmem:[%s1284_s29 + $0xc0] sm:$0xff] %v329_v24 }
  0x2f   : > { %v333_v26 = vld [vmem:[%s1276_s28 + $0x340] sm:$0xff]  ;;  %332 = vst [vmem:[%s1284_s29 + $0xc8] sm:$0xff] %v331_v25 }
  0x30   : > { %334 = vst [vmem:[%s1284_s29 + $0xd0] sm:$0xff] %v333_v26  ;;  %v335_v27 = vld [vmem:[%s1276_s28 + $0x360] sm:$0xff] }
  0x31   : > { %v337_v28 = vld [vmem:[%s1276_s28 + $0x380] sm:$0xff]  ;;  %336 = vst [vmem:[%s1284_s29 + $0xd8] sm:$0xff] %v335_v27 }
  0x32   : > { %v339_v29 = vld [vmem:[%s1276_s28 + $0x3a0] sm:$0xff]  ;;  %338 = vst [vmem:[%s1284_s29 + $0xe0] sm:$0xff] %v337_v28 }
  0x33   : > { %340 = vst [vmem:[%s1284_s29 + $0xe8] sm:$0xff] %v339_v29  ;;  %v341_v30 = vld [vmem:[%s1276_s28 + $0x3c0] sm:$0xff] }
  0x34   : > { %v343_v31 = vld [vmem:[%s1276_s28 + $0x3e0] sm:$0xff]  ;;  %342 = vst [vmem:[%s1284_s29 + $0xf0] sm:$0xff] %v341_v30 }
  0x35   : > { %v345_v32 = vld [vmem:[%s1276_s28 + $0x400] sm:$0xff]  ;;  %344 = vst [vmem:[%s1284_s29 + $0xf8] sm:$0xff] %v343_v31 }
  0x36   : > { %346 = vst [vmem:[%s1284_s29 + $0x100] sm:$0xff] %v345_v32  ;;  %v347_v33 = vld [vmem:[%s1276_s28 + $0x420] sm:$0xff] }
  0x37   : > { %v349_v34 = vld [vmem:[%s1276_s28 + $0x440] sm:$0xff]  ;;  %348 = vst [vmem:[%s1284_s29 + $0x108] sm:$0xff] %v347_v33 }
  0x38   : > { %v351_v35 = vld [vmem:[%s1276_s28 + $0x460] sm:$0xff]  ;;  %350 = vst [vmem:[%s1284_s29 + $0x110] sm:$0xff] %v349_v34 }
  0x39   : > { %352 = vst [vmem:[%s1284_s29 + $0x118] sm:$0xff] %v351_v35 }
  0x3a PF: > { %p967_p8 = scmp.ge.s32.totalorder %s1206_s16, 1  ;;  %p363_p9 = scmp.lt.s32.totalorder %s1206_s16, 5 }
  0x3c   : > { %p364_p10 = pnand %p967_p8, %p363_p9 }
  0x3d   : > { %s370_s30 = sand.u32 (!%p364_p10), 1, %s1190_s12   ;;  %v443_v36 = vld [vmem:[%s1521_s0 + $0x8] sm:$0xff] (!%p364_p10)  ;;  %v461_v37 = vld [vmem:[%s1521_s0 + $0x98] sm:$0xff] (!%p364_p10)  ;;  %v442_v27 = vld [vmem:[%s1521_s0] sm:$0xff] (!%p364_p10)  ;;  %vm502_vm0 = vcmask (!%p364_p10), 261120   ;;  %p418_p11 = scmp.lt.s32.totalorder (!%p364_p10), %s1198_s14, 3 }
  0x3e   : > { %367 = sbr.rel (%p364_p10) target bundleno = 349 (0x15d), region = 66  ;;  %591 = vmatprep.mubr.f32.mxu0 (!%p364_p10), %v443_v36  ;;  %621 = vmatprep.mubr.f32.mxu1 (!%p364_p10), %v461_v37  ;;  %v460_v28 = vld [vmem:[%s1521_s0 + $0x90] sm:$0xff] (!%p364_p10)  ;;  %v446_v29 = vld [vmem:[%s1521_s0 + $0x20] sm:$0xff] (!%p364_p10)  ;;  %v445_v32 = vld [vmem:[%s1521_s0 + $0x18] sm:$0xff] (!%p364_p10)  ;;  %s968_s4 = sshll.u32 (!%p364_p10), %s370_s30, 6 }
  0x3f   : > { %s1127_s8 = smul.u32 (!%p364_p10), 288, %s370_s30  ;;  %v464_v31 = vld [vmem:[%s1521_s0 + $0xb0] sm:$0xff] (!%p364_p10)  ;;  %v463_v33 = vld [vmem:[%s1521_s0 + $0xa8] sm:$0xff] (!%p364_p10)  ;;  %v449_v34 = vld [vmem:[%s1521_s0 + $0x38] sm:$0xff] (!%p364_p10)  ;;  %s1482_s5 = scalar_lea.vmem (!%p364_p10), [#allocation4], %s968_s4 }
  0x40   : > { %v444_v35 = vld [vmem:[%s1521_s0 + $0x10] sm:$0xff] (!%p364_p10)  ;;  %v447_v37 = vld [vmem:[%s1521_s0 + $0x28] sm:$0xff] (!%p364_p10) }
  0x41   : > { %s1363_s9 = scalar_lea.vmem (!%p364_p10), [#allocation3], %s1127_s8  ;;  %v448_v36 = vld [vmem:[%s1521_s0 + $0x30] sm:$0xff] (!%p364_p10) }
  0x42   : > { %v482_v38 = vld [vmem:[%s1363_s9 + $0x80] sm:$0xff] (!%p364_p10)  ;;  %v483_v39 = vld [vmem:[%s1363_s9 + $0x88] sm:$0xff] (!%p364_p10)  ;;  %v484_v43 = vld [vmem:[%s1363_s9 + $0x90] sm:$0xff] (!%p364_p10) }
  0x43   : > { %v466_v40 = vld [vmem:[%s1363_s9] sm:$0xff] (!%p364_p10)  ;;  %v1070_v41 = vpack.c.bf16 (!%p364_p10), %v483_v39, %v482_v38  ;;  %v467_v42 = vld [vmem:[%s1363_s9 + $0x8] sm:$0xff] (!%p364_p10)  ;;  %v485_v44 = vld [vmem:[%s1363_s9 + $0x98] sm:$0xff] (!%p364_p10) }
  0x44   : > { %v1072_v45 = vpack.c.bf16 (!%p364_p10), %v467_v42, %v466_v40  ;;  %v1074_v46 = vpack.c.bf16 (!%p364_p10), %v485_v44, %v484_v43  ;;  %v468_v47 = vld [vmem:[%s1363_s9 + $0x10] sm:$0xff] (!%p364_p10)  ;;  %v469_v48 = vld [vmem:[%s1363_s9 + $0x18] sm:$0xff] (!%p364_p10)  ;;  %v486_v49 = vld [vmem:[%s1363_s9 + $0xa0] sm:$0xff] (!%p364_p10) }
  0x45   : > { %1071 = vmatprep.subr.bf16.mxu0 %v1070_v41  ;;  %1110 = vmatprep.subr.bf16.mxu1 %v1070_v41  ;;  %v487_v50 = vld [vmem:[%s1363_s9 + $0xa8] sm:$0xff]  ;;  %v1076_v51 = vpack.c.bf16 %v469_v48, %v468_v47  ;;  %v470_v53 = vld [vmem:[%s1363_s9 + $0x20] sm:$0xff]  ;;  %v488_v55 = vld [vmem:[%s1363_s9 + $0xb0] sm:$0xff]  ;;  %s419_s26 = scalar_select %p418_p11, %s1198_s14, 3 }
  0x46   : > { %1073 = vmatpush3.bf16.msra.mxu0 %v1072_v45  ;;  %1118 = vmatpush3.bf16.msra.mxu1 %v1072_v45  ;;  %v1078_v52 = vpack.c.bf16 %v487_v50, %v486_v49  ;;  %v471_v54 = vld [vmem:[%s1363_s9 + $0x28] sm:$0xff]  ;;  %v489_v56 = vld [vmem:[%s1363_s9 + $0xb8] sm:$0xff]  ;;  %v472_v59 = vld [vmem:[%s1363_s9 + $0x30] sm:$0xff]  ;;  %s979_s12 = sshll.u32 (%p1263_p6), %s1198_s14, 3 }
  0x47   : > { %1075 = vmatprep.subr.bf16.mxu0 %v1074_v46  ;;  %1111 = vmatprep.subr.bf16.mxu1 %v1074_v46  ;;  %v1080_v57 = vpack.c.bf16 %v471_v54, %v470_v53  ;;  %v1082_v58 = vpack.c.bf16 %v489_v56, %v488_v55  ;;  %v473_v60 = vld [vmem:[%s1363_s9 + $0x38] sm:$0xff]  ;;  %v490_v61 = vld [vmem:[%s1363_s9 + $0xc0] sm:$0xff]  ;;  %v491_v62 = vld [vmem:[%s1363_s9 + $0xc8] sm:$0xff]  ;;  %s420_s29 = scalar_lea.vmem %s1523_s2, %s419_s26  ;;  %s798_s7 = scalar_lea.vmem (%p1263_p6), %s1524_s3, %s979_s12 }
  0x48   : > { %v1084_v63 = vpack.c.bf16 %v473_v60, %v472_v59  ;;  %v1086_v0 = vpack.c.bf16 %v491_v62, %v490_v61  ;;  %v474_v1 = vld [vmem:[%s1363_s9 + $0x40] sm:$0xff]  ;;  %v475_v2 = vld [vmem:[%s1363_s9 + $0x48] sm:$0xff]  ;;  %v492_v3 = vld [vmem:[%s1363_s9 + $0xd0] sm:$0xff] }
  0x49   : > { %v493_v4 = vld [vmem:[%s1363_s9 + $0xd8] sm:$0xff]  ;;  %v1088_v5 = vpack.c.bf16 %v475_v2, %v474_v1  ;;  %v476_v7 = vld [vmem:[%s1363_s9 + $0x50] sm:$0xff]  ;;  %v494_v9 = vld [vmem:[%s1363_s9 + $0xe0] sm:$0xff] }
  0x4a   : > { %1077 = vmatpush3.bf16.msra.mxu0 %v1076_v51  ;;  %1119 = vmatpush3.bf16.msra.mxu1 %v1076_v51  ;;  %v1090_v6 = vpack.c.bf16 %v493_v4, %v492_v3  ;;  %v477_v8 = vld [vmem:[%s1363_s9 + $0x58] sm:$0xff]  ;;  %v495_v10 = vld [vmem:[%s1363_s9 + $0xe8] sm:$0xff]  ;;  %v478_v13 = vld [vmem:[%s1363_s9 + $0x60] sm:$0xff] }
  0x4b   : > { %1079 = vmatprep.subr.bf16.mxu0 %v1078_v52  ;;  %1112 = vmatprep.subr.bf16.mxu1 %v1078_v52  ;;  %v1092_v11 = vpack.c.bf16 %v477_v8, %v476_v7  ;;  %v1094_v12 = vpack.c.bf16 %v495_v10, %v494_v9  ;;  %v479_v14 = vld [vmem:[%s1363_s9 + $0x68] sm:$0xff]  ;;  %v496_v15 = vld [vmem:[%s1363_s9 + $0xf0] sm:$0xff]  ;;  %v497_v16 = vld [vmem:[%s1363_s9 + $0xf8] sm:$0xff] }
  0x4c   : > { %v1096_v17 = vpack.c.bf16 %v479_v14, %v478_v13  ;;  %v1098_v18 = vpack.c.bf16 %v497_v16, %v496_v15  ;;  %v480_v19 = vld [vmem:[%s1363_s9 + $0x70] sm:$0xff]  ;;  %v481_v20 = vld [vmem:[%s1363_s9 + $0x78] sm:$0xff]  ;;  %v498_v21 = vld [vmem:[%s1363_s9 + $0x100] sm:$0xff] }
  0x4d   : > { %v499_v22 = vld [vmem:[%s1363_s9 + $0x108] sm:$0xff]  ;;  %v1100_v23 = vpack.c.bf16 %v481_v20, %v480_v19  ;;  %v500_v25 = vld [vmem:[%s1363_s9 + $0x110] sm:$0xff]  ;;  %v501_v26 = vld [vmem:[%s1363_s9 + $0x118] sm:$0xff] }
  0x4e   : > { %1081 = vmatpush3.bf16.msra.mxu0 %v1080_v57  ;;  %1120 = vmatpush3.bf16.msra.mxu1 %v1080_v57  ;;  %v1102_v24 = vpack.c.bf16 %v499_v22, %v498_v21  ;;  %v1106_v30 = vpack.c.bf16 %v501_v26, %v500_v25  ;;  %v452_v38 = vld [vmem:[%s1521_s0 + $0x50] sm:$0xff]  ;;  %v450_v39 = vld [vmem:[%s1521_s0 + $0x40] sm:$0xff]  ;;  %v451_v40 = vld [vmem:[%s1521_s0 + $0x48] sm:$0xff] }
  0x4f   : > { %1083 = vmatprep.subr.bf16.mxu0 %v1082_v58  ;;  %1113 = vmatprep.subr.bf16.mxu1 %v1082_v58  ;;  %v453_v41 = vld [vmem:[%s1521_s0 + $0x58] sm:$0xff]  ;;  %v455_v42 = vld [vmem:[%s1521_s0 + $0x68] sm:$0xff]  ;;  %v456_v43 = vld [vmem:[%s1521_s0 + $0x70] sm:$0xff] }
  0x50   : > { %v454_v44 = vld [vmem:[%s1521_s0 + $0x60] sm:$0xff]  ;;  %v459_v45 = vld [vmem:[%s1521_s0 + $0x88] sm:$0xff]  ;;  %v457_v48 = vld [vmem:[%s1521_s0 + $0x78] sm:$0xff] }
  0x51   : > { %v458_v46 = vld [vmem:[%s1521_s0 + $0x80] sm:$0xff]  ;;  %v465_v49 = vld [vmem:[%s1521_s0 + $0xb8] sm:$0xff] }
  0x52   : > { %1085 = vmatpush3.bf16.msra.mxu0 %v1084_v63  ;;  %1121 = vmatpush3.bf16.msra.mxu1 %v1084_v63  ;;  %v462_v47 = vld [vmem:[%s1521_s0 + $0xa0] sm:$0xff] }
  0x53   : > { %1087 = vmatprep.subr.bf16.mxu0 %v1086_v0  ;;  %1114 = vmatprep.subr.bf16.mxu1 %v1086_v0  ;;  %v977_v0 = vld [vmem:[%s420_s29] ss:$0 sm:$0xff] }
  0x56   : > { %1089 = vmatpush3.bf16.msra.mxu0 %v1088_v5  ;;  %1122 = vmatpush3.bf16.msra.mxu1 %v1088_v5 }
  0x57   : > { %1091 = vmatprep.subr.bf16.mxu0 %v1090_v6  ;;  %1115 = vmatprep.subr.bf16.mxu1 %v1090_v6 }
  0x5a   : > { %1093 = vmatpush3.bf16.msra.mxu0 %v1092_v11  ;;  %1123 = vmatpush3.bf16.msra.mxu1 %v1092_v11 }
  0x5b   : > { %1095 = vmatprep.subr.bf16.mxu0 %v1094_v12  ;;  %1116 = vmatprep.subr.bf16.mxu1 %v1094_v12 }
  0x5e   : > { %1097 = vmatpush3.bf16.msra.mxu0 %v1096_v17  ;;  %1124 = vmatpush3.bf16.msra.mxu1 %v1096_v17 }
  0x5f   : > { %1099 = vmatprep.subr.bf16.mxu0 %v1098_v18  ;;  %1117 = vmatprep.subr.bf16.mxu1 %v1098_v18 }
  0x62   : > { %1101 = vmatpush3.bf16.msra.mxu0 %v1100_v23  ;;  %1125 = vmatpush3.bf16.msra.mxu1 %v1100_v23 }
  0x63   : > { %1103 = vmatprep.subr.bf16.mxu1 %v1102_v24 }
  0x65   : > { %592 = vmatmul.mubr.f32.vlgmr.msra.gmra.mrb[0].mxu0 %v442_v27  ;;  %622 = vmatmul.mubr.f32.vlgmr.msra.gmra.mrb[0].mxu1 %v460_v28 }
  0x66   : > { %1105 = vmatpush3.bf16.msra.mxu1 %v1102_v24  ;;  %596 = vmatprep.mubr.f32.mxu0 %v446_v29 }
  0x67   : > { %626 = vmatprep.mubr.f32.mxu1 %v464_v31  ;;  %1107 = vmatprep.subr.bf16.mxu1 %v1106_v30 }
  0x69   : > { %597 = vmatmul.mubr.f32.gmra.mrb[2].mxu0 %v445_v32  ;;  %627 = vmatmul.mubr.f32.gmra.mrb[2].mxu1 %v463_v33 }
  0x6a   : > { %1109 = vmatpush3.bf16.msra.mxu1 %v1106_v30  ;;  %601 = vmatprep.mubr.f32.mxu0 %v449_v34 }
  0x6b   : > { %1058 = vmatprep.mubr.msk.f32.mxu1 %vm502_vm0, %v444_v35 }
  0x6d   : > { %602 = vmatmul.mubr.f32.gmra.mrb[4].mxu0 %v448_v36  ;;  %1059 = vmatmul.mubr.msk.f32.vlgmr.msra.gmra.mrb[4].mxu1 %vm502_vm0, %v447_v37 }
  0x6e   : > { %606 = vmatprep.mubr.f32.mxu0 %v452_v38  ;;  %1061 = vmatprep.mubr.msk.f32.mxu1 %vm502_vm0, %v450_v39 }
  0x71   : > { %607 = vmatmul.mubr.f32.gmra.mrb[6].mxu0 %v451_v40  ;;  %1062 = vmatmul.mubr.msk.f32.gmra.mrb[6].mxu1 %vm502_vm0, %v453_v41 }
  0x72   : > { %611 = vmatprep.mubr.f32.mxu0 %v455_v42  ;;  %1064 = vmatprep.mubr.msk.f32.mxu1 %vm502_vm0, %v456_v43 }
  0x75   : > { %612 = vmatmul.mubr.f32.gmra.mrb[8].mxu0 %v454_v44  ;;  %1065 = vmatmul.mubr.msk.f32.gmra.mrb[8].mxu1 %vm502_vm0, %v459_v45 }
  0x76   : > { %616 = vmatprep.mubr.f32.mxu0 %v458_v46  ;;  %1067 = vmatprep.mubr.msk.f32.mxu1 %vm502_vm0, %v462_v47 }
  0x79   : > { %617 = vmatmul.mubr.f32.gmra.mrb[10].mxu0 %v457_v48  ;;  %1068 = vmatmul.mubr.msk.f32.gmra.mrb[10].mxu1 %vm502_vm0, %v465_v49 }
 0x138   : > { %v1014_v50 = vpop.f32.mrb[0].mxu0  ;;  %v1032_v51 = vpop.f32.mrb[0].mxu1 }
 0x139   : > { %v1015_v52 = vpop.f32.mrb[1].mxu0  ;;  %v1033_v53 = vpop.f32.mrb[1].mxu1 }
 0x13a   : > { %v1016_v54 = vadd.f32 %v1015_v52, %v1014_v50  ;;  %v1034_v55 = vadd.f32 %v1033_v53, %v1032_v51 }
 0x13c   : > { %v1017_v56 = vpop.f32.mrb[2].mxu0  ;;  %v1035_v57 = vpop.f32.mrb[2].mxu1 }
 0x13d   : > { %v1018_v58 = vpop.f32.mrb[3].mxu0  ;;  %v1036_v59 = vpop.f32.mrb[3].mxu1 }
 0x13e   : > { %v1019_v60 = vadd.f32 %v1018_v58, %v1017_v56  ;;  %v1037_v61 = vadd.f32 %v1036_v59, %v1035_v57 }
 0x140   : > { %v1020_v62 = vpop.f32.mrb[4].mxu0  ;;  %v1060_v63 = vpop.f32.mrb[4].mxu1 }
 0x141   : > { %v704_v1 = vadd.f32 %v1060_v63, %v1019_v60  ;;  %v1021_v2 = vpop.f32.mrb[5].mxu0  ;;  %v698_v3 = vpop.f32.mrb[5].mxu1 }
 0x142   : > { %v1022_v4 = vadd.f32 %v1021_v2, %v1020_v62  ;;  %v699_v5 = vadd.f32 %v1016_v54, %v698_v3 }
 0x143   : > { %v772_v6 = vadd.f32 %v977_v0, %v704_v1 }
 0x144   : > { %v771_v7 = vadd.f32 %v977_v0, %v699_v5  ;;  %v1023_v8 = vpop.f32.mrb[6].mxu0  ;;  %v1063_v9 = vpop.f32.mrb[6].mxu1 }
 0x145   : > { %780 = vst [vmem:[%s1482_s5 + $0x8] sm:$0xff] %v772_v6  ;;  %v1024_v10 = vpop.f32.mrb[7].mxu0  ;;  %v708_v11 = vpop.f32.mrb[7].mxu1 }
 0x146   : > { %779 = vst [vmem:[%s1482_s5] sm:$0xff] %v771_v7  ;;  %v1025_v12 = vadd.f32 %v1024_v10, %v1023_v8  ;;  %v709_v13 = vadd.f32 %v1022_v4, %v708_v11 }
 0x148   : > { %v714_v14 = vadd.f32 %v1063_v9, %v1025_v12  ;;  %v773_v15 = vadd.f32 %v977_v0, %v709_v13  ;;  %v1026_v16 = vpop.f32.mrb[8].mxu0  ;;  %v1066_v17 = vpop.f32.mrb[8].mxu1 }
 0x149   : > { %v1027_v18 = vpop.f32.mrb[9].mxu0  ;;  %v718_v19 = vpop.f32.mrb[9].mxu1 }
 0x14a   : > { %v774_v20 = vadd.f32 %v977_v0, %v714_v14  ;;  %781 = vst [vmem:[%s1482_s5 + $0x10] sm:$0xff] %v773_v15  ;;  %v1028_v21 = vadd.f32 %v1027_v18, %v1026_v16 }
 0x14c   : > { %782 = vst [vmem:[%s1482_s5 + $0x18] sm:$0xff] %v774_v20  ;;  %v719_v22 = vadd.f32 %v1028_v21, %v718_v19  ;;  %v1029_v23 = vpop.f32.mrb[10].mxu0  ;;  %v1069_v24 = vpop.f32.mrb[10].mxu1  ;;  %v842_v36 = vld [vmem:[%s1482_s5 + $0x8] sm:$0xff] (%p1263_p6) }
 0x14d   : > { %v734_v25 = vadd.f32 %v1069_v24, %v1037_v61  ;;  %v1030_v26 = vpop.f32.mrb[11].mxu0  ;;  %v728_v27 = vpop.f32.mrb[11].mxu1  ;;  %v840_v35 = vld [vmem:[%s1482_s5] sm:$0xff] (%p1263_p6)  ;;  %843 = vst [vmem:[%s798_s7 + $0x20] sm:$0xff] (%p1263_p6), %v842_v36 }
 0x14e   : > { %v775_v28 = vadd.f32 %v977_v0, %v719_v22  ;;  %v1031_v29 = vadd.f32 %v1030_v26, %v1029_v23  ;;  %v729_v30 = vadd.f32 %v1034_v55, %v728_v27  ;;  %793 = sbr.rel (!%p1263_p6) target bundleno = 349 (0x15d), region = 82  ;;  %841 = vst [vmem:[%s798_s7] sm:$0xff] (%p1263_p6), %v840_v35 }
 0x14f   : > { %v778_v31 = vadd.f32 %v977_v0, %v734_v25 }
 0x150   : > { %783 = vst [vmem:[%s1482_s5 + $0x20] sm:$0xff] %v775_v28  ;;  %v724_v32 = vadd.f32 %v1066_v17, %v1031_v29  ;;  %v777_v33 = vadd.f32 %v977_v0, %v729_v30 }
 0x151   : > { %786 = vst [vmem:[%s1482_s5 + $0x38] sm:$0xff] %v778_v31  ;;  %v844_v37 = vld [vmem:[%s1482_s5 + $0x10] sm:$0xff] (%p1263_p6) }
 0x152   : > { %v776_v34 = vadd.f32 %v977_v0, %v724_v32  ;;  %785 = vst [vmem:[%s1482_s5 + $0x30] sm:$0xff] %v777_v33  ;;  %845 = vst [vmem:[%s798_s7 + $0x40] sm:$0xff] (%p1263_p6), %v844_v37 }
 0x153   : > { %v846_v38 = vld [vmem:[%s1482_s5 + $0x18] sm:$0xff] (%p1263_p6) }
 0x154   : > { %784 = vst [vmem:[%s1482_s5 + $0x28] sm:$0xff] %v776_v34  ;;  %847 = vst [vmem:[%s798_s7 + $0x60] sm:$0xff] (%p1263_p6), %v846_v38 }
 0x157   : > { %v848_v39 = vld [vmem:[%s1482_s5 + $0x20] sm:$0xff] }
 0x158   : > { %849 = vst [vmem:[%s798_s7 + $0x80] sm:$0xff] %v848_v39  ;;  %v854_v42 = vld [vmem:[%s1482_s5 + $0x38] sm:$0xff] }
 0x159   : > { %v852_v41 = vld [vmem:[%s1482_s5 + $0x30] sm:$0xff]  ;;  %855 = vst [vmem:[%s798_s7 + $0xe0] sm:$0xff] %v854_v42 }
 0x15a   : > { %853 = vst [vmem:[%s798_s7 + $0xc0] sm:$0xff] %v852_v41 }
 0x15b   : > { %v850_v40 = vld [vmem:[%s1482_s5 + $0x28] sm:$0xff] }
 0x15c   : > { %851 = vst [vmem:[%s798_s7 + $0xa0] sm:$0xff] %v850_v40 }
 0x15d PF: > { %s13_s16 = sadd.s32 1, %s1206_s16   ;;  %s1526_s12 = smov %s1194_s13 }
 0x15e   : > { %p10_p12 = scmp.ge.s32.totalorder %s13_s16, 6   ;;  %s1527_s13 = smov %s1268_s22 }
 0x15f   : > { %s1528_s14 = smov %s1202_s15  ;;  %s1529_s15 = smov %s1531_s17 }
 0x160   :  { %12 = sbr.rel (!%p10_p12) target bundleno = 3 (0x3), region = 157 }

// kernel: seq2seq_lstm_forward.10
= control target key start
LH: loop header
LB: loop body
LE: loop exit
PB: predicated region body
PF: predicated region fallthrough
CT: control target
= control target key end

     0   :  { %v2203_v3 = vmov 0.0   ;;  %s2893_s1 = inlined_call_operand.vmem [shape: f32[128,512], index: 1, kind: input, shape index: {}]   ;;  %s2894_s0 = inlined_call_operand.vmem [shape: f32[8,8,512], index: 0, kind: input, shape index: {}]   ;;  %s2895_s2 = inlined_call_operand.vmem [shape: f32[8,8,128], index: 2, kind: output, shape index: {}]  }
   0x1   :  { %v18_v0 = vld [vmem:[%s2893_s1 + $0x8] sm:$0xff]  ;;  %v17_v2 = vld [vmem:[%s2893_s1] sm:$0xff]  ;;  %151 = vmatprep.mubr.f32.mxu0 %v2203_v3  ;;  %222 = vmatprep.mubr.f32.mxu1 %v2203_v3  ;;  %v20_v19 = vld [vmem:[%s2893_s1 + $0x18] sm:$0xff] }
   0x2   :  { %v22_v1 = vld [vmem:[%s2893_s1 + $0x28] sm:$0xff]  ;;  %v21_v5 = vld [vmem:[%s2893_s1 + $0x20] sm:$0xff]  ;;  %v24_v20 = vld [vmem:[%s2893_s1 + $0x38] sm:$0xff] }
   0x3   :  { %v2230_v4 = vpack.c.bf16 %v22_v1, %v18_v0  ;;  %v26_v6 = vld [vmem:[%s2893_s1 + $0x48] sm:$0xff]  ;;  %v2241_v8 = vpack.c.bf16 %v21_v5, %v17_v2  ;;  %v25_v10 = vld [vmem:[%s2893_s1 + $0x40] sm:$0xff]  ;;  %v2282_v22 = vpack.c.bf16 %v24_v20, %v20_v19  ;;  %v19_v23 = vld [vmem:[%s2893_s1 + $0x10] sm:$0xff] }
   0x4   :  { %v30_v7 = vld [vmem:[%s2893_s1 + $0x68] sm:$0xff]  ;;  %v29_v11 = vld [vmem:[%s2893_s1 + $0x60] sm:$0xff]  ;;  %v23_v24 = vld [vmem:[%s2893_s1 + $0x30] sm:$0xff] }
   0x5   :  { %v2243_v9 = vpack.c.bf16 %v30_v7, %v26_v6  ;;  %v34_v12 = vld [vmem:[%s2893_s1 + $0x88] sm:$0xff]  ;;  %1563 = vmatprep.subr.bf16.mxu0 %v2230_v4  ;;  %v2259_v14 = vpack.c.bf16 %v29_v11, %v25_v10  ;;  %v33_v15 = vld [vmem:[%s2893_s1 + $0x80] sm:$0xff]  ;;  %v2290_v25 = vpack.c.bf16 %v23_v24, %v19_v23  ;;  %1595 = vmatprep.subr.bf16.mxu1 %v2282_v22  ;;  %v28_v27 = vld [vmem:[%s2893_s1 + $0x58] sm:$0xff] }
   0x6   :  { %v38_v13 = vld [vmem:[%s2893_s1 + $0xa8] sm:$0xff]  ;;  %1565 = vmatpush1.bf16.msra.mxu0 %v2241_v8  ;;  %v37_v16 = vld [vmem:[%s2893_s1 + $0xa0] sm:$0xff]  ;;  %v32_v28 = vld [vmem:[%s2893_s1 + $0x78] sm:$0xff] }
   0x7   :  { %1567 = vmatprep.subr.bf16.mxu0 %v2243_v9  ;;  %v2268_v17 = vpack.c.bf16 %v38_v13, %v34_v12  ;;  %v42_v18 = vld [vmem:[%s2893_s1 + $0xc8] sm:$0xff]  ;;  %v2293_v26 = vpack.c.bf16 %v37_v16, %v33_v15  ;;  %v27_v29 = vld [vmem:[%s2893_s1 + $0x50] sm:$0xff]  ;;  %v41_v31 = vld [vmem:[%s2893_s1 + $0xc0] sm:$0xff]  ;;  %1597 = vmatpush1.bf16.msra.mxu1 %v2290_v25  ;;  %v2315_v33 = vpack.c.bf16 %v32_v28, %v28_v27 }
   0x8   :  { %v46_v21 = vld [vmem:[%s2893_s1 + $0xe8] sm:$0xff]  ;;  %v45_v32 = vld [vmem:[%s2893_s1 + $0xe0] sm:$0xff]  ;;  %v31_v34 = vld [vmem:[%s2893_s1 + $0x70] sm:$0xff] }
   0x9   :  { %v2306_v30 = vpack.c.bf16 %v46_v21, %v42_v18  ;;  %v50_v35 = vld [vmem:[%s2893_s1 + $0x108] sm:$0xff]  ;;  %v2326_v37 = vpack.c.bf16 %v31_v34, %v27_v29  ;;  %v36_v38 = vld [vmem:[%s2893_s1 + $0x98] sm:$0xff]  ;;  %1599 = vmatprep.subr.bf16.mxu1 %v2315_v33  ;;  %v35_v40 = vld [vmem:[%s2893_s1 + $0x90] sm:$0xff]  ;;  %v2342_v42 = vpack.c.bf16 %v45_v32, %v41_v31 }
   0xa   :  { %1569 = vmatpush1.bf16.msra.mxu0 %v2259_v14  ;;  %v54_v36 = vld [vmem:[%s2893_s1 + $0x128] sm:$0xff]  ;;  %v40_v39 = vld [vmem:[%s2893_s1 + $0xb8] sm:$0xff]  ;;  %v39_v41 = vld [vmem:[%s2893_s1 + $0xb0] sm:$0xff] }
   0xb   :  { %1571 = vmatprep.subr.bf16.mxu0 %v2268_v17  ;;  %v49_v43 = vld [vmem:[%s2893_s1 + $0x100] sm:$0xff]  ;;  %v2350_v45 = vpack.c.bf16 %v40_v39, %v36_v38  ;;  %v2353_v46 = vpack.c.bf16 %v54_v36, %v50_v35  ;;  %1601 = vmatpush1.bf16.msra.mxu1 %v2326_v37  ;;  %v58_v47 = vld [vmem:[%s2893_s1 + $0x148] sm:$0xff]  ;;  %v2359_v48 = vpack.c.bf16 %v39_v41, %v35_v40  ;;  %v44_v49 = vld [vmem:[%s2893_s1 + $0xd8] sm:$0xff] }
   0xc   :  { %v53_v44 = vld [vmem:[%s2893_s1 + $0x120] sm:$0xff]  ;;  %v48_v50 = vld [vmem:[%s2893_s1 + $0xf8] sm:$0xff]  ;;  %v62_v51 = vld [vmem:[%s2893_s1 + $0x168] sm:$0xff] }
   0xd   :  { %1603 = vmatprep.subr.bf16.mxu1 %v2350_v45  ;;  %v2371_v52 = vpack.c.bf16 %v48_v50, %v44_v49  ;;  %v43_v53 = vld [vmem:[%s2893_s1 + $0xd0] sm:$0xff]  ;;  %v2380_v55 = vpack.c.bf16 %v53_v44, %v49_v43  ;;  %v52_v56 = vld [vmem:[%s2893_s1 + $0x118] sm:$0xff]  ;;  %v2389_v58 = vpack.c.bf16 %v62_v51, %v58_v47  ;;  %v57_v59 = vld [vmem:[%s2893_s1 + $0x140] sm:$0xff] }
   0xe   :  { %1573 = vmatpush1.bf16.msra.mxu0 %v2293_v26  ;;  %v47_v54 = vld [vmem:[%s2893_s1 + $0xf0] sm:$0xff]  ;;  %v56_v57 = vld [vmem:[%s2893_s1 + $0x138] sm:$0xff]  ;;  %v61_v60 = vld [vmem:[%s2893_s1 + $0x160] sm:$0xff] }
   0xf   :  { %1575 = vmatprep.subr.bf16.mxu0 %v2306_v30  ;;  %1605 = vmatpush1.bf16.msra.mxu1 %v2359_v48  ;;  %v66_v61 = vld [vmem:[%s2893_s1 + $0x188] sm:$0xff]  ;;  %v2401_v62 = vpack.c.bf16 %v47_v54, %v43_v53  ;;  %v2407_v0 = vpack.c.bf16 %v56_v57, %v52_v56  ;;  %v51_v1 = vld [vmem:[%s2893_s1 + $0x110] sm:$0xff]  ;;  %v60_v5 = vld [vmem:[%s2893_s1 + $0x158] sm:$0xff]  ;;  %v2422_v7 = vpack.c.bf16 %v61_v60, %v57_v59 }
  0x10   :  { %v70_v63 = vld [vmem:[%s2893_s1 + $0x1a8] sm:$0xff]  ;;  %1607 = vmatprep.subr.bf16.mxu1 %v2371_v52  ;;  %v55_v2 = vld [vmem:[%s2893_s1 + $0x130] sm:$0xff]  ;;  %v64_v6 = vld [vmem:[%s2893_s1 + $0x178] sm:$0xff] }
  0x11   :  { %v2425_v10 = vpack.c.bf16 %v70_v63, %v66_v61  ;;  %v65_v11 = vld [vmem:[%s2893_s1 + $0x180] sm:$0xff]  ;;  %v74_v13 = vld [vmem:[%s2893_s1 + $0x1c8] sm:$0xff]  ;;  %v2437_v15 = vpack.c.bf16 %v55_v2, %v51_v1  ;;  %v2443_v18 = vpack.c.bf16 %v64_v6, %v60_v5  ;;  %v59_v19 = vld [vmem:[%s2893_s1 + $0x150] sm:$0xff] }
  0x12   :  { %1577 = vmatpush1.bf16.msra.mxu0 %v2342_v42  ;;  %v69_v12 = vld [vmem:[%s2893_s1 + $0x1a0] sm:$0xff]  ;;  %v78_v16 = vld [vmem:[%s2893_s1 + $0x1e8] sm:$0xff]  ;;  %v63_v20 = vld [vmem:[%s2893_s1 + $0x170] sm:$0xff] }
  0x13   :  { %1579 = vmatprep.subr.bf16.mxu0 %v2353_v46  ;;  %1609 = vmatpush1.bf16.msra.mxu1 %v2401_v62  ;;  %v68_v21 = vld [vmem:[%s2893_s1 + $0x198] sm:$0xff]  ;;  %v2458_v24 = vpack.c.bf16 %v69_v12, %v65_v11  ;;  %v2461_v27 = vpack.c.bf16 %v78_v16, %v74_v13  ;;  %v73_v28 = vld [vmem:[%s2893_s1 + $0x1c0] sm:$0xff]  ;;  %v2470_v31 = vpack.c.bf16 %v63_v20, %v59_v19  ;;  %v67_v34 = vld [vmem:[%s2893_s1 + $0x190] sm:$0xff] }
  0x14   :  { %1611 = vmatprep.subr.bf16.mxu1 %v2407_v0  ;;  %v72_v23 = vld [vmem:[%s2893_s1 + $0x1b8] sm:$0xff]  ;;  %v77_v29 = vld [vmem:[%s2893_s1 + $0x1e0] sm:$0xff]  ;;  %v71_v35 = vld [vmem:[%s2893_s1 + $0x1b0] sm:$0xff] }
  0x15   :  { %v2473_v32 = vpack.c.bf16 %v72_v23, %v68_v21  ;;  %v76_v36 = vld [vmem:[%s2893_s1 + $0x1d8] sm:$0xff]  ;;  %v2488_v39 = vpack.c.bf16 %v77_v29, %v73_v28  ;;  %v2492_v40 = vpack.c.bf16 %v71_v35, %v67_v34  ;;  %v75_v43 = vld [vmem:[%s2893_s1 + $0x1d0] sm:$0xff]  ;;  %v83_v49 = vld [vmem:[%s2894_s0] sm:$0xff] }
  0x16   :  { %1581 = vmatpush1.bf16.msra.mxu0 %v2380_v55  ;;  %v80_v38 = vld [vmem:[%s2893_s1 + $0x1f8] sm:$0xff]  ;;  %v79_v44 = vld [vmem:[%s2893_s1 + $0x1f0] sm:$0xff]  ;;  %v84_v50 = vld [vmem:[%s2894_s0 + $0x8] sm:$0xff] }
  0x17   :  { %1583 = vmatprep.subr.bf16.mxu0 %v2389_v58  ;;  %1613 = vmatpush1.bf16.msra.mxu1 %v2437_v15  ;;  %v2495_v41 = vpack.c.bf16 %v80_v38, %v76_v36  ;;  %v2505_v47 = vpack.c.bf16 %v79_v44, %v75_v43  ;;  %v86_v60 = vld [vmem:[%s2894_s0 + $0x18] sm:$0xff]  ;;  %v85_v2 = vld [vmem:[%s2894_s0 + $0x10] sm:$0xff]  ;;  %v1506_v44 = vld [vmem:[%s2894_s0 + $0x20] sm:$0xff] }
  0x18   :  { %1615 = vmatprep.subr.bf16.mxu1 %v2443_v18 }
  0x1a   :  { %1585 = vmatpush1.bf16.msra.mxu0 %v2422_v7 }
  0x1b   :  { %1587 = vmatprep.subr.bf16.mxu0 %v2425_v10  ;;  %1617 = vmatpush1.bf16.msra.mxu1 %v2470_v31 }
  0x1c   :  { %1619 = vmatprep.subr.bf16.mxu1 %v2473_v32 }
  0x1e   :  { %1589 = vmatpush1.bf16.msra.mxu0 %v2458_v24 }
  0x1f   :  { %1591 = vmatprep.subr.bf16.mxu0 %v2461_v27  ;;  %1621 = vmatpush1.bf16.msra.mxu1 %v2492_v40 }
  0x20   :  { %1623 = vmatprep.subr.bf16.mxu1 %v2495_v41 }
  0x22   :  { %1593 = vmatpush1.bf16.msra.mxu0 %v2488_v39 }
  0x23   :  { %1627 = vmatprep.subr.bf16.mxu0 %v2230_v4  ;;  %1625 = vmatpush1.bf16.msra.mxu1 %v2505_v47 }
  0x24   :  { %1659 = vmatprep.subr.bf16.mxu1 %v2282_v22 }
  0x25   :  { %152 = vmatmul.mubr.f32.vlgmr.msra.gmra.mrb[0].mxu0 %v2203_v3 }
  0x26   :  { %1629 = vmatpush1.bf16.msra.mxu0 %v2241_v8  ;;  %327 = vmatprep.mubr.f32.mxu0 %v2203_v3 }
  0x27   :  { %1631 = vmatprep.subr.bf16.mxu0 %v2243_v9  ;;  %223 = vmatmul.mubr.f32.vlgmr.msra.gmra.mrb[0].mxu1 %v2203_v3 }
  0x28   :  { %1661 = vmatpush1.bf16.msra.mxu1 %v2290_v25  ;;  %398 = vmatprep.mubr.f32.mxu1 %v2203_v3 }
  0x29   :  { %1663 = vmatprep.subr.bf16.mxu1 %v2315_v33 }
  0x2a   :  { %1633 = vmatpush1.bf16.msra.mxu0 %v2259_v14 }
  0x2b   :  { %1635 = vmatprep.subr.bf16.mxu0 %v2268_v17 }
  0x2c   :  { %1665 = vmatpush1.bf16.msra.mxu1 %v2326_v37 }
  0x2d   :  { %1667 = vmatprep.subr.bf16.mxu1 %v2350_v45 }
  0x2e   :  { %1637 = vmatpush1.bf16.msra.mxu0 %v2293_v26 }
  0x2f   :  { %1639 = vmatprep.subr.bf16.mxu0 %v2306_v30 }
  0x30   :  { %1669 = vmatpush1.bf16.msra.mxu1 %v2359_v48 }
  0x31   :  { %1671 = vmatprep.subr.bf16.mxu1 %v2371_v52 }
  0x32   :  { %1641 = vmatpush1.bf16.msra.mxu0 %v2342_v42 }
  0x33   :  { %1643 = vmatprep.subr.bf16.mxu0 %v2353_v46 }
  0x34   :  { %1673 = vmatpush1.bf16.msra.mxu1 %v2401_v62 }
  0x35   :  { %1675 = vmatprep.subr.bf16.mxu1 %v2407_v0 }
  0x36   :  { %1645 = vmatpush1.bf16.msra.mxu0 %v2380_v55 }
  0x37   :  { %1647 = vmatprep.subr.bf16.mxu0 %v2389_v58 }
  0x38   :  { %1677 = vmatpush1.bf16.msra.mxu1 %v2437_v15 }
  0x39   :  { %1679 = vmatprep.subr.bf16.mxu1 %v2443_v18 }
  0x3a   :  { %1649 = vmatpush1.bf16.msra.mxu0 %v2422_v7 }
  0x3b   :  { %1651 = vmatprep.subr.bf16.mxu0 %v2425_v10 }
  0x3c   :  { %1681 = vmatpush1.bf16.msra.mxu1 %v2470_v31 }
  0x3d   :  { %1683 = vmatprep.subr.bf16.mxu1 %v2473_v32 }
  0x3e   :  { %1653 = vmatpush1.bf16.msra.mxu0 %v2458_v24 }
  0x3f   :  { %1655 = vmatprep.subr.bf16.mxu0 %v2461_v27 }
  0x40   :  { %1685 = vmatpush1.bf16.msra.mxu1 %v2492_v40 }
  0x41   :  { %1687 = vmatprep.subr.bf16.mxu1 %v2495_v41 }
  0x42   :  { %1657 = vmatpush1.bf16.msra.mxu0 %v2488_v39 }
  0x43   :  { %1691 = vmatprep.subr.bf16.mxu0 %v2230_v4 }
  0x44   :  { %1689 = vmatpush1.bf16.msra.mxu1 %v2505_v47 }
  0x45   :  { %1723 = vmatprep.subr.bf16.mxu1 %v2282_v22 }
  0xf8   :  { %v153_v51 = vpop.f32.mrb[0].mxu0 }
  0xf9   :  { %v229_v53 = vadd.f32 %v153_v51, %v83_v49  ;;  %v155_v54 = vpop.f32.mrb[1].mxu0  ;;  %v1507_v49 = vld [vmem:[%s2894_s0 + $0x28] sm:$0xff] }
  0xfa   :  { %v230_v56 = vadd.f32 %v155_v54, %v84_v50  ;;  %v224_v61 = vpop.f32.mrb[0].mxu1 }
  0xfb   :  { %v1503_v57 = vmul.f32 -1.442695, %v229_v53  ;;  %v226_v63 = vpop.f32.mrb[1].mxu1  ;;  %v231_v6 = vadd.f32 %v224_v61, %v85_v2  ;;  %v1509_v61 = vld [vmem:[%s2894_s0 + $0x38] sm:$0xff] }
  0xfc   :  { %v1504_v59 = vmul.f32 -1.442695, %v230_v56  ;;  %v232_v1 = vadd.f32 %v226_v63, %v86_v60 }
  0xfd   :  { %2075 = vpow2.f32 %v1503_v57 }
  0xfe   :  { %2077 = vpow2.f32 %v1504_v59  ;;  %v1505_v5 = vmul.f32 -1.442695, %v232_v1  ;;  %v1508_v1 = vld [vmem:[%s2894_s0 + $0x30] sm:$0xff] }
 0x100   :  { %2079 = vpow2.f32 %v1505_v5 }
 0x101   :  { %2081 = vtanh.f32 %v231_v6 }
 0x107   :  { %v2076_v11 = vpop.eup %2075 }
 0x108   :  { %v2078_v12 = vpop.eup %2077  ;;  %v236_v13 = vadd.f32 1.0, %v2076_v11 }
 0x109   :  { %v242_v16 = vadd.f32 1.0, %v2078_v12 }
 0x10a   :  { %2083 = vrcp.f32 %v236_v13  ;;  %v2080_v19 = vpop.eup %2079 }
 0x10b   :  { %2085 = vrcp.f32 %v242_v16  ;;  %v2082_v20 = vpop.eup %2081  ;;  %v249_v23 = vadd.f32 1.0, %v2080_v19 }
 0x10d   :  { %2087 = vrcp.f32 %v249_v23 }
 0x114   :  { %v2084_v21 = vpop.eup %2083 }
 0x115   :  { %v2086_v28 = vpop.eup %2085  ;;  %v253_v29 = vmul.f32 %v2084_v21, %v2082_v20 }
 0x116   :  { %v252_v34 = vmul.f32 0.0, %v2086_v28 }
 0x117   :  { %v2088_v36 = vpop.eup %2087 }
 0x118   :  { %v2559_v35 = vadd.f32 %v253_v29, %v252_v34 }
 0x11a   :  { %2089 = vtanh.f32 %v2559_v35 }
 0x124   :  { %v2090_v38 = vpop.eup %2089 }
 0x125   :  { %v256_v43 = vmul.f32 %v2090_v38, %v2088_v36 }
 0x127   :  { %257 = vst [vmem:[%s2895_s2] sm:$0xff] %v256_v43  ;;  %328 = vmatmul.mubr.f32.vlgmr.msra.gmra.mrb[2].mxu0 %v256_v43  ;;  %399 = vmatmul.mubr.f32.vlgmr.msra.gmra.mrb[2].mxu1 %v256_v43 }
 0x128   :  { %1693 = vmatpush1.bf16.msra.mxu0 %v2241_v8  ;;  %1725 = vmatpush1.bf16.msra.mxu1 %v2290_v25 }
 0x129   :  { %1695 = vmatprep.subr.bf16.mxu0 %v2243_v9  ;;  %1727 = vmatprep.subr.bf16.mxu1 %v2315_v33 }
 0x12a   :  { %504 = vmatprep.mubr.f32.mxu0 %v2203_v3  ;;  %575 = vmatprep.mubr.f32.mxu1 %v2203_v3 }
 0x12c   :  { %1697 = vmatpush1.bf16.msra.mxu0 %v2259_v14  ;;  %1729 = vmatpush1.bf16.msra.mxu1 %v2326_v37 }
 0x12d   :  { %1699 = vmatprep.subr.bf16.mxu0 %v2268_v17  ;;  %1731 = vmatprep.subr.bf16.mxu1 %v2350_v45 }
 0x130   :  { %1701 = vmatpush1.bf16.msra.mxu0 %v2293_v26  ;;  %1733 = vmatpush1.bf16.msra.mxu1 %v2359_v48 }
 0x131   :  { %1703 = vmatprep.subr.bf16.mxu0 %v2306_v30  ;;  %1735 = vmatprep.subr.bf16.mxu1 %v2371_v52 }
 0x134   :  { %1705 = vmatpush1.bf16.msra.mxu0 %v2342_v42  ;;  %1737 = vmatpush1.bf16.msra.mxu1 %v2401_v62 }
 0x135   :  { %1707 = vmatprep.subr.bf16.mxu0 %v2353_v46  ;;  %1739 = vmatprep.subr.bf16.mxu1 %v2407_v0 }
 0x138   :  { %1709 = vmatpush1.bf16.msra.mxu0 %v2380_v55  ;;  %1741 = vmatpush1.bf16.msra.mxu1 %v2437_v15 }
 0x139   :  { %1711 = vmatprep.subr.bf16.mxu0 %v2389_v58  ;;  %1743 = vmatprep.subr.bf16.mxu1 %v2443_v18 }
 0x13c   :  { %1713 = vmatpush1.bf16.msra.mxu0 %v2422_v7  ;;  %1745 = vmatpush1.bf16.msra.mxu1 %v2470_v31 }
 0x13d   :  { %1715 = vmatprep.subr.bf16.mxu0 %v2425_v10  ;;  %1747 = vmatprep.subr.bf16.mxu1 %v2473_v32 }
 0x140   :  { %1717 = vmatpush1.bf16.msra.mxu0 %v2458_v24  ;;  %1749 = vmatpush1.bf16.msra.mxu1 %v2492_v40 }
 0x141   :  { %1719 = vmatprep.subr.bf16.mxu0 %v2461_v27  ;;  %1751 = vmatprep.subr.bf16.mxu1 %v2495_v41 }
 0x144   :  { %1721 = vmatpush1.bf16.msra.mxu0 %v2488_v39  ;;  %1753 = vmatpush1.bf16.msra.mxu1 %v2505_v47 }
 0x145   :  { %1755 = vmatprep.subr.bf16.mxu0 %v2230_v4  ;;  %1787 = vmatprep.subr.bf16.mxu1 %v2282_v22 }
 0x1fa   :  { %v329_v50 = vpop.f32.mrb[2].mxu0  ;;  %v400_v51 = vpop.f32.mrb[2].mxu1 }
 0x1fb   :  { %v405_v53 = vadd.f32 %v1506_v44, %v329_v50  ;;  %v331_v54 = vpop.f32.mrb[3].mxu0  ;;  %v402_v56 = vpop.f32.mrb[3].mxu1  ;;  %v407_v5 = vadd.f32 %v1508_v1, %v400_v51  ;;  %v1515_v44 = vld [vmem:[%s2894_s0 + $0x48] sm:$0xff] }
 0x1fc   :  { %v406_v57 = vadd.f32 %v1507_v49, %v331_v54  ;;  %v408_v63 = vadd.f32 %v1509_v61, %v402_v56 }
 0x1fd   :  { %v1510_v59 = vmul.f32 -1.442695, %v405_v53 }
 0x1fe   :  { %v1511_v60 = vmul.f32 -1.442695, %v406_v57  ;;  %v1512_v2 = vmul.f32 -1.442695, %v408_v63  ;;  %v1516_v63 = vld [vmem:[%s2894_s0 + $0x50] sm:$0xff] }
 0x1ff   :  { %2091 = vpow2.f32 %v1510_v59 }
 0x200   :  { %2093 = vpow2.f32 %v1511_v60  ;;  %v1517_v60 = vld [vmem:[%s2894_s0 + $0x58] sm:$0xff] }
 0x201   :  { %2095 = vpow2.f32 %v1512_v2 }
 0x202   :  { %2097 = vtanh.f32 %v407_v5 }
 0x209   :  { %v2092_v6 = vpop.eup %2091 }
 0x20a   :  { %v2094_v11 = vpop.eup %2093  ;;  %v412_v12 = vadd.f32 1.0, %v2092_v6 }
 0x20b   :  { %v418_v13 = vadd.f32 1.0, %v2094_v11  ;;  %v2096_v16 = vpop.eup %2095 }
 0x20c   :  { %2099 = vrcp.f32 %v412_v12  ;;  %v2098_v19 = vpop.eup %2097  ;;  %v425_v28 = vadd.f32 1.0, %v2096_v16 }
 0x20d   :  { %2101 = vrcp.f32 %v418_v13 }
 0x20e   :  { %2103 = vrcp.f32 %v425_v28 }
 0x216   :  { %v2100_v20 = vpop.eup %2099 }
 0x217   :  { %v2102_v21 = vpop.eup %2101  ;;  %v429_v23 = vmul.f32 %v2100_v20, %v2098_v19 }
 0x218   :  { %v428_v29 = vmul.f32 %v2102_v21, %v2559_v35  ;;  %v2104_v36 = vpop.eup %2103  ;;  %v1514_v35 = vld [vmem:[%s2894_s0 + $0x40] sm:$0xff] }
 0x21a   :  { %v2612_v34 = vadd.f32 %v429_v23, %v428_v29 }
 0x21c   :  { %2105 = vtanh.f32 %v2612_v34 }
 0x226   :  { %v2106_v38 = vpop.eup %2105 }
 0x227   :  { %v432_v43 = vmul.f32 %v2106_v38, %v2104_v36 }
 0x229   :  { %1513 = vst [vmem:[%s2895_s2 + $0x8] sm:$0xff] %v432_v43  ;;  %505 = vmatmul.mubr.f32.vlgmr.msra.gmra.mrb[4].mxu0 %v432_v43  ;;  %576 = vmatmul.mubr.f32.vlgmr.msra.gmra.mrb[4].mxu1 %v432_v43 }
 0x22a   :  { %1757 = vmatpush1.bf16.msra.mxu0 %v2241_v8  ;;  %1789 = vmatpush1.bf16.msra.mxu1 %v2290_v25 }
 0x22b   :  { %1759 = vmatprep.subr.bf16.mxu0 %v2243_v9  ;;  %1791 = vmatprep.subr.bf16.mxu1 %v2315_v33 }
 0x22c   :  { %681 = vmatprep.mubr.f32.mxu0 %v2203_v3  ;;  %752 = vmatprep.mubr.f32.mxu1 %v2203_v3 }
 0x22e   :  { %1761 = vmatpush1.bf16.msra.mxu0 %v2259_v14  ;;  %1793 = vmatpush1.bf16.msra.mxu1 %v2326_v37 }
 0x22f   :  { %1763 = vmatprep.subr.bf16.mxu0 %v2268_v17  ;;  %1795 = vmatprep.subr.bf16.mxu1 %v2350_v45 }
 0x232   :  { %1765 = vmatpush1.bf16.msra.mxu0 %v2293_v26  ;;  %1797 = vmatpush1.bf16.msra.mxu1 %v2359_v48 }
 0x233   :  { %1767 = vmatprep.subr.bf16.mxu0 %v2306_v30  ;;  %1799 = vmatprep.subr.bf16.mxu1 %v2371_v52 }
 0x236   :  { %1769 = vmatpush1.bf16.msra.mxu0 %v2342_v42  ;;  %1801 = vmatpush1.bf16.msra.mxu1 %v2401_v62 }
 0x237   :  { %1771 = vmatprep.subr.bf16.mxu0 %v2353_v46  ;;  %1803 = vmatprep.subr.bf16.mxu1 %v2407_v0 }
 0x23a   :  { %1773 = vmatpush1.bf16.msra.mxu0 %v2380_v55  ;;  %1805 = vmatpush1.bf16.msra.mxu1 %v2437_v15 }
 0x23b   :  { %1775 = vmatprep.subr.bf16.mxu0 %v2389_v58  ;;  %1807 = vmatprep.subr.bf16.mxu1 %v2443_v18 }
 0x23e   :  { %1777 = vmatpush1.bf16.msra.mxu0 %v2422_v7  ;;  %1809 = vmatpush1.bf16.msra.mxu1 %v2470_v31 }
 0x23f   :  { %1779 = vmatprep.subr.bf16.mxu0 %v2425_v10  ;;  %1811 = vmatprep.subr.bf16.mxu1 %v2473_v32 }
 0x242   :  { %1781 = vmatpush1.bf16.msra.mxu0 %v2458_v24  ;;  %1813 = vmatpush1.bf16.msra.mxu1 %v2492_v40 }
 0x243   :  { %1783 = vmatprep.subr.bf16.mxu0 %v2461_v27  ;;  %1815 = vmatprep.subr.bf16.mxu1 %v2495_v41 }
 0x246   :  { %1785 = vmatpush1.bf16.msra.mxu0 %v2488_v39  ;;  %1817 = vmatpush1.bf16.msra.mxu1 %v2505_v47 }
 0x247   :  { %1819 = vmatprep.subr.bf16.mxu0 %v2230_v4  ;;  %1851 = vmatprep.subr.bf16.mxu1 %v2282_v22 }
 0x2fc   :  { %v506_v49 = vpop.f32.mrb[4].mxu0  ;;  %v577_v50 = vpop.f32.mrb[4].mxu1 }
 0x2fd   :  { %v582_v51 = vadd.f32 %v1514_v35, %v506_v49  ;;  %v508_v53 = vpop.f32.mrb[5].mxu0  ;;  %v579_v54 = vpop.f32.mrb[5].mxu1  ;;  %v584_v2 = vadd.f32 %v1516_v63, %v577_v50  ;;  %v1523_v35 = vld [vmem:[%s2894_s0 + $0x68] sm:$0xff] }
 0x2fe   :  { %v583_v56 = vadd.f32 %v1515_v44, %v508_v53  ;;  %v585_v61 = vadd.f32 %v1517_v60, %v579_v54 }
 0x2ff   :  { %v1518_v57 = vmul.f32 -1.442695, %v582_v51 }
 0x300   :  { %v1519_v59 = vmul.f32 -1.442695, %v583_v56  ;;  %v1520_v1 = vmul.f32 -1.442695, %v585_v61  ;;  %v1524_v61 = vld [vmem:[%s2894_s0 + $0x70] sm:$0xff] }
 0x301   :  { %2107 = vpow2.f32 %v1518_v57 }
 0x302   :  { %2109 = vpow2.f32 %v1519_v59  ;;  %v1525_v59 = vld [vmem:[%s2894_s0 + $0x78] sm:$0xff] }
 0x303   :  { %2111 = vpow2.f32 %v1520_v1 }
 0x304   :  { %2113 = vtanh.f32 %v584_v2 }
 0x30b   :  { %v2108_v5 = vpop.eup %2107 }
 0x30c   :  { %v2110_v6 = vpop.eup %2109  ;;  %v589_v11 = vadd.f32 1.0, %v2108_v5 }
 0x30d   :  { %v595_v12 = vadd.f32 1.0, %v2110_v6  ;;  %v2112_v13 = vpop.eup %2111 }
 0x30e   :  { %2115 = vrcp.f32 %v589_v11  ;;  %v2114_v16 = vpop.eup %2113  ;;  %v602_v23 = vadd.f32 1.0, %v2112_v13 }
 0x30f   :  { %2117 = vrcp.f32 %v595_v12 }
 0x310   :  { %2119 = vrcp.f32 %v602_v23 }
 0x318   :  { %v2116_v19 = vpop.eup %2115 }
 0x319   :  { %v2118_v20 = vpop.eup %2117  ;;  %v606_v21 = vmul.f32 %v2116_v19, %v2114_v16 }
 0x31a   :  { %v605_v28 = vmul.f32 %v2118_v20, %v2612_v34  ;;  %v2120_v36 = vpop.eup %2119  ;;  %v1522_v34 = vld [vmem:[%s2894_s0 + $0x60] sm:$0xff] }
 0x31c   :  { %v2665_v29 = vadd.f32 %v606_v21, %v605_v28 }
 0x31e   :  { %2121 = vtanh.f32 %v2665_v29 }
 0x328   :  { %v2122_v38 = vpop.eup %2121 }
 0x329   :  { %v609_v43 = vmul.f32 %v2122_v38, %v2120_v36 }
 0x32b   :  { %1521 = vst [vmem:[%s2895_s2 + $0x10] sm:$0xff] %v609_v43  ;;  %682 = vmatmul.mubr.f32.vlgmr.msra.gmra.mrb[6].mxu0 %v609_v43  ;;  %753 = vmatmul.mubr.f32.vlgmr.msra.gmra.mrb[6].mxu1 %v609_v43 }
 0x32c   :  { %1821 = vmatpush1.bf16.msra.mxu0 %v2241_v8  ;;  %1853 = vmatpush1.bf16.msra.mxu1 %v2290_v25 }
 0x32d   :  { %1823 = vmatprep.subr.bf16.mxu0 %v2243_v9  ;;  %1855 = vmatprep.subr.bf16.mxu1 %v2315_v33 }
 0x32e   :  { %858 = vmatprep.mubr.f32.mxu0 %v2203_v3  ;;  %929 = vmatprep.mubr.f32.mxu1 %v2203_v3 }
 0x330   :  { %1825 = vmatpush1.bf16.msra.mxu0 %v2259_v14  ;;  %1857 = vmatpush1.bf16.msra.mxu1 %v2326_v37 }
 0x331   :  { %1827 = vmatprep.subr.bf16.mxu0 %v2268_v17  ;;  %1859 = vmatprep.subr.bf16.mxu1 %v2350_v45 }
 0x334   :  { %1829 = vmatpush1.bf16.msra.mxu0 %v2293_v26  ;;  %1861 = vmatpush1.bf16.msra.mxu1 %v2359_v48 }
 0x335   :  { %1831 = vmatprep.subr.bf16.mxu0 %v2306_v30  ;;  %1863 = vmatprep.subr.bf16.mxu1 %v2371_v52 }
 0x338   :  { %1833 = vmatpush1.bf16.msra.mxu0 %v2342_v42  ;;  %1865 = vmatpush1.bf16.msra.mxu1 %v2401_v62 }
 0x339   :  { %1835 = vmatprep.subr.bf16.mxu0 %v2353_v46  ;;  %1867 = vmatprep.subr.bf16.mxu1 %v2407_v0 }
 0x33c   :  { %1837 = vmatpush1.bf16.msra.mxu0 %v2380_v55  ;;  %1869 = vmatpush1.bf16.msra.mxu1 %v2437_v15 }
 0x33d   :  { %1839 = vmatprep.subr.bf16.mxu0 %v2389_v58  ;;  %1871 = vmatprep.subr.bf16.mxu1 %v2443_v18 }
 0x340   :  { %1841 = vmatpush1.bf16.msra.mxu0 %v2422_v7  ;;  %1873 = vmatpush1.bf16.msra.mxu1 %v2470_v31 }
 0x341   :  { %1843 = vmatprep.subr.bf16.mxu0 %v2425_v10  ;;  %1875 = vmatprep.subr.bf16.mxu1 %v2473_v32 }
 0x344   :  { %1845 = vmatpush1.bf16.msra.mxu0 %v2458_v24  ;;  %1877 = vmatpush1.bf16.msra.mxu1 %v2492_v40 }
 0x345   :  { %1847 = vmatprep.subr.bf16.mxu0 %v2461_v27  ;;  %1879 = vmatprep.subr.bf16.mxu1 %v2495_v41 }
 0x348   :  { %1849 = vmatpush1.bf16.msra.mxu0 %v2488_v39  ;;  %1881 = vmatpush1.bf16.msra.mxu1 %v2505_v47 }
 0x349   :  { %1883 = vmatprep.subr.bf16.mxu0 %v2230_v4  ;;  %1915 = vmatprep.subr.bf16.mxu1 %v2282_v22 }
 0x3fe   :  { %v683_v44 = vpop.f32.mrb[6].mxu0  ;;  %v754_v49 = vpop.f32.mrb[6].mxu1 }
 0x3ff   :  { %v759_v50 = vadd.f32 %v1522_v34, %v683_v44  ;;  %v685_v51 = vpop.f32.mrb[7].mxu0  ;;  %v756_v53 = vpop.f32.mrb[7].mxu1  ;;  %v761_v1 = vadd.f32 %v1524_v61, %v754_v49  ;;  %v1531_v34 = vld [vmem:[%s2894_s0 + $0x88] sm:$0xff] }
 0x400   :  { %v760_v54 = vadd.f32 %v1523_v35, %v685_v51  ;;  %v762_v60 = vadd.f32 %v1525_v59, %v756_v53 }
 0x401   :  { %v1526_v56 = vmul.f32 -1.442695, %v759_v50 }
 0x402   :  { %v1527_v57 = vmul.f32 -1.442695, %v760_v54  ;;  %v1528_v63 = vmul.f32 -1.442695, %v762_v60  ;;  %v1532_v60 = vld [vmem:[%s2894_s0 + $0x90] sm:$0xff] }
 0x403   :  { %2123 = vpow2.f32 %v1526_v56 }
 0x404   :  { %2125 = vpow2.f32 %v1527_v57  ;;  %v1533_v57 = vld [vmem:[%s2894_s0 + $0x98] sm:$0xff] }
 0x405   :  { %2127 = vpow2.f32 %v1528_v63 }
 0x406   :  { %2129 = vtanh.f32 %v761_v1 }
 0x40d   :  { %v2124_v2 = vpop.eup %2123 }
 0x40e   :  { %v2126_v5 = vpop.eup %2125  ;;  %v766_v6 = vadd.f32 1.0, %v2124_v2 }
 0x40f   :  { %v772_v11 = vadd.f32 1.0, %v2126_v5  ;;  %v2128_v12 = vpop.eup %2127 }
 0x410   :  { %2131 = vrcp.f32 %v766_v6  ;;  %v2130_v13 = vpop.eup %2129  ;;  %v779_v21 = vadd.f32 1.0, %v2128_v12 }
 0x411   :  { %2133 = vrcp.f32 %v772_v11 }
 0x412   :  { %2135 = vrcp.f32 %v779_v21 }
 0x41a   :  { %v2132_v16 = vpop.eup %2131 }
 0x41b   :  { %v2134_v19 = vpop.eup %2133  ;;  %v783_v20 = vmul.f32 %v2132_v16, %v2130_v13 }
 0x41c   :  { %v782_v23 = vmul.f32 %v2134_v19, %v2665_v29  ;;  %v2136_v36 = vpop.eup %2135  ;;  %v1530_v29 = vld [vmem:[%s2894_s0 + $0x80] sm:$0xff] }
 0x41e   :  { %v2718_v28 = vadd.f32 %v783_v20, %v782_v23 }
 0x420   :  { %2137 = vtanh.f32 %v2718_v28 }
 0x42a   :  { %v2138_v38 = vpop.eup %2137 }
 0x42b   :  { %v786_v43 = vmul.f32 %v2138_v38, %v2136_v36 }
 0x42d   :  { %1529 = vst [vmem:[%s2895_s2 + $0x18] sm:$0xff] %v786_v43  ;;  %859 = vmatmul.mubr.f32.vlgmr.msra.gmra.mrb[8].mxu0 %v786_v43  ;;  %930 = vmatmul.mubr.f32.vlgmr.msra.gmra.mrb[8].mxu1 %v786_v43 }
 0x42e   :  { %1885 = vmatpush1.bf16.msra.mxu0 %v2241_v8  ;;  %1917 = vmatpush1.bf16.msra.mxu1 %v2290_v25 }
 0x42f   :  { %1887 = vmatprep.subr.bf16.mxu0 %v2243_v9  ;;  %1919 = vmatprep.subr.bf16.mxu1 %v2315_v33 }
 0x430   :  { %1035 = vmatprep.mubr.f32.mxu0 %v2203_v3  ;;  %1106 = vmatprep.mubr.f32.mxu1 %v2203_v3 }
 0x432   :  { %1889 = vmatpush1.bf16.msra.mxu0 %v2259_v14  ;;  %1921 = vmatpush1.bf16.msra.mxu1 %v2326_v37 }
 0x433   :  { %1891 = vmatprep.subr.bf16.mxu0 %v2268_v17  ;;  %1923 = vmatprep.subr.bf16.mxu1 %v2350_v45 }
 0x436   :  { %1893 = vmatpush1.bf16.msra.mxu0 %v2293_v26  ;;  %1925 = vmatpush1.bf16.msra.mxu1 %v2359_v48 }
 0x437   :  { %1895 = vmatprep.subr.bf16.mxu0 %v2306_v30  ;;  %1927 = vmatprep.subr.bf16.mxu1 %v2371_v52 }
 0x43a   :  { %1897 = vmatpush1.bf16.msra.mxu0 %v2342_v42  ;;  %1929 = vmatpush1.bf16.msra.mxu1 %v2401_v62 }
 0x43b   :  { %1899 = vmatprep.subr.bf16.mxu0 %v2353_v46  ;;  %1931 = vmatprep.subr.bf16.mxu1 %v2407_v0 }
 0x43e   :  { %1901 = vmatpush1.bf16.msra.mxu0 %v2380_v55  ;;  %1933 = vmatpush1.bf16.msra.mxu1 %v2437_v15 }
 0x43f   :  { %1903 = vmatprep.subr.bf16.mxu0 %v2389_v58  ;;  %1935 = vmatprep.subr.bf16.mxu1 %v2443_v18 }
 0x442   :  { %1905 = vmatpush1.bf16.msra.mxu0 %v2422_v7  ;;  %1937 = vmatpush1.bf16.msra.mxu1 %v2470_v31 }
 0x443   :  { %1907 = vmatprep.subr.bf16.mxu0 %v2425_v10  ;;  %1939 = vmatprep.subr.bf16.mxu1 %v2473_v32 }
 0x446   :  { %1909 = vmatpush1.bf16.msra.mxu0 %v2458_v24  ;;  %1941 = vmatpush1.bf16.msra.mxu1 %v2492_v40 }
 0x447   :  { %1911 = vmatprep.subr.bf16.mxu0 %v2461_v27  ;;  %1943 = vmatprep.subr.bf16.mxu1 %v2495_v41 }
 0x44a   :  { %1913 = vmatpush1.bf16.msra.mxu0 %v2488_v39  ;;  %1945 = vmatpush1.bf16.msra.mxu1 %v2505_v47 }
 0x44b   :  { %1947 = vmatprep.subr.bf16.mxu0 %v2230_v4  ;;  %1979 = vmatprep.subr.bf16.mxu1 %v2282_v22 }
 0x500   :  { %v860_v35 = vpop.f32.mrb[8].mxu0  ;;  %v931_v44 = vpop.f32.mrb[8].mxu1 }
 0x501   :  { %v936_v49 = vadd.f32 %v1530_v29, %v860_v35  ;;  %v862_v50 = vpop.f32.mrb[9].mxu0  ;;  %v933_v51 = vpop.f32.mrb[9].mxu1  ;;  %v938_v63 = vadd.f32 %v1532_v60, %v931_v44  ;;  %v1539_v29 = vld [vmem:[%s2894_s0 + $0xa8] sm:$0xff] }
 0x502   :  { %v937_v53 = vadd.f32 %v1531_v34, %v862_v50  ;;  %v939_v59 = vadd.f32 %v1533_v57, %v933_v51 }
 0x503   :  { %v1534_v54 = vmul.f32 -1.442695, %v936_v49 }
 0x504   :  { %v1535_v56 = vmul.f32 -1.442695, %v937_v53  ;;  %v1536_v61 = vmul.f32 -1.442695, %v939_v59 }
 0x505   :  { %2139 = vpow2.f32 %v1534_v54 }
 0x506   :  { %2141 = vpow2.f32 %v1535_v56  ;;  %v1540_v56 = vld [vmem:[%s2894_s0 + $0xb0] sm:$0xff] }
 0x507   :  { %2143 = vpow2.f32 %v1536_v61 }
 0x508   :  { %2145 = vtanh.f32 %v938_v63 }
 0x50f   :  { %v2140_v1 = vpop.eup %2139 }
 0x510   :  { %v2142_v2 = vpop.eup %2141  ;;  %v943_v5 = vadd.f32 1.0, %v2140_v1 }
 0x511   :  { %v949_v6 = vadd.f32 1.0, %v2142_v2  ;;  %v2144_v11 = vpop.eup %2143 }
 0x512   :  { %2147 = vrcp.f32 %v943_v5  ;;  %v2146_v12 = vpop.eup %2145  ;;  %v956_v20 = vadd.f32 1.0, %v2144_v11 }
 0x513   :  { %2149 = vrcp.f32 %v949_v6 }
 0x514   :  { %2151 = vrcp.f32 %v956_v20 }
 0x51c   :  { %v2148_v13 = vpop.eup %2147 }
 0x51d   :  { %v2150_v16 = vpop.eup %2149  ;;  %v960_v19 = vmul.f32 %v2148_v13, %v2146_v12 }
 0x51e   :  { %v959_v21 = vmul.f32 %v2150_v16, %v2718_v28  ;;  %v2152_v36 = vpop.eup %2151  ;;  %v1538_v28 = vld [vmem:[%s2894_s0 + $0xa0] sm:$0xff] }
 0x520   :  { %v2771_v23 = vadd.f32 %v960_v19, %v959_v21 }
 0x522   :  { %2153 = vtanh.f32 %v2771_v23 }
 0x52c   :  { %v2154_v38 = vpop.eup %2153 }
 0x52d   :  { %v963_v43 = vmul.f32 %v2154_v38, %v2152_v36 }
 0x52f   :  { %1537 = vst [vmem:[%s2895_s2 + $0x20] sm:$0xff] %v963_v43  ;;  %1036 = vmatmul.mubr.f32.vlgmr.msra.gmra.mrb[10].mxu0 %v963_v43  ;;  %1107 = vmatmul.mubr.f32.vlgmr.msra.gmra.mrb[10].mxu1 %v963_v43 }
 0x530   :  { %1949 = vmatpush1.bf16.msra.mxu0 %v2241_v8  ;;  %1981 = vmatpush1.bf16.msra.mxu1 %v2290_v25 }
 0x531   :  { %1951 = vmatprep.subr.bf16.mxu0 %v2243_v9  ;;  %1983 = vmatprep.subr.bf16.mxu1 %v2315_v33 }
 0x532   :  { %1212 = vmatprep.mubr.f32.mxu0 %v2203_v3  ;;  %1283 = vmatprep.mubr.f32.mxu1 %v2203_v3 }
 0x534   :  { %1953 = vmatpush1.bf16.msra.mxu0 %v2259_v14  ;;  %1985 = vmatpush1.bf16.msra.mxu1 %v2326_v37 }
 0x535   :  { %1955 = vmatprep.subr.bf16.mxu0 %v2268_v17  ;;  %1987 = vmatprep.subr.bf16.mxu1 %v2350_v45 }
 0x538   :  { %1957 = vmatpush1.bf16.msra.mxu0 %v2293_v26  ;;  %1989 = vmatpush1.bf16.msra.mxu1 %v2359_v48 }
 0x539   :  { %1959 = vmatprep.subr.bf16.mxu0 %v2306_v30  ;;  %1991 = vmatprep.subr.bf16.mxu1 %v2371_v52 }
 0x53c   :  { %1961 = vmatpush1.bf16.msra.mxu0 %v2342_v42  ;;  %1993 = vmatpush1.bf16.msra.mxu1 %v2401_v62 }
 0x53d   :  { %1963 = vmatprep.subr.bf16.mxu0 %v2353_v46  ;;  %1995 = vmatprep.subr.bf16.mxu1 %v2407_v0 }
 0x540   :  { %1965 = vmatpush1.bf16.msra.mxu0 %v2380_v55  ;;  %1997 = vmatpush1.bf16.msra.mxu1 %v2437_v15 }
 0x541   :  { %1967 = vmatprep.subr.bf16.mxu0 %v2389_v58  ;;  %1999 = vmatprep.subr.bf16.mxu1 %v2443_v18 }
 0x544   :  { %1969 = vmatpush1.bf16.msra.mxu0 %v2422_v7  ;;  %2001 = vmatpush1.bf16.msra.mxu1 %v2470_v31 }
 0x545   :  { %1971 = vmatprep.subr.bf16.mxu0 %v2425_v10  ;;  %2003 = vmatprep.subr.bf16.mxu1 %v2473_v32 }
 0x548   :  { %1973 = vmatpush1.bf16.msra.mxu0 %v2458_v24  ;;  %2005 = vmatpush1.bf16.msra.mxu1 %v2492_v40 }
 0x549   :  { %1975 = vmatprep.subr.bf16.mxu0 %v2461_v27  ;;  %2007 = vmatprep.subr.bf16.mxu1 %v2495_v41 }
 0x54c   :  { %1977 = vmatpush1.bf16.msra.mxu0 %v2488_v39  ;;  %2009 = vmatpush1.bf16.msra.mxu1 %v2505_v47 }
 0x54d   :  { %2011 = vmatprep.subr.bf16.mxu0 %v2230_v4  ;;  %2043 = vmatprep.subr.bf16.mxu1 %v2282_v22  ;;  %v1541_v4 = vld [vmem:[%s2894_s0 + $0xb8] sm:$0xff] }
 0x602   :  { %v1037_v34 = vpop.f32.mrb[10].mxu0  ;;  %v1108_v35 = vpop.f32.mrb[10].mxu1 }
 0x603   :  { %v1113_v44 = vadd.f32 %v1538_v28, %v1037_v34  ;;  %v1039_v49 = vpop.f32.mrb[11].mxu0  ;;  %v1110_v50 = vpop.f32.mrb[11].mxu1  ;;  %v1115_v59 = vadd.f32 %v1540_v56, %v1108_v35 }
 0x604   :  { %v1114_v51 = vadd.f32 %v1539_v29, %v1039_v49  ;;  %v1116_v22 = vadd.f32 %v1541_v4, %v1110_v50  ;;  %v1557_v50 = vld [vmem:[%s2894_s0 + $0xf8] sm:$0xff] }
 0x605   :  { %v1542_v53 = vmul.f32 -1.442695, %v1113_v44 }
 0x606   :  { %v1543_v54 = vmul.f32 -1.442695, %v1114_v51  ;;  %v1544_v57 = vmul.f32 -1.442695, %v1116_v22 }
 0x607   :  { %2155 = vpow2.f32 %v1542_v53  ;;  %v1556_v53 = vld [vmem:[%s2894_s0 + $0xf0] sm:$0xff] }
 0x608   :  { %2157 = vpow2.f32 %v1543_v54 }
 0x609   :  { %2159 = vpow2.f32 %v1544_v57 }
 0x60a   :  { %2161 = vtanh.f32 %v1115_v59 }
 0x611   :  { %v2156_v60 = vpop.eup %2155 }
 0x612   :  { %v2158_v61 = vpop.eup %2157  ;;  %v1120_v63 = vadd.f32 1.0, %v2156_v60 }
 0x613   :  { %v1126_v1 = vadd.f32 1.0, %v2158_v61  ;;  %v2160_v2 = vpop.eup %2159 }
 0x614   :  { %2163 = vrcp.f32 %v1120_v63  ;;  %v2162_v5 = vpop.eup %2161  ;;  %v1133_v13 = vadd.f32 1.0, %v2160_v2 }
 0x615   :  { %2165 = vrcp.f32 %v1126_v1 }
 0x616   :  { %2167 = vrcp.f32 %v1133_v13 }
 0x61e   :  { %v2164_v6 = vpop.eup %2163 }
 0x61f   :  { %v2166_v11 = vpop.eup %2165  ;;  %v1137_v12 = vmul.f32 %v2164_v6, %v2162_v5 }
 0x620   :  { %v1136_v16 = vmul.f32 %v2166_v11, %v2771_v23  ;;  %v2168_v20 = vpop.eup %2167  ;;  %v1555_v23 = vld [vmem:[%s2894_s0 + $0xe8] sm:$0xff] }
 0x622   :  { %v2824_v19 = vadd.f32 %v1137_v12, %v1136_v16 }
 0x624   :  { %2169 = vtanh.f32 %v2824_v19 }
 0x62e   :  { %v2170_v21 = vpop.eup %2169 }
 0x62f   :  { %v1140_v36 = vmul.f32 %v2170_v21, %v2168_v20 }
 0x631   :  { %1545 = vst [vmem:[%s2895_s2 + $0x28] sm:$0xff] %v1140_v36  ;;  %1213 = vmatmul.mubr.f32.vlgmr.msra.gmra.mrb[12].mxu0 %v1140_v36  ;;  %1284 = vmatmul.mubr.f32.vlgmr.msra.gmra.mrb[12].mxu1 %v1140_v36 }
 0x632   :  { %2013 = vmatpush1.bf16.msra.mxu0 %v2241_v8  ;;  %2045 = vmatpush1.bf16.msra.mxu1 %v2290_v25  ;;  %v1547_v8 = vld [vmem:[%s2894_s0 + $0xc8] sm:$0xff] }
 0x633   :  { %2015 = vmatprep.subr.bf16.mxu0 %v2243_v9  ;;  %2047 = vmatprep.subr.bf16.mxu1 %v2315_v33 }
 0x634   :  { %1389 = vmatprep.mubr.f32.mxu0 %v2203_v3  ;;  %1460 = vmatprep.mubr.f32.mxu1 %v2203_v3  ;;  %v1546_v3 = vld [vmem:[%s2894_s0 + $0xc0] sm:$0xff] }
 0x636   :  { %2017 = vmatpush1.bf16.msra.mxu0 %v2259_v14  ;;  %2049 = vmatpush1.bf16.msra.mxu1 %v2326_v37 }
 0x637   :  { %2019 = vmatprep.subr.bf16.mxu0 %v2268_v17  ;;  %2051 = vmatprep.subr.bf16.mxu1 %v2350_v45 }
 0x63a   :  { %2021 = vmatpush1.bf16.msra.mxu0 %v2293_v26  ;;  %2053 = vmatpush1.bf16.msra.mxu1 %v2359_v48 }
 0x63b   :  { %2023 = vmatprep.subr.bf16.mxu0 %v2306_v30  ;;  %2055 = vmatprep.subr.bf16.mxu1 %v2371_v52 }
 0x63e   :  { %2025 = vmatpush1.bf16.msra.mxu0 %v2342_v42  ;;  %2057 = vmatpush1.bf16.msra.mxu1 %v2401_v62  ;;  %v1549_v42 = vld [vmem:[%s2894_s0 + $0xd8] sm:$0xff] }
 0x63f   :  { %2027 = vmatprep.subr.bf16.mxu0 %v2353_v46  ;;  %2059 = vmatprep.subr.bf16.mxu1 %v2407_v0  ;;  %v1548_v46 = vld [vmem:[%s2894_s0 + $0xd0] sm:$0xff] }
 0x642   :  { %2029 = vmatpush1.bf16.msra.mxu0 %v2380_v55  ;;  %2061 = vmatpush1.bf16.msra.mxu1 %v2437_v15 }
 0x643   :  { %2031 = vmatprep.subr.bf16.mxu0 %v2389_v58  ;;  %2063 = vmatprep.subr.bf16.mxu1 %v2443_v18 }
 0x646   :  { %2033 = vmatpush1.bf16.msra.mxu0 %v2422_v7  ;;  %2065 = vmatpush1.bf16.msra.mxu1 %v2470_v31 }
 0x647   :  { %2035 = vmatprep.subr.bf16.mxu0 %v2425_v10  ;;  %2067 = vmatprep.subr.bf16.mxu1 %v2473_v32 }
 0x64a   :  { %2037 = vmatpush1.bf16.msra.mxu0 %v2458_v24  ;;  %2069 = vmatpush1.bf16.msra.mxu1 %v2492_v40 }
 0x64b   :  { %2039 = vmatprep.subr.bf16.mxu0 %v2461_v27  ;;  %2071 = vmatprep.subr.bf16.mxu1 %v2495_v41 }
 0x64e   :  { %2041 = vmatpush1.bf16.msra.mxu0 %v2488_v39  ;;  %2073 = vmatpush1.bf16.msra.mxu1 %v2505_v47  ;;  %v1554_v47 = vld [vmem:[%s2894_s0 + $0xe0] sm:$0xff] }
 0x704   :  { %v1214_v9 = vpop.f32.mrb[12].mxu0  ;;  %v1285_v14 = vpop.f32.mrb[12].mxu1 }
 0x705   :  { %v1290_v17 = vadd.f32 %v1546_v3, %v1214_v9  ;;  %v1216_v25 = vpop.f32.mrb[13].mxu0  ;;  %v1287_v26 = vpop.f32.mrb[13].mxu1  ;;  %v1292_v52 = vadd.f32 %v1548_v46, %v1285_v14 }
 0x706   :  { %v1291_v30 = vadd.f32 %v1547_v8, %v1216_v25  ;;  %v1293_v45 = vadd.f32 %v1549_v42, %v1287_v26 }
 0x707   :  { %v1550_v33 = vmul.f32 -1.442695, %v1290_v17 }
 0x708   :  { %v1551_v37 = vmul.f32 -1.442695, %v1291_v30  ;;  %v1552_v48 = vmul.f32 -1.442695, %v1293_v45 }
 0x709   :  { %2171 = vpow2.f32 %v1550_v33 }
 0x70a   :  { %2173 = vpow2.f32 %v1551_v37 }
 0x70b   :  { %2175 = vpow2.f32 %v1552_v48 }
 0x70c   :  { %2177 = vtanh.f32 %v1292_v52 }
 0x713   :  { %v2172_v55 = vpop.eup %2171 }
 0x714   :  { %v2174_v58 = vpop.eup %2173  ;;  %v1297_v62 = vadd.f32 1.0, %v2172_v55 }
 0x715   :  { %v1303_v0 = vadd.f32 1.0, %v2174_v58  ;;  %v2176_v7 = vpop.eup %2175 }
 0x716   :  { %2179 = vrcp.f32 %v1297_v62  ;;  %v2178_v10 = vpop.eup %2177  ;;  %v1310_v27 = vadd.f32 1.0, %v2176_v7 }
 0x717   :  { %2181 = vrcp.f32 %v1303_v0 }
 0x718   :  { %2183 = vrcp.f32 %v1310_v27 }
 0x720   :  { %v2180_v15 = vpop.eup %2179 }
 0x721   :  { %v2182_v18 = vpop.eup %2181  ;;  %v1314_v24 = vmul.f32 %v2180_v15, %v2178_v10 }
 0x722   :  { %v1313_v31 = vmul.f32 %v2182_v18, %v2824_v19  ;;  %v2184_v39 = vpop.eup %2183 }
 0x724   :  { %v1315_v32 = vadd.f32 %v1314_v24, %v1313_v31 }
 0x726   :  { %2185 = vtanh.f32 %v1315_v32 }
 0x730   :  { %v2186_v40 = vpop.eup %2185 }
 0x731   :  { %v1317_v41 = vmul.f32 %v2186_v40, %v2184_v39 }
 0x733   :  { %1553 = vst [vmem:[%s2895_s2 + $0x30] sm:$0xff] %v1317_v41  ;;  %1390 = vmatmul.mubr.f32.vlgmr.msra.gmra.mrb[14].mxu0 %v1317_v41  ;;  %1461 = vmatmul.mubr.f32.vlgmr.msra.gmra.mrb[14].mxu1 %v1317_v41 }
 0x806   :  { %v1391_v38 = vpop.f32.mrb[14].mxu0  ;;  %v1462_v43 = vpop.f32.mrb[14].mxu1 }
 0x807   :  { %v1467_v28 = vadd.f32 %v1554_v47, %v1391_v38  ;;  %v1393_v29 = vpop.f32.mrb[15].mxu0  ;;  %v1464_v34 = vpop.f32.mrb[15].mxu1  ;;  %v1469_v4 = vadd.f32 %v1556_v53, %v1462_v43 }
 0x808   :  { %v1468_v35 = vadd.f32 %v1555_v23, %v1393_v29  ;;  %v1470_v51 = vadd.f32 %v1557_v50, %v1464_v34 }
 0x809   :  { %v1558_v44 = vmul.f32 -1.442695, %v1467_v28 }
 0x80a   :  { %v1559_v49 = vmul.f32 -1.442695, %v1468_v35  ;;  %v1560_v54 = vmul.f32 -1.442695, %v1470_v51 }
 0x80b   :  { %2187 = vpow2.f32 %v1558_v44 }
 0x80c   :  { %2189 = vpow2.f32 %v1559_v49 }
 0x80d   :  { %2191 = vpow2.f32 %v1560_v54 }
 0x80e   :  { %2193 = vtanh.f32 %v1469_v4 }
 0x815   :  { %v2188_v22 = vpop.eup %2187 }
 0x816   :  { %v2190_v56 = vpop.eup %2189  ;;  %v1474_v57 = vadd.f32 1.0, %v2188_v22 }
 0x817   :  { %v1480_v59 = vadd.f32 1.0, %v2190_v56  ;;  %v2192_v60 = vpop.eup %2191 }
 0x818   :  { %2195 = vrcp.f32 %v1474_v57  ;;  %v2194_v61 = vpop.eup %2193  ;;  %v1487_v5 = vadd.f32 1.0, %v2192_v60 }
 0x819   :  { %2197 = vrcp.f32 %v1480_v59 }
 0x81a   :  { %2199 = vrcp.f32 %v1487_v5 }
 0x822   :  { %v2196_v63 = vpop.eup %2195 }
 0x823   :  { %v2198_v1 = vpop.eup %2197  ;;  %v1491_v2 = vmul.f32 %v2196_v63, %v2194_v61 }
 0x824   :  { %v1490_v6 = vmul.f32 %v2198_v1, %v1315_v32  ;;  %v2200_v12 = vpop.eup %2199 }
 0x826   :  { %v1492_v11 = vadd.f32 %v1491_v2, %v1490_v6 }
 0x828   :  { %2201 = vtanh.f32 %v1492_v11 }
 0x832   :  { %v2202_v13 = vpop.eup %2201 }
 0x833   :  { %v1494_v16 = vmul.f32 %v2202_v13, %v2200_v12 }
 0x835   :  { %1561 = vst [vmem:[%s2895_s2 + $0x38] sm:$0xff] %v1494_v16 }

// kernel: seq2seq_lstm_forward.17
= control target key start
LH: loop header
LB: loop body
LE: loop exit
PB: predicated region body
PF: predicated region fallthrough
CT: control target
= control target key end

     0   :  { %vm19_vm0 = vcmask 261120   ;;  %v377_v5 = vmov 0.0   ;;  %s512_s0 = inlined_call_operand.vmem [shape: f32[64,128], index: 0, kind: input, shape index: {}]   ;;  %s513_s1 = inlined_call_operand.vmem [shape: f32[128,32], index: 1, kind: input, shape index: {}]   ;;  %s514_s2 = inlined_call_operand.vmem [shape: f32[1,32], index: 2, kind: input, shape index: {}]   ;;  %s515_s3 = inlined_call_operand.hbm [shape: f32[64,32], index: 3, kind: output, shape index: {}]  }
   0x1   :  { %v44_v0 = vld [vmem:[%s513_s1] sm:$0xff]  ;;  %v45_v1 = vld [vmem:[%s513_s1 + $0x8] sm:$0xff]  ;;  %v46_v2 = vld [vmem:[%s513_s1 + $0x10] sm:$0xff]  ;;  %21 = vst.msk [vmem:[#allocation2 + $0x8] sm:$0xff] %vm19_vm0, %v377_v5 }
   0x2   :  { %v301_v3 = vpack.c.bf16 %v45_v1, %v44_v0  ;;  %v47_v4 = vld [vmem:[%s513_s1 + $0x18] sm:$0xff]  ;;  %20 = vst.msk [vmem:[#allocation2] sm:$0xff] %vm19_vm0, %v377_v5  ;;  %22 = vst.msk [vmem:[#allocation2 + $0x10] sm:$0xff] %vm19_vm0, %v377_v5  ;;  %v48_v7 = vld [vmem:[%s513_s1 + $0x20] sm:$0xff] }
   0x3   :  { %23 = vst.msk [vmem:[#allocation2 + $0x18] sm:$0xff] %vm19_vm0, %v377_v5  ;;  %24 = vst.msk [vmem:[#allocation2 + $0x20] sm:$0xff] %vm19_vm0, %v377_v5  ;;  %v305_v6 = vpack.c.bf16 %v47_v4, %v46_v2  ;;  %v49_v8 = vld [vmem:[%s513_s1 + $0x28] sm:$0xff]  ;;  %v36_v10 = vld [vmem:[%s512_s0] sm:$0xff] }
   0x4   :  { %25 = vst.msk [vmem:[#allocation2 + $0x28] sm:$0xff] %vm19_vm0, %v377_v5  ;;  %26 = vst.msk [vmem:[#allocation2 + $0x30] sm:$0xff] %vm19_vm0, %v377_v5  ;;  %302 = vmatprep.subr.bf16.mxu0 %v301_v3  ;;  %333 = vmatprep.subr.bf16.mxu1 %v301_v3  ;;  %v309_v9 = vpack.c.bf16 %v49_v8, %v48_v7  ;;  %v40_v11 = vld [vmem:[%s512_s0 + $0x20] sm:$0xff]  ;;  %v50_v12 = vld [vmem:[%s513_s1 + $0x30] sm:$0xff] }
   0x5   :  { %27 = vst.msk [vmem:[#allocation2 + $0x38] sm:$0xff] %vm19_vm0, %v377_v5  ;;  %304 = vmatpush3.bf16.msra.mxu0 %v301_v3  ;;  %341 = vmatpush3.bf16.msra.mxu1 %v301_v3  ;;  %v51_v13 = vld [vmem:[%s513_s1 + $0x38] sm:$0xff] }
   0x6   :  { %306 = vmatprep.subr.bf16.mxu0 %v305_v6  ;;  %334 = vmatprep.subr.bf16.mxu1 %v305_v6 }
   0x7   :  { %289 = vmatprep.mubr.f32.mxu0 %v36_v10  ;;  %295 = vmatprep.mubr.f32.mxu1 %v40_v11 }
   0x9   :  { %308 = vmatpush3.bf16.msra.mxu0 %v305_v6  ;;  %342 = vmatpush3.bf16.msra.mxu1 %v305_v6 }
   0xa   :  { %8 = vsyncpa [#allocation4], 0  ;;  %310 = vmatprep.subr.bf16.mxu0 %v309_v9  ;;  %335 = vmatprep.subr.bf16.mxu1 %v309_v9  ;;  %v313_v14 = vpack.c.bf16 %v51_v13, %v50_v12  ;;  %v52_v15 = vld [vmem:[%s513_s1 + $0x40] sm:$0xff]  ;;  %v53_v16 = vld [vmem:[%s513_s1 + $0x48] sm:$0xff]  ;;  %s378_s6 = smov [#allocation3]  }
   0xb   :  { %v317_v17 = vpack.c.bf16 %v53_v16, %v52_v15  ;;  %v54_v18 = vld [vmem:[%s513_s1 + $0x50] sm:$0xff]  ;;  %v55_v19 = vld [vmem:[%s513_s1 + $0x58] sm:$0xff]  ;;  %v56_v21 = vld [vmem:[%s513_s1 + $0x60] sm:$0xff]  ;;  %s221_s7 = sshll.u32 %s378_s6, 4  ;;  %s222_s7 = int_to_ptr.vmem [resolvable:$true] %s221_s7 }
   0xc   :  { %v321_v20 = vpack.c.bf16 %v55_v19, %v54_v18  ;;  %v57_v22 = vld [vmem:[%s513_s1 + $0x68] sm:$0xff]  ;;  %v58_v24 = vld [vmem:[%s513_s1 + $0x70] sm:$0xff]  ;;  %v59_v25 = vld [vmem:[%s513_s1 + $0x78] sm:$0xff]  ;;  %p358_p1 = scmp.lt.s32.totalorder %s222_s7, %s222_s7 }
   0xd   :  { %312 = vmatpush3.bf16.msra.mxu0 %v309_v9  ;;  %343 = vmatpush3.bf16.msra.mxu1 %v309_v9  ;;  %v325_v23 = vpack.c.bf16 %v57_v22, %v56_v21  ;;  %v329_v26 = vpack.c.bf16 %v59_v25, %v58_v24  ;;  %v37_v27 = vld [vmem:[%s512_s0 + $0x8] sm:$0xff]  ;;  %v38_v29 = vld [vmem:[%s512_s0 + $0x10] sm:$0xff]  ;;  %v39_v31 = vld [vmem:[%s512_s0 + $0x18] sm:$0xff] }
   0xe   :  { %314 = vmatprep.subr.bf16.mxu0 %v313_v14  ;;  %336 = vmatprep.subr.bf16.mxu1 %v313_v14  ;;  %v41_v28 = vld [vmem:[%s512_s0 + $0x28] sm:$0xff]  ;;  %v42_v30 = vld [vmem:[%s512_s0 + $0x30] sm:$0xff]  ;;  %v43_v32 = vld [vmem:[%s512_s0 + $0x38] sm:$0xff] }
   0xf   :  { %v29_v33 = vld [vmem:[#allocation2 + $0x8] sm:$0xff]  ;;  %v28_v35 = vld [vmem:[#allocation2] sm:$0xff]  ;;  %v31_v45 = vld [vmem:[#allocation2 + $0x18] sm:$0xff] }
  0x10   :  { %v33_v34 = vld [vmem:[#allocation2 + $0x28] sm:$0xff]  ;;  %v32_v36 = vld [vmem:[#allocation2 + $0x20] sm:$0xff]  ;;  %v35_v46 = vld [vmem:[#allocation2 + $0x38] sm:$0xff] }
  0x11   :  { %316 = vmatpush3.bf16.msra.mxu0 %v313_v14  ;;  %344 = vmatpush3.bf16.msra.mxu1 %v313_v14  ;;  %v30_v47 = vld [vmem:[#allocation2 + $0x10] sm:$0xff]  ;;  %v232_v57 = vld [vmem:[%s514_s2] ss:$0 sm:$0xff]  ;;  %s353_s2 = scalar_lea.vmem %s222_s7, 1024 }
  0x12   :  { %318 = vmatprep.subr.bf16.mxu0 %v317_v17  ;;  %337 = vmatprep.subr.bf16.mxu1 %v317_v17  ;;  %v34_v48 = vld [vmem:[#allocation2 + $0x30] sm:$0xff]  ;;  %p354_p0 = scmp.ne.s32.totalorder %s222_s7, %s353_s2  ;;  %p359_p2 = scmp.lt.s32.totalorder %s353_s2, %s353_s2 }
  0x14   :  { %p360_p3 = por %p359_p2, %p358_p1 }
  0x15   :  { %320 = vmatpush3.bf16.msra.mxu0 %v317_v17  ;;  %345 = vmatpush3.bf16.msra.mxu1 %v317_v17 }
  0x16   :  { %322 = vmatprep.subr.bf16.mxu0 %v321_v20  ;;  %338 = vmatprep.subr.bf16.mxu1 %v321_v20  ;;  %p361_p4 = pnand %p360_p3, %p354_p0 }
  0x19   :  { %324 = vmatpush3.bf16.msra.mxu0 %v321_v20  ;;  %346 = vmatpush3.bf16.msra.mxu1 %v321_v20 }
  0x1a   :  { %326 = vmatprep.subr.bf16.mxu0 %v325_v23  ;;  %339 = vmatprep.subr.bf16.mxu1 %v325_v23 }
  0x1d   :  { %328 = vmatpush3.bf16.msra.mxu0 %v325_v23  ;;  %347 = vmatpush3.bf16.msra.mxu1 %v325_v23 }
  0x1e   :  { %330 = vmatprep.subr.bf16.mxu0 %v329_v26  ;;  %340 = vmatprep.subr.bf16.mxu1 %v329_v26 }
  0x21   :  { %332 = vmatpush3.bf16.msra.mxu0 %v329_v26  ;;  %348 = vmatpush3.bf16.msra.mxu1 %v329_v26 }
  0x24   :  { %290 = vmatmul.mubr.f32.vlgmr.msra.gmra.mrb[0].mxu0 %v37_v27  ;;  %296 = vmatmul.mubr.f32.vlgmr.msra.gmra.mrb[0].mxu1 %v41_v28 }
  0x25   :  { %292 = vmatprep.mubr.f32.mxu0 %v38_v29  ;;  %298 = vmatprep.mubr.f32.mxu1 %v42_v30 }
  0x28   :  { %293 = vmatmul.mubr.f32.gmra.mrb[2].mxu0 %v39_v31  ;;  %299 = vmatmul.mubr.f32.gmra.mrb[2].mxu1 %v43_v32 }
  0xf7   :  { %v291_v37 = vpop.f32.mrb[0].mxu0  ;;  %v297_v38 = vpop.f32.mrb[0].mxu1 }
  0xf8   :  { %v166_v39 = vadd.f32 %v291_v37, %v29_v33  ;;  %v170_v40 = vadd.f32 %v297_v38, %v33_v34  ;;  %v126_v41 = vpop.f32.mrb[1].mxu0  ;;  %v146_v42 = vpop.f32.mrb[1].mxu1 }
  0xf9   :  { %v165_v43 = vadd.f32 %v126_v41, %v28_v35  ;;  %v169_v44 = vadd.f32 %v146_v42, %v32_v36 }
  0xfa   :  { %175 = vst.msk [vmem:[#allocation2 + $0x8] sm:$0xff] %vm19_vm0, %v166_v39  ;;  %179 = vst.msk [vmem:[#allocation2 + $0x28] sm:$0xff] %vm19_vm0, %v170_v40 }
  0xfb   :  { %174 = vst.msk [vmem:[#allocation2] sm:$0xff] %vm19_vm0, %v165_v43  ;;  %178 = vst.msk [vmem:[#allocation2 + $0x20] sm:$0xff] %vm19_vm0, %v169_v44  ;;  %v294_v49 = vpop.f32.mrb[2].mxu0  ;;  %v300_v50 = vpop.f32.mrb[2].mxu1 }
  0xfc   :  { %v168_v51 = vadd.f32 %v294_v49, %v31_v45  ;;  %v172_v52 = vadd.f32 %v300_v50, %v35_v46  ;;  %v136_v53 = vpop.f32.mrb[3].mxu0  ;;  %v156_v54 = vpop.f32.mrb[3].mxu1 }
  0xfd   :  { %v167_v55 = vadd.f32 %v136_v53, %v30_v47  ;;  %v171_v56 = vadd.f32 %v156_v54, %v34_v48 }
  0xfe   :  { %177 = vst.msk [vmem:[#allocation2 + $0x18] sm:$0xff] %vm19_vm0, %v168_v51  ;;  %181 = vst.msk [vmem:[#allocation2 + $0x38] sm:$0xff] %vm19_vm0, %v172_v52 }
  0xff   :  { %176 = vst.msk [vmem:[#allocation2 + $0x10] sm:$0xff] %vm19_vm0, %v167_v55  ;;  %180 = vst.msk [vmem:[#allocation2 + $0x30] sm:$0xff] %vm19_vm0, %v171_v56 }
 0x101   :  { %v186_v58 = vld [vmem:[#allocation2 + $0x8] sm:$0xff] }
 0x102   :  { %v190_v59 = vld [vmem:[#allocation2 + $0x28] sm:$0xff]  ;;  %v185_v60 = vld [vmem:[#allocation2] sm:$0xff]  ;;  %v201_v62 = vadd.f32 %v232_v57, %v186_v58 }
 0x103   :  { %v189_v61 = vld [vmem:[#allocation2 + $0x20] sm:$0xff]  ;;  %v205_v63 = vadd.f32 %v232_v57, %v190_v59  ;;  %v200_v0 = vadd.f32 %v232_v57, %v185_v60 }
 0x104   :  { %v204_v1 = vadd.f32 %v232_v57, %v189_v61  ;;  %209 = vst.msk [vmem:[#allocation3 + $0x8] sm:$0xff] %vm19_vm0, %v201_v62 }
 0x105   :  { %213 = vst.msk [vmem:[#allocation3 + $0x28] sm:$0xff] %vm19_vm0, %v205_v63  ;;  %v188_v2 = vld [vmem:[#allocation2 + $0x18] sm:$0xff]  ;;  %208 = vst.msk [vmem:[#allocation3] sm:$0xff] %vm19_vm0, %v200_v0 }
 0x106   :  { %v192_v3 = vld [vmem:[#allocation2 + $0x38] sm:$0xff]  ;;  %212 = vst.msk [vmem:[#allocation3 + $0x20] sm:$0xff] %vm19_vm0, %v204_v1  ;;  %v187_v4 = vld [vmem:[#allocation2 + $0x10] sm:$0xff]  ;;  %v203_v6 = vadd.f32 %v232_v57, %v188_v2 }
 0x107   :  { %v191_v5 = vld [vmem:[#allocation2 + $0x30] sm:$0xff]  ;;  %v207_v7 = vadd.f32 %v232_v57, %v192_v3  ;;  %v202_v8 = vadd.f32 %v232_v57, %v187_v4 }
 0x108   :  { %v206_v9 = vadd.f32 %v232_v57, %v191_v5  ;;  %211 = vst.msk [vmem:[#allocation3 + $0x18] sm:$0xff] %vm19_vm0, %v203_v6 }
 0x109   :  { %215 = vst.msk [vmem:[#allocation3 + $0x38] sm:$0xff] %vm19_vm0, %v207_v7  ;;  %210 = vst.msk [vmem:[#allocation3 + $0x10] sm:$0xff] %vm19_vm0, %v202_v8 }
 0x10a   :  { %214 = vst.msk [vmem:[#allocation3 + $0x30] sm:$0xff] %vm19_vm0, %v206_v9 }
 0x10b   :  { %364 = shalt.err (!%p361_p4)
}
 0x10c   :  { %s365_s10 = scalar_lea.hbm %s515_s3, 1024 }
 0x10d   :  { %p366_p5 = scmp.ne.s32.totalorder %s515_s3, %s365_s10  ;;  %p369_p6 = scmp.lt.u32.totalorder %s365_s10, %s515_s3 }
 0x10f   :  { %p371_p7 = pnand %p369_p6, %p366_p5 }
 0x111   :  { %374 = shalt.err (!%p371_p7)
}
 0x112   :  { %s379_s15 = smov 128   ;;  %s380_s16 = smov 8  }
 0x113   :  { %227 = dma.vmem_to_hbm [thread:$0]  %s222_s7, 1024, %s515_s3, [#allocation4], %s379_s15, %s379_s15, %s380_s16  }
 0x114   :  { %375 = dma.done.wait [#allocation4], 1024  }
 0x115   :  { %376 = vsyncadd [#allocation4], 4294966272 }
 0x116   :  { %231 = vsyncpa [#allocation4], 1 }

</bundles_post_ra>
